<compile_context>
chip_gen: v7x
topology: tpu7x:2x2x1
jax: 0.10.0
libtpu: 0.0.40
codegen_flags: <defaults>
</compile_context>

<pallas_src>
import math

import jax
import jax.numpy as jnp
from jax.experimental import pallas as pl
from jax.experimental.pallas import tpu as pltpu


# Conv-trunk geometry is fixed by fc1's 896 input features:
#   (B, C, 84, 44) --conv1 8x8/4--> (B, 256, 20, 10)
#                  --conv2 4x4/2--> (B, 64, 9, 4)
#                  --conv3 3x3/1--> (B, 64, 7, 2)   -> flatten = 896
_H, _W = 84, 44
_OH1, _OW1 = 20, 10                 # conv1 output grid
_SY, _SX = _OH1 // 2, _OW1 // 2     # 10 x 5 parity-subsampled conv1 grid
_NPIX = _SY * _SX                   # 50 positions per (parity, batch) slab
_OH3, _OW3 = 7, 2                   # conv3 output grid (14 positions x 64 ch)


def _round_up(x, m):
    return (x + m - 1) // m * m


# ---------------------------------------------------------------------------
# Fused kernel: conv1 + conv2 + conv3 + dueling head, everything in VMEM.
# Row layout of every activation map: ((parity)*50 + 5*Y + X)*Bt + b, i.e.
# batch-minor, so a per-spatial-position batch block is one contiguous slice.
# ---------------------------------------------------------------------------
def _qnet_fused_kernel(x1_ref, w1_ref, b1_ref, w2_ref, b2_ref, w3_ref, b3_ref,
                       wf1_ref, bf1_ref, wf2_ref, bf2_ref, wf3_ref, bf3_ref,
                       wo_ref, bo_ref, q_ref, h1_s, wide_s, h2_s, h3_s):
    Bt = q_ref.shape[0]              # per-program batch tile
    Q2 = _NPIX * Bt                  # rows of the width-5 conv2/conv3 maps
    R1 = 4 * Q2                      # 200*Bt parity-ordered conv1 output rows
    S2 = Q2 + 6 * Bt                 # slab rows consumed by conv2 (max tap
                                     # offset = (5*1+1)*Bt)

    # Zero the pad rows that shifted matmuls may read.  Garbage rows produced
    # from them are never consumed by valid outputs (row-wise confinement);
    # zeroing just guarantees no stale NaN/Inf is ever touched.
    h1_s[pl.ds(R1, h1_s.shape[0] - R1), :] = jnp.zeros(
        (h1_s.shape[0] - R1, h1_s.shape[1]), h1_s.dtype)
    h2_s[pl.ds(Q2, h2_s.shape[0] - Q2), :] = jnp.zeros(
        (h2_s.shape[0] - Q2, h2_s.shape[1]), h2_s.dtype)

    # ---- conv1: relu(x1_cols @ w1 + b1) in 200-row chunks (M=200), stored as
    # bf16 so every later tap read is half the VMEM traffic.
    w1 = w1_ref[...]
    b1 = b1_ref[...]
    for r0 in range(0, R1, 200):
        acc = jnp.dot(x1_ref[pl.ds(r0, 200), :], w1,
                      preferred_element_type=jnp.float32)
        h1_s[pl.ds(r0, 200), :] = jnp.maximum(acc + b1, 0.0).astype(h1_s.dtype)
    # TODO(synk): for very large Bt switch this static loop to lax.fori_loop so
    # code size / live ranges stay bounded.

    # ---- conv2 (4x4, stride 2): taps grouped by input parity (i%2, j%2); the
    # 4 taps of a group are stacked along N at init -> one (S2,256)@(256,256)
    # matmul per group (full 256-lane MXU), then 4 shifted 64-lane slice adds.
    # Lane slice t of the wide result is the tap with within-slab row offset
    # (5*(t//2) + t%2) * Bt.
    b2 = b2_ref[...]
    off2 = (0, Bt, 5 * Bt, 6 * Bt)
    acc2 = jnp.zeros((Q2, 64), jnp.float32)
    for g in range(4):
        wide_s[pl.ds(0, S2), :] = jnp.dot(
            h1_s[pl.ds(g * Q2, S2), :], w2_ref[g],
            preferred_element_type=jnp.float32)
        for t in range(4):
            acc2 = acc2 + wide_s[pl.ds(off2[t], Q2), pl.ds(t * 64, 64)]
    h2_s[pl.ds(0, Q2), :] = jnp.maximum(acc2 + b2, 0.0).astype(h2_s.dtype)

    # ---- conv3 (3x3, stride 1): 3 row-groups of 3 taps stacked along N
    # (zero-padded to 256 lanes so all wide_s accesses stay full-width).  Lane
    # slice t of group g is tap (i,j)=(g,t), row offset (5*g + t)*Bt.
    b3 = b3_ref[...]
    h2 = h2_s[...]
    acc3 = jnp.zeros((Q2, 64), jnp.float32)
    for g in range(3):
        wide_s[...] = jnp.dot(h2, w3_ref[g], preferred_element_type=jnp.float32)
        for t in range(3):
            acc3 = acc3 + wide_s[pl.ds((5 * g + t) * Bt, Q2), pl.ds(t * 64, 64)]
    h3_s[pl.ds(0, Q2), :] = jnp.maximum(acc3 + b3, 0.0).astype(h3_s.dtype)

    # ---- dueling head, batched over Bt ------------------------------------
    # fc1 as 14 per-spatial-position (Bt,64)@(64,128) matmuls: the batch-minor
    # row layout makes each position a contiguous (Bt,64) slice, so the conv3
    # activation never needs a rows->lanes relayout.
    f1 = jnp.zeros((Bt, 128), jnp.float32)
    for k in range(_OH3 * _OW3):
        p = (_SX * (k // _OW3) + (k % _OW3)) * Bt
        f1 = f1 + jnp.dot(h3_s[pl.ds(p, Bt), :], wf1_ref[k],
                          preferred_element_type=jnp.float32)
    h = jnp.maximum(f1 + bf1_ref[...], 0.0)
    h = jnp.maximum(
        jnp.dot(h.astype(jnp.bfloat16), wf2_ref[...],
                preferred_element_type=jnp.float32) + bf2_ref[...], 0.0)
    h = jnp.maximum(
        jnp.dot(h.astype(jnp.bfloat16), wf3_ref[...],
                preferred_element_type=jnp.float32) + bf3_ref[...], 0.0)
    adv = jnp.dot(h.astype(jnp.bfloat16), wo_ref[...],
                  preferred_element_type=jnp.float32) + bo_ref[...]
    # Reference forward() reuses fc1..fcout for the value branch, so
    # value == advantage and Q = 2*adv - mean(adv).  Reproduced exactly.
    q_ref[...] = 2.0 * adv - jnp.mean(adv, axis=1, keepdims=True)


# ---------------------------------------------------------------------------
# XLA-side prep: bf16 im2col of the raw input for conv1, parity-major rows,
# batch-minor inside each spatial position, tiled over batch groups of `bt`.
# ---------------------------------------------------------------------------
def _conv1_im2col_parity(x, bt):
    """Output (G, 4*50*bt, C*64); row (((py*2+px)*10 + Y)*5 + X)*bt + b holds
    the patch of conv1 output pixel (y, x) = (2Y+py, 2X+px) of local batch b;
    features ordered c*64 + i*8 + j (same order as torch weight.reshape)."""
    Bp, C, H, W = x.shape
    KH = KW = 8
    S = 4
    OH = (H - KH) // S + 1
    OW = (W - KW) // S + 1
    assert OH % 2 == 0 and OW % 2 == 0 and Bp % bt == 0
    G = Bp // bt
    taps = []
    for i in range(KH):
        for j in range(KW):
            taps.append(x[:, :, i:i + S * OH:S, j:j + S * OW:S])  # (Bp,C,OH,OW)
    p = jnp.stack(taps, axis=-1)                              # (Bp,C,OH,OW,64)
    p = p.reshape(G, bt, C, OH // 2, 2, OW // 2, 2, KH * KW)  # (G,b,c,Y,py,X,px,t)
    p = p.transpose(0, 4, 6, 3, 5, 1, 2, 7)                   # (G,py,px,Y,X,b,c,t)
    return p.reshape(G, 4 * bt * (OH // 2) * (OW // 2), C * KH * KW)
    # TODO(synk): could use lax.conv_general_dilated_patches; kept explicit so
    # the torch-matching (c, i, j) feature ordering is obvious.


def _resident_spec(x):
    """Full-array block with a constant index map: stays VMEM-resident across
    the batch grid (no per-step re-DMA)."""
    if x.ndim == 2:
        return pl.BlockSpec(x.shape, lambda g: (0, 0))
    assert x.ndim == 3
    return pl.BlockSpec(x.shape, lambda g: (0, 0, 0))


def qnetwork_forward(params, state, *, batch_tile=8):
    """state: NCHW (B, C, 84, 44) f32, matching the reference module."""
    B, C, H, W = state.shape
    assert (H, W) == (_H, _W), "spatial size must flatten to 896 features (fc1)"
    assert C * 64 == params["w1"].shape[0]
    A = params["b_out"].shape[1]

    Bt = min(batch_tile, B)
    G = -(-B // Bt)
    Bp = G * Bt
    x = state.astype(jnp.bfloat16)          # bf16 prep: half the HBM traffic
    if Bp != B:
        x = jnp.pad(x, ((0, Bp - B), (0, 0), (0, 0), (0, 0)))
    x1 = _conv1_im2col_parity(x, Bt)        # (G, 200*Bt, C*64) bf16

    R1t = 4 * _NPIX * Bt
    F = C * 64
    # Pad margins are tied to the maximum shifted-matmul tap offsets:
    #   conv2 reads <= (5*1+1)*Bt rows past a slab, conv3 <= (5*2+2)*Bt past Q2.
    h1_rows = _round_up(R1t + 6 * Bt, 8)
    h2_rows = _round_up(_NPIX * Bt + 12 * Bt, 8)
    h3_rows = _round_up(_NPIX * Bt, 8)
    assert h1_rows >= R1t + 6 * Bt and h2_rows >= _NPIX * Bt + 12 * Bt

    wkeys = ("w1", "b1", "w2", "b2", "w3", "b3", "w_fc1", "b_fc1",
             "w_fc2", "b_fc2", "w_fc3", "b_fc3", "w_out", "b_out")
    grid_spec = pltpu.PrefetchScalarGridSpec(
        num_scalar_prefetch=0,
        grid=(G,),
        in_specs=[pl.BlockSpec((None, R1t, F), lambda g: (g, 0, 0))]
                 + [_resident_spec(params[k]) for k in wkeys],
        out_specs=pl.BlockSpec((None, Bt, A), lambda g: (g, 0, 0)),
        scratch_shapes=[pltpu.VMEM((h1_rows, 256), jnp.bfloat16),   # conv1 out
                        pltpu.VMEM((h2_rows, 256), jnp.float32),    # wide taps
                        pltpu.VMEM((h2_rows, 64), jnp.bfloat16),    # conv2 out
                        pltpu.VMEM((h3_rows, 64), jnp.bfloat16)])   # conv3 out

    q = pl.pallas_call(
        _qnet_fused_kernel,
        out_shape=jax.ShapeDtypeStruct((G, Bt, A), jnp.float32),
        grid_spec=grid_spec,
        compiler_params=pltpu.CompilerParams(
            dimension_semantics=("parallel",)),
    )(x1, *(params[k] for k in wkeys))
    # TODO(synk): on v7x at large batch, shrink batch_tile (working set is
    # ~0.5 MB per batch element incl. input double-buffering) and set
    # pltpu.CompilerParams(vmem_limit_bytes=...) explicitly for its 64 MiB VMEM.

    q = q.reshape(Bp, A)
    return q if Bp == B else q[:B]


# ---------------------------------------------------------------------------
# Parameter init: torch-layout tensors, converted ONCE to kernel layout.
# ---------------------------------------------------------------------------
def init_params(key, input_channels, action_size):
    def uinit(k, shape, fan_in):
        bound = 1.0 / math.sqrt(fan_in)
        return jax.random.uniform(k, shape, jnp.float32, -bound, bound)

    ks = jax.random.split(key, 14)
    C = input_channels
    conv1_w = uinit(ks[0], (256, C, 8, 8), C * 64)       # OIHW, like torch
    conv1_b = uinit(ks[1], (256,), C * 64)
    conv2_w = uinit(ks[2], (64, 256, 4, 4), 256 * 16)
    conv2_b = uinit(ks[3], (64,), 256 * 16)
    conv3_w = uinit(ks[4], (64, 64, 3, 3), 64 * 9)
    conv3_b = uinit(ks[5], (64,), 64 * 9)
    fc1_w = uinit(ks[6], (128, 896), 896)                # (out, in), like torch
    fc1_b = uinit(ks[7], (128,), 896)
    fc2_w = uinit(ks[8], (64, 128), 128)
    fc2_b = uinit(ks[9], (64,), 128)
    fc3_w = uinit(ks[10], (32, 64), 64)
    fc3_b = uinit(ks[11], (32,), 64)
    fcout_w = uinit(ks[12], (action_size, 32), 32)
    fcout_b = uinit(ks[13], (action_size,), 32)
    # NOTE: fc*_val / fcout_val exist in the reference __init__ but are never
    # used by forward(), so they are intentionally not instantiated.

    bf16 = jnp.bfloat16

    # conv2: group taps by input parity (i%2, j%2); stack each group's 4 taps
    # along N -> (4, 256, 256).  Lane slice t corresponds to (di,dj)=(t//2,t%2),
    # i.e. within-slab row offset (5*di + dj)*Bt in the kernel.
    w2t = conv2_w.transpose(2, 3, 1, 0)                         # (4,4,cin,cout)
    w2 = jnp.stack(
        [jnp.concatenate([w2t[g // 2 + 2 * di, g % 2 + 2 * dj]
                          for di in range(2) for dj in range(2)], axis=-1)
         for g in range(4)], axis=0).astype(bf16)               # (4,256,256)

    # conv3: 3 kernel-row groups of 3 taps stacked along N, zero-padded to 256
    # lanes -> (3, 64, 256).  Lane slice t of group g is tap (i,j)=(g,t).
    w3t = conv3_w.transpose(2, 3, 1, 0)                         # (3,3,cin,cout)
    w3 = jnp.stack(
        [jnp.concatenate([w3t[g, 0], w3t[g, 1], w3t[g, 2],
                          jnp.zeros((64, 64), jnp.float32)], axis=-1)
         for g in range(3)], axis=0).astype(bf16)               # (3,64,256)

    return {
        "w1": conv1_w.reshape(256, C * 64).T.astype(bf16),  # feat = c*64+i*8+j
        "b1": conv1_b.reshape(1, 256),
        "w2": w2,
        "b2": conv2_b.reshape(1, 64),
        "w3": w3,
        "b3": conv3_b.reshape(1, 64),
        # fc1 re-blocked per conv3 spatial position: w_fc1[k,c,:]=fc1_w[:,c*14+k]
        "w_fc1": fc1_w.T.reshape(64, 14, 128).transpose(1, 0, 2).astype(bf16),
        "b_fc1": fc1_b.reshape(1, 128),
        "w_fc2": fc2_w.T.astype(bf16),      # (128, 64)
        "b_fc2": fc2_b.reshape(1, 64),
        "w_fc3": fc3_w.T.astype(bf16),      # (64, 32)
        "b_fc3": fc3_b.reshape(1, 32),
        "w_out": fcout_w.T.astype(bf16),    # (32, A)
        "b_out": fcout_b.reshape(1, action_size),
    }


if __name__ == "__main__":
    # 84x44 input -> 20x10 -> 9x4 -> 7x2 ; 64*7*2 = 896 = fc1 input features.
    B, C, H, W = 2, 3, 84, 44
    action_size = 4

    key = jax.random.PRNGKey(0)
    k_params, k_x = jax.random.split(key)
    params = init_params(k_params, input_channels=C, action_size=action_size)
    x = jax.random.normal(k_x, (B, C, H, W), dtype=jnp.float32)

    q = jax.jit(qnetwork_forward)(params, x)
    q = jax.block_until_ready(q)

    assert q.shape == (B, action_size), q.shape
    assert bool(jnp.all(jnp.isfinite(q)))
    print("KERNEL_OK")
</pallas_src>

<mosaic_0001>
module attributes {stable_mosaic.version = 11 : i64} {
  func.func @_qnet_fused_kernel(%arg0: i32, %arg1: memref<1x400x192xbf16, #tpu.memory_space<vmem>>, %arg2: memref<192x256xbf16, #tpu.memory_space<vmem>>, %arg3: memref<1x256xf32, #tpu.memory_space<vmem>>, %arg4: memref<4x256x256xbf16, #tpu.memory_space<vmem>>, %arg5: memref<1x64xf32, #tpu.memory_space<vmem>>, %arg6: memref<3x64x256xbf16, #tpu.memory_space<vmem>>, %arg7: memref<1x64xf32, #tpu.memory_space<vmem>>, %arg8: memref<14x64x128xbf16, #tpu.memory_space<vmem>>, %arg9: memref<1x128xf32, #tpu.memory_space<vmem>>, %arg10: memref<128x64xbf16, #tpu.memory_space<vmem>>, %arg11: memref<1x64xf32, #tpu.memory_space<vmem>>, %arg12: memref<64x32xbf16, #tpu.memory_space<vmem>>, %arg13: memref<1x32xf32, #tpu.memory_space<vmem>>, %arg14: memref<32x4xbf16, #tpu.memory_space<vmem>>, %arg15: memref<1x4xf32, #tpu.memory_space<vmem>>, %arg16: memref<1x2x4xf32, #tpu.memory_space<vmem>>, %arg17: memref<416x256xbf16, #tpu.memory_space<vmem>>, %arg18: memref<128x256xf32, #tpu.memory_space<vmem>>, %arg19: memref<128x64xbf16, #tpu.memory_space<vmem>>, %arg20: memref<104x64xbf16, #tpu.memory_space<vmem>>) attributes {dimension_semantics = [#tpu.dimension_semantics<parallel>], iteration_bounds = array<i64: 1>, scalar_prefetch = 0 : i64, scratch_operands = 4 : i64, tpu.core_type = #tpu.core_type<tc>, window_params = [{transform_indices = @transform_0, window_bounds = array<i64: 1, 400, 192>}, {pipeline_mode = #tpu.pipeline_mode<synchronous>, transform_indices = @transform_1, window_bounds = array<i64: 192, 256>}, {pipeline_mode = #tpu.pipeline_mode<synchronous>, transform_indices = @transform_2, window_bounds = array<i64: 1, 256>}, {pipeline_mode = #tpu.pipeline_mode<synchronous>, transform_indices = @transform_3, window_bounds = array<i64: 4, 256, 256>}, {pipeline_mode = #tpu.pipeline_mode<synchronous>, transform_indices = @transform_4, window_bounds = array<i64: 1, 64>}, {pipeline_mode = #tpu.pipeline_mode<synchronous>, transform_indices = @transform_5, window_bounds = array<i64: 3, 64, 256>}, {pipeline_mode = #tpu.pipeline_mode<synchronous>, transform_indices = @transform_6, window_bounds = array<i64: 1, 64>}, {pipeline_mode = #tpu.pipeline_mode<synchronous>, transform_indices = @transform_7, window_bounds = array<i64: 14, 64, 128>}, {pipeline_mode = #tpu.pipeline_mode<synchronous>, transform_indices = @transform_8, window_bounds = array<i64: 1, 128>}, {pipeline_mode = #tpu.pipeline_mode<synchronous>, transform_indices = @transform_9, window_bounds = array<i64: 128, 64>}, {pipeline_mode = #tpu.pipeline_mode<synchronous>, transform_indices = @transform_10, window_bounds = array<i64: 1, 64>}, {pipeline_mode = #tpu.pipeline_mode<synchronous>, transform_indices = @transform_11, window_bounds = array<i64: 64, 32>}, {pipeline_mode = #tpu.pipeline_mode<synchronous>, transform_indices = @transform_12, window_bounds = array<i64: 1, 32>}, {pipeline_mode = #tpu.pipeline_mode<synchronous>, transform_indices = @transform_13, window_bounds = array<i64: 32, 4>}, {pipeline_mode = #tpu.pipeline_mode<synchronous>, transform_indices = @transform_14, window_bounds = array<i64: 1, 4>}, {transform_indices = @transform_15, window_bounds = array<i64: 1, 2, 4>}]} {
    %cst = arith.constant 0.000000e+00 : bf16
    %0 = vector.broadcast %cst : bf16 to vector<16x256xbf16>
    %c400 = arith.constant 400 : index
    %c0 = arith.constant 0 : index
    %1 = vector.load %arg17[%c400, %c0] : memref<416x256xbf16, #tpu.memory_space<vmem>>, vector<16x256xbf16>
    tpu.vector_store %arg17[%c400, %c0], %0 {strides = array<i32>} : memref<416x256xbf16, #tpu.memory_space<vmem>>, vector<16x256xbf16>,
    %cst_0 = arith.constant 0.000000e+00 : bf16
    %2 = vector.broadcast %cst_0 : bf16 to vector<28x64xbf16>
    %c100 = arith.constant 100 : index
    %c0_1 = arith.constant 0 : index
    %3 = vector.load %arg19[%c100, %c0_1] : memref<128x64xbf16, #tpu.memory_space<vmem>>, vector<28x64xbf16>
    tpu.vector_store %arg19[%c100, %c0_1], %2 {strides = array<i32>} : memref<128x64xbf16, #tpu.memory_space<vmem>>, vector<28x64xbf16>,
    %c0_2 = arith.constant 0 : index
    %c0_3 = arith.constant 0 : index
    %4 = vector.load %arg2[%c0_2, %c0_3] : memref<192x256xbf16, #tpu.memory_space<vmem>>, vector<192x256xbf16>
    %c0_4 = arith.constant 0 : index
    %c0_5 = arith.constant 0 : index
    %5 = vector.load %arg3[%c0_4, %c0_5] : memref<1x256xf32, #tpu.memory_space<vmem>>, vector<1x256xf32>
    %c0_6 = arith.constant 0 : index
    %c0_7 = arith.constant 0 : index
    %c0_8 = arith.constant 0 : index
    %6 = vector.load %arg1[%c0_6, %c0_7, %c0_8] : memref<1x400x192xbf16, #tpu.memory_space<vmem>>, vector<1x200x192xbf16>
    %7 = vector.shape_cast %6 : vector<1x200x192xbf16> to vector<200x192xbf16>
    %cst_9 = arith.constant dense<0.000000e+00> : vector<200x256xf32>
    %8 = tpu.matmul %7, %4, %cst_9 {dimension_numbers = #tpu.dot_dimension_numbers<[1], [0], [0], [1], [0, 0, 1, 1], [], []>} : vector<200x192xbf16>, vector<192x256xbf16>, vector<200x256xf32> -> vector<200x256xf32>
    %9 = vector.broadcast %5 : vector<1x256xf32> to vector<200x256xf32>
    %10 = arith.addf %8, %9 : vector<200x256xf32>
    %cst_10 = arith.constant 0.000000e+00 : f32
    %11 = vector.broadcast %cst_10 : f32 to vector<200x256xf32>
    %12 = arith.maximumf %10, %11 : vector<200x256xf32>
    %13 = arith.truncf %12 : vector<200x256xf32> to vector<200x256xbf16>
    %c0_11 = arith.constant 0 : index
    %c0_12 = arith.constant 0 : index
    %14 = vector.load %arg17[%c0_11, %c0_12] : memref<416x256xbf16, #tpu.memory_space<vmem>>, vector<200x256xbf16>
    tpu.vector_store %arg17[%c0_11, %c0_12], %13 {strides = array<i32>} : memref<416x256xbf16, #tpu.memory_space<vmem>>, vector<200x256xbf16>,
    %c0_13 = arith.constant 0 : index
    %c200 = arith.constant 200 : index
    %c0_14 = arith.constant 0 : index
    %15 = vector.load %arg1[%c0_13, %c200, %c0_14] : memref<1x400x192xbf16, #tpu.memory_space<vmem>>, vector<1x200x192xbf16>
    %16 = vector.shape_cast %15 : vector<1x200x192xbf16> to vector<200x192xbf16>
    %cst_15 = arith.constant dense<0.000000e+00> : vector<200x256xf32>
    %17 = tpu.matmul %16, %4, %cst_15 {dimension_numbers = #tpu.dot_dimension_numbers<[1], [0], [0], [1], [0, 0, 1, 1], [], []>} : vector<200x192xbf16>, vector<192x256xbf16>, vector<200x256xf32> -> vector<200x256xf32>
    %18 = vector.broadcast %5 : vector<1x256xf32> to vector<200x256xf32>
    %19 = arith.addf %17, %18 : vector<200x256xf32>
    %cst_16 = arith.constant 0.000000e+00 : f32
    %20 = vector.broadcast %cst_16 : f32 to vector<200x256xf32>
    %21 = arith.maximumf %19, %20 : vector<200x256xf32>
    %22 = arith.truncf %21 : vector<200x256xf32> to vector<200x256xbf16>
    %c200_17 = arith.constant 200 : index
    %c0_18 = arith.constant 0 : index
    %23 = vector.load %arg17[%c200_17, %c0_18] : memref<416x256xbf16, #tpu.memory_space<vmem>>, vector<200x256xbf16>
    tpu.vector_store %arg17[%c200_17, %c0_18], %22 {strides = array<i32>} : memref<416x256xbf16, #tpu.memory_space<vmem>>, vector<200x256xbf16>,
    %c0_19 = arith.constant 0 : index
    %c0_20 = arith.constant 0 : index
    %24 = vector.load %arg5[%c0_19, %c0_20] : memref<1x64xf32, #tpu.memory_space<vmem>>, vector<1x64xf32>
    %cst_21 = arith.constant 0.000000e+00 : f32
    %25 = vector.broadcast %cst_21 : f32 to vector<100x64xf32>
    %c0_22 = arith.constant 0 : index
    %c0_23 = arith.constant 0 : index
    %26 = vector.load %arg17[%c0_22, %c0_23] : memref<416x256xbf16, #tpu.memory_space<vmem>>, vector<112x256xbf16>
    %c0_24 = arith.constant 0 : index
    %c0_25 = arith.constant 0 : index
    %c0_26 = arith.constant 0 : index
    %27 = vector.load %arg4[%c0_24, %c0_25, %c0_26] : memref<4x256x256xbf16, #tpu.memory_space<vmem>>, vector<1x256x256xbf16>
    %28 = vector.shape_cast %27 : vector<1x256x256xbf16> to vector<256x256xbf16>
    %cst_27 = arith.constant dense<0.000000e+00> : vector<112x256xf32>
    %29 = tpu.matmul %26, %28, %cst_27 {dimension_numbers = #tpu.dot_dimension_numbers<[1], [0], [0], [1], [0, 0, 1, 1], [], []>} : vector<112x256xbf16>, vector<256x256xbf16>, vector<112x256xf32> -> vector<112x256xf32>
    %c0_28 = arith.constant 0 : index
    %c0_29 = arith.constant 0 : index
    %30 = vector.load %arg18[%c0_28, %c0_29] : memref<128x256xf32, #tpu.memory_space<vmem>>, vector<112x256xf32>
    tpu.vector_store %arg18[%c0_28, %c0_29], %29 {strides = array<i32>} : memref<128x256xf32, #tpu.memory_space<vmem>>, vector<112x256xf32>,
    %c0_30 = arith.constant 0 : index
    %c0_31 = arith.constant 0 : index
    %31 = vector.load %arg18[%c0_30, %c0_31] : memref<128x256xf32, #tpu.memory_space<vmem>>, vector<100x64xf32>
    %32 = arith.addf %25, %31 : vector<100x64xf32>
    %c2 = arith.constant 2 : index
    %c64 = arith.constant 64 : index
    %33 = vector.load %arg18[%c2, %c64] : memref<128x256xf32, #tpu.memory_space<vmem>>, vector<100x64xf32>
    %34 = arith.addf %32, %33 : vector<100x64xf32>
    %c10 = arith.constant 10 : index
    %c128 = arith.constant 128 : index
    %35 = vector.load %arg18[%c10, %c128] : memref<128x256xf32, #tpu.memory_space<vmem>>, vector<100x64xf32>
    %36 = arith.addf %34, %35 : vector<100x64xf32>
    %c12 = arith.constant 12 : index
    %c192 = arith.constant 192 : index
    %37 = vector.load %arg18[%c12, %c192] : memref<128x256xf32, #tpu.memory_space<vmem>>, vector<100x64xf32>
    %38 = arith.addf %36, %37 : vector<100x64xf32>
    %c100_32 = arith.constant 100 : index
    %c0_33 = arith.constant 0 : index
    %39 = vector.load %arg17[%c100_32, %c0_33] : memref<416x256xbf16, #tpu.memory_space<vmem>>, vector<112x256xbf16>
    %c1 = arith.constant 1 : index
    %c0_34 = arith.constant 0 : index
    %c0_35 = arith.constant 0 : index
    %40 = vector.load %arg4[%c1, %c0_34, %c0_35] : memref<4x256x256xbf16, #tpu.memory_space<vmem>>, vector<1x256x256xbf16>
    %41 = vector.shape_cast %40 : vector<1x256x256xbf16> to vector<256x256xbf16>
    %cst_36 = arith.constant dense<0.000000e+00> : vector<112x256xf32>
    %42 = tpu.matmul %39, %41, %cst_36 {dimension_numbers = #tpu.dot_dimension_numbers<[1], [0], [0], [1], [0, 0, 1, 1], [], []>} : vector<112x256xbf16>, vector<256x256xbf16>, vector<112x256xf32> -> vector<112x256xf32>
    %c0_37 = arith.constant 0 : index
    %c0_38 = arith.constant 0 : index
    %43 = vector.load %arg18[%c0_37, %c0_38] : memref<128x256xf32, #tpu.memory_space<vmem>>, vector<112x256xf32>
    tpu.vector_store %arg18[%c0_37, %c0_38], %42 {strides = array<i32>} : memref<128x256xf32, #tpu.memory_space<vmem>>, vector<112x256xf32>,
    %c0_39 = arith.constant 0 : index
    %c0_40 = arith.constant 0 : index
    %44 = vector.load %arg18[%c0_39, %c0_40] : memref<128x256xf32, #tpu.memory_space<vmem>>, vector<100x64xf32>
    %45 = arith.addf %38, %44 : vector<100x64xf32>
    %c2_41 = arith.constant 2 : index
    %c64_42 = arith.constant 64 : index
    %46 = vector.load %arg18[%c2_41, %c64_42] : memref<128x256xf32, #tpu.memory_space<vmem>>, vector<100x64xf32>
    %47 = arith.addf %45, %46 : vector<100x64xf32>
    %c10_43 = arith.constant 10 : index
    %c128_44 = arith.constant 128 : index
    %48 = vector.load %arg18[%c10_43, %c128_44] : memref<128x256xf32, #tpu.memory_space<vmem>>, vector<100x64xf32>
    %49 = arith.addf %47, %48 : vector<100x64xf32>
    %c12_45 = arith.constant 12 : index
    %c192_46 = arith.constant 192 : index
    %50 = vector.load %arg18[%c12_45, %c192_46] : memref<128x256xf32, #tpu.memory_space<vmem>>, vector<100x64xf32>
    %51 = arith.addf %49, %50 : vector<100x64xf32>
    %c200_47 = arith.constant 200 : index
    %c0_48 = arith.constant 0 : index
    %52 = vector.load %arg17[%c200_47, %c0_48] : memref<416x256xbf16, #tpu.memory_space<vmem>>, vector<112x256xbf16>
    %c2_49 = arith.constant 2 : index
    %c0_50 = arith.constant 0 : index
    %c0_51 = arith.constant 0 : index
    %53 = vector.load %arg4[%c2_49, %c0_50, %c0_51] : memref<4x256x256xbf16, #tpu.memory_space<vmem>>, vector<1x256x256xbf16>
    %54 = vector.shape_cast %53 : vector<1x256x256xbf16> to vector<256x256xbf16>
    %cst_52 = arith.constant dense<0.000000e+00> : vector<112x256xf32>
    %55 = tpu.matmul %52, %54, %cst_52 {dimension_numbers = #tpu.dot_dimension_numbers<[1], [0], [0], [1], [0, 0, 1, 1], [], []>} : vector<112x256xbf16>, vector<256x256xbf16>, vector<112x256xf32> -> vector<112x256xf32>
    %c0_53 = arith.constant 0 : index
    %c0_54 = arith.constant 0 : index
    %56 = vector.load %arg18[%c0_53, %c0_54] : memref<128x256xf32, #tpu.memory_space<vmem>>, vector<112x256xf32>
    tpu.vector_store %arg18[%c0_53, %c0_54], %55 {strides = array<i32>} : memref<128x256xf32, #tpu.memory_space<vmem>>, vector<112x256xf32>,
    %c0_55 = arith.constant 0 : index
    %c0_56 = arith.constant 0 : index
    %57 = vector.load %arg18[%c0_55, %c0_56] : memref<128x256xf32, #tpu.memory_space<vmem>>, vector<100x64xf32>
    %58 = arith.addf %51, %57 : vector<100x64xf32>
    %c2_57 = arith.constant 2 : index
    %c64_58 = arith.constant 64 : index
    %59 = vector.load %arg18[%c2_57, %c64_58] : memref<128x256xf32, #tpu.memory_space<vmem>>, vector<100x64xf32>
    %60 = arith.addf %58, %59 : vector<100x64xf32>
    %c10_59 = arith.constant 10 : index
    %c128_60 = arith.constant 128 : index
    %61 = vector.load %arg18[%c10_59, %c128_60] : memref<128x256xf32, #tpu.memory_space<vmem>>, vector<100x64xf32>
    %62 = arith.addf %60, %61 : vector<100x64xf32>
    %c12_61 = arith.constant 12 : index
    %c192_62 = arith.constant 192 : index
    %63 = vector.load %arg18[%c12_61, %c192_62] : memref<128x256xf32, #tpu.memory_space<vmem>>, vector<100x64xf32>
    %64 = arith.addf %62, %63 : vector<100x64xf32>
    %c300 = arith.constant 300 : index
    %c0_63 = arith.constant 0 : index
    %65 = vector.load %arg17[%c300, %c0_63] : memref<416x256xbf16, #tpu.memory_space<vmem>>, vector<112x256xbf16>
    %c3 = arith.constant 3 : index
    %c0_64 = arith.constant 0 : index
    %c0_65 = arith.constant 0 : index
    %66 = vector.load %arg4[%c3, %c0_64, %c0_65] : memref<4x256x256xbf16, #tpu.memory_space<vmem>>, vector<1x256x256xbf16>
    %67 = vector.shape_cast %66 : vector<1x256x256xbf16> to vector<256x256xbf16>
    %cst_66 = arith.constant dense<0.000000e+00> : vector<112x256xf32>
    %68 = tpu.matmul %65, %67, %cst_66 {dimension_numbers = #tpu.dot_dimension_numbers<[1], [0], [0], [1], [0, 0, 1, 1], [], []>} : vector<112x256xbf16>, vector<256x256xbf16>, vector<112x256xf32> -> vector<112x256xf32>
    %c0_67 = arith.constant 0 : index
    %c0_68 = arith.constant 0 : index
    %69 = vector.load %arg18[%c0_67, %c0_68] : memref<128x256xf32, #tpu.memory_space<vmem>>, vector<112x256xf32>
    tpu.vector_store %arg18[%c0_67, %c0_68], %68 {strides = array<i32>} : memref<128x256xf32, #tpu.memory_space<vmem>>, vector<112x256xf32>,
    %c0_69 = arith.constant 0 : index
    %c0_70 = arith.constant 0 : index
    %70 = vector.load %arg18[%c0_69, %c0_70] : memref<128x256xf32, #tpu.memory_space<vmem>>, vector<100x64xf32>
    %71 = arith.addf %64, %70 : vector<100x64xf32>
    %c2_71 = arith.constant 2 : index
    %c64_72 = arith.constant 64 : index
    %72 = vector.load %arg18[%c2_71, %c64_72] : memref<128x256xf32, #tpu.memory_space<vmem>>, vector<100x64xf32>
    %73 = arith.addf %71, %72 : vector<100x64xf32>
    %c10_73 = arith.constant 10 : index
    %c128_74 = arith.constant 128 : index
    %74 = vector.load %arg18[%c10_73, %c128_74] : memref<128x256xf32, #tpu.memory_space<vmem>>, vector<100x64xf32>
    %75 = arith.addf %73, %74 : vector<100x64xf32>
    %c12_75 = arith.constant 12 : index
    %c192_76 = arith.constant 192 : index
    %76 = vector.load %arg18[%c12_75, %c192_76] : memref<128x256xf32, #tpu.memory_space<vmem>>, vector<100x64xf32>
    %77 = arith.addf %75, %76 : vector<100x64xf32>
    %78 = vector.broadcast %24 : vector<1x64xf32> to vector<100x64xf32>
    %79 = arith.addf %77, %78 : vector<100x64xf32>
    %cst_77 = arith.constant 0.000000e+00 : f32
    %80 = vector.broadcast %cst_77 : f32 to vector<100x64xf32>
    %81 = arith.maximumf %79, %80 : vector<100x64xf32>
    %82 = arith.truncf %81 : vector<100x64xf32> to vector<100x64xbf16>
    %c0_78 = arith.constant 0 : index
    %c0_79 = arith.constant 0 : index
    %83 = vector.load %arg19[%c0_78, %c0_79] : memref<128x64xbf16, #tpu.memory_space<vmem>>, vector<100x64xbf16>
    tpu.vector_store %arg19[%c0_78, %c0_79], %82 {strides = array<i32>} : memref<128x64xbf16, #tpu.memory_space<vmem>>, vector<100x64xbf16>,
    %c0_80 = arith.constant 0 : index
    %c0_81 = arith.constant 0 : index
    %84 = vector.load %arg7[%c0_80, %c0_81] : memref<1x64xf32, #tpu.memory_space<vmem>>, vector<1x64xf32>
    %c0_82 = arith.constant 0 : index
    %c0_83 = arith.constant 0 : index
    %85 = vector.load %arg19[%c0_82, %c0_83] : memref<128x64xbf16, #tpu.memory_space<vmem>>, vector<128x64xbf16>
    %cst_84 = arith.constant 0.000000e+00 : f32
    %86 = vector.broadcast %cst_84 : f32 to vector<100x64xf32>
    %c0_85 = arith.constant 0 : index
    %c0_86 = arith.constant 0 : index
    %c0_87 = arith.constant 0 : index
    %87 = vector.load %arg6[%c0_85, %c0_86, %c0_87] : memref<3x64x256xbf16, #tpu.memory_space<vmem>>, vector<1x64x256xbf16>
    %88 = vector.shape_cast %87 : vector<1x64x256xbf16> to vector<64x256xbf16>
    %cst_88 = arith.constant dense<0.000000e+00> : vector<128x256xf32>
    %89 = tpu.matmul %85, %88, %cst_88 {dimension_numbers = #tpu.dot_dimension_numbers<[1], [0], [0], [1], [0, 0, 1, 1], [], []>} : vector<128x64xbf16>, vector<64x256xbf16>, vector<128x256xf32> -> vector<128x256xf32>
    %c0_89 = arith.constant 0 : index
    %c0_90 = arith.constant 0 : index
    %90 = vector.load %arg18[%c0_89, %c0_90] : memref<128x256xf32, #tpu.memory_space<vmem>>, vector<128x256xf32>
    tpu.vector_store %arg18[%c0_89, %c0_90], %89 {strides = array<i32>} : memref<128x256xf32, #tpu.memory_space<vmem>>, vector<128x256xf32>,
    %c0_91 = arith.constant 0 : index
    %c0_92 = arith.constant 0 : index
    %91 = vector.load %arg18[%c0_91, %c0_92] : memref<128x256xf32, #tpu.memory_space<vmem>>, vector<100x64xf32>
    %92 = arith.addf %86, %91 : vector<100x64xf32>
    %c2_93 = arith.constant 2 : index
    %c64_94 = arith.constant 64 : index
    %93 = vector.load %arg18[%c2_93, %c64_94] : memref<128x256xf32, #tpu.memory_space<vmem>>, vector<100x64xf32>
    %94 = arith.addf %92, %93 : vector<100x64xf32>
    %c4 = arith.constant 4 : index
    %c128_95 = arith.constant 128 : index
    %95 = vector.load %arg18[%c4, %c128_95] : memref<128x256xf32, #tpu.memory_space<vmem>>, vector<100x64xf32>
    %96 = arith.addf %94, %95 : vector<100x64xf32>
    %c1_96 = arith.constant 1 : index
    %c0_97 = arith.constant 0 : index
    %c0_98 = arith.constant 0 : index
    %97 = vector.load %arg6[%c1_96, %c0_97, %c0_98] : memref<3x64x256xbf16, #tpu.memory_space<vmem>>, vector<1x64x256xbf16>
    %98 = vector.shape_cast %97 : vector<1x64x256xbf16> to vector<64x256xbf16>
    %cst_99 = arith.constant dense<0.000000e+00> : vector<128x256xf32>
    %99 = tpu.matmul %85, %98, %cst_99 {dimension_numbers = #tpu.dot_dimension_numbers<[1], [0], [0], [1], [0, 0, 1, 1], [], []>} : vector<128x64xbf16>, vector<64x256xbf16>, vector<128x256xf32> -> vector<128x256xf32>
    %c0_100 = arith.constant 0 : index
    %c0_101 = arith.constant 0 : index
    %100 = vector.load %arg18[%c0_100, %c0_101] : memref<128x256xf32, #tpu.memory_space<vmem>>, vector<128x256xf32>
    tpu.vector_store %arg18[%c0_100, %c0_101], %99 {strides = array<i32>} : memref<128x256xf32, #tpu.memory_space<vmem>>, vector<128x256xf32>,
    %c10_102 = arith.constant 10 : index
    %c0_103 = arith.constant 0 : index
    %101 = vector.load %arg18[%c10_102, %c0_103] : memref<128x256xf32, #tpu.memory_space<vmem>>, vector<100x64xf32>
    %102 = arith.addf %96, %101 : vector<100x64xf32>
    %c12_104 = arith.constant 12 : index
    %c64_105 = arith.constant 64 : index
    %103 = vector.load %arg18[%c12_104, %c64_105] : memref<128x256xf32, #tpu.memory_space<vmem>>, vector<100x64xf32>
    %104 = arith.addf %102, %103 : vector<100x64xf32>
    %c14 = arith.constant 14 : index
    %c128_106 = arith.constant 128 : index
    %105 = vector.load %arg18[%c14, %c128_106] : memref<128x256xf32, #tpu.memory_space<vmem>>, vector<100x64xf32>
    %106 = arith.addf %104, %105 : vector<100x64xf32>
    %c2_107 = arith.constant 2 : index
    %c0_108 = arith.constant 0 : index
    %c0_109 = arith.constant 0 : index
    %107 = vector.load %arg6[%c2_107, %c0_108, %c0_109] : memref<3x64x256xbf16, #tpu.memory_space<vmem>>, vector<1x64x256xbf16>
    %108 = vector.shape_cast %107 : vector<1x64x256xbf16> to vector<64x256xbf16>
    %cst_110 = arith.constant dense<0.000000e+00> : vector<128x256xf32>
    %109 = tpu.matmul %85, %108, %cst_110 {dimension_numbers = #tpu.dot_dimension_numbers<[1], [0], [0], [1], [0, 0, 1, 1], [], []>} : vector<128x64xbf16>, vector<64x256xbf16>, vector<128x256xf32> -> vector<128x256xf32>
    %c0_111 = arith.constant 0 : index
    %c0_112 = arith.constant 0 : index
    %110 = vector.load %arg18[%c0_111, %c0_112] : memref<128x256xf32, #tpu.memory_space<vmem>>, vector<128x256xf32>
    tpu.vector_store %arg18[%c0_111, %c0_112], %109 {strides = array<i32>} : memref<128x256xf32, #tpu.memory_space<vmem>>, vector<128x256xf32>,
    %c20 = arith.constant 20 : index
    %c0_113 = arith.constant 0 : index
    %111 = vector.load %arg18[%c20, %c0_113] : memref<128x256xf32, #tpu.memory_space<vmem>>, vector<100x64xf32>
    %112 = arith.addf %106, %111 : vector<100x64xf32>
    %c22 = arith.constant 22 : index
    %c64_114 = arith.constant 64 : index
    %113 = vector.load %arg18[%c22, %c64_114] : memref<128x256xf32, #tpu.memory_space<vmem>>, vector<100x64xf32>
    %114 = arith.addf %112, %113 : vector<100x64xf32>
    %c24 = arith.constant 24 : index
    %c128_115 = arith.constant 128 : index
    %115 = vector.load %arg18[%c24, %c128_115] : memref<128x256xf32, #tpu.memory_space<vmem>>, vector<100x64xf32>
    %116 = arith.addf %114, %115 : vector<100x64xf32>
    %117 = vector.broadcast %84 : vector<1x64xf32> to vector<100x64xf32>
    %118 = arith.addf %116, %117 : vector<100x64xf32>
    %cst_116 = arith.constant 0.000000e+00 : f32
    %119 = vector.broadcast %cst_116 : f32 to vector<100x64xf32>
    %120 = arith.maximumf %118, %119 : vector<100x64xf32>
    %121 = arith.truncf %120 : vector<100x64xf32> to vector<100x64xbf16>
    %c0_117 = arith.constant 0 : index
    %c0_118 = arith.constant 0 : index
    %122 = vector.load %arg20[%c0_117, %c0_118] : memref<104x64xbf16, #tpu.memory_space<vmem>>, vector<100x64xbf16>
    tpu.vector_store %arg20[%c0_117, %c0_118], %121 {strides = array<i32>} : memref<104x64xbf16, #tpu.memory_space<vmem>>, vector<100x64xbf16>,
    %cst_119 = arith.constant 0.000000e+00 : f32
    %123 = vector.broadcast %cst_119 : f32 to vector<2x128xf32>
    %c0_120 = arith.constant 0 : index
    %c0_121 = arith.constant 0 : index
    %124 = vector.load %arg20[%c0_120, %c0_121] : memref<104x64xbf16, #tpu.memory_space<vmem>>, vector<2x64xbf16>
    %c0_122 = arith.constant 0 : index
    %c0_123 = arith.constant 0 : index
    %c0_124 = arith.constant 0 : index
    %125 = vector.load %arg8[%c0_122, %c0_123, %c0_124] : memref<14x64x128xbf16, #tpu.memory_space<vmem>>, vector<1x64x128xbf16>
    %126 = vector.shape_cast %125 : vector<1x64x128xbf16> to vector<64x128xbf16>
    %cst_125 = arith.constant dense<0.000000e+00> : vector<2x128xf32>
    %127 = tpu.matmul %124, %126, %cst_125 {dimension_numbers = #tpu.dot_dimension_numbers<[1], [0], [0], [1], [0, 0, 1, 1], [], []>} : vector<2x64xbf16>, vector<64x128xbf16>, vector<2x128xf32> -> vector<2x128xf32>
    %128 = arith.addf %123, %127 : vector<2x128xf32>
    %c2_126 = arith.constant 2 : index
    %c0_127 = arith.constant 0 : index
    %129 = vector.load %arg20[%c2_126, %c0_127] : memref<104x64xbf16, #tpu.memory_space<vmem>>, vector<2x64xbf16>
    %c1_128 = arith.constant 1 : index
    %c0_129 = arith.constant 0 : index
    %c0_130 = arith.constant 0 : index
    %130 = vector.load %arg8[%c1_128, %c0_129, %c0_130] : memref<14x64x128xbf16, #tpu.memory_space<vmem>>, vector<1x64x128xbf16>
    %131 = vector.shape_cast %130 : vector<1x64x128xbf16> to vector<64x128xbf16>
    %cst_131 = arith.constant dense<0.000000e+00> : vector<2x128xf32>
    %132 = tpu.matmul %129, %131, %cst_131 {dimension_numbers = #tpu.dot_dimension_numbers<[1], [0], [0], [1], [0, 0, 1, 1], [], []>} : vector<2x64xbf16>, vector<64x128xbf16>, vector<2x128xf32> -> vector<2x128xf32>
    %133 = arith.addf %128, %132 : vector<2x128xf32>
    %c10_132 = arith.constant 10 : index
    %c0_133 = arith.constant 0 : index
    %134 = vector.load %arg20[%c10_132, %c0_133] : memref<104x64xbf16, #tpu.memory_space<vmem>>, vector<2x64xbf16>
    %c2_134 = arith.constant 2 : index
    %c0_135 = arith.constant 0 : index
    %c0_136 = arith.constant 0 : index
    %135 = vector.load %arg8[%c2_134, %c0_135, %c0_136] : memref<14x64x128xbf16, #tpu.memory_space<vmem>>, vector<1x64x128xbf16>
    %136 = vector.shape_cast %135 : vector<1x64x128xbf16> to vector<64x128xbf16>
    %cst_137 = arith.constant dense<0.000000e+00> : vector<2x128xf32>
    %137 = tpu.matmul %134, %136, %cst_137 {dimension_numbers = #tpu.dot_dimension_numbers<[1], [0], [0], [1], [0, 0, 1, 1], [], []>} : vector<2x64xbf16>, vector<64x128xbf16>, vector<2x128xf32> -> vector<2x128xf32>
    %138 = arith.addf %133, %137 : vector<2x128xf32>
    %c12_138 = arith.constant 12 : index
    %c0_139 = arith.constant 0 : index
    %139 = vector.load %arg20[%c12_138, %c0_139] : memref<104x64xbf16, #tpu.memory_space<vmem>>, vector<2x64xbf16>
    %c3_140 = arith.constant 3 : index
    %c0_141 = arith.constant 0 : index
    %c0_142 = arith.constant 0 : index
    %140 = vector.load %arg8[%c3_140, %c0_141, %c0_142] : memref<14x64x128xbf16, #tpu.memory_space<vmem>>, vector<1x64x128xbf16>
    %141 = vector.shape_cast %140 : vector<1x64x128xbf16> to vector<64x128xbf16>
    %cst_143 = arith.constant dense<0.000000e+00> : vector<2x128xf32>
    %142 = tpu.matmul %139, %141, %cst_143 {dimension_numbers = #tpu.dot_dimension_numbers<[1], [0], [0], [1], [0, 0, 1, 1], [], []>} : vector<2x64xbf16>, vector<64x128xbf16>, vector<2x128xf32> -> vector<2x128xf32>
    %143 = arith.addf %138, %142 : vector<2x128xf32>
    %c20_144 = arith.constant 20 : index
    %c0_145 = arith.constant 0 : index
    %144 = vector.load %arg20[%c20_144, %c0_145] : memref<104x64xbf16, #tpu.memory_space<vmem>>, vector<2x64xbf16>
    %c4_146 = arith.constant 4 : index
    %c0_147 = arith.constant 0 : index
    %c0_148 = arith.constant 0 : index
    %145 = vector.load %arg8[%c4_146, %c0_147, %c0_148] : memref<14x64x128xbf16, #tpu.memory_space<vmem>>, vector<1x64x128xbf16>
    %146 = vector.shape_cast %145 : vector<1x64x128xbf16> to vector<64x128xbf16>
    %cst_149 = arith.constant dense<0.000000e+00> : vector<2x128xf32>
    %147 = tpu.matmul %144, %146, %cst_149 {dimension_numbers = #tpu.dot_dimension_numbers<[1], [0], [0], [1], [0, 0, 1, 1], [], []>} : vector<2x64xbf16>, vector<64x128xbf16>, vector<2x128xf32> -> vector<2x128xf32>
    %148 = arith.addf %143, %147 : vector<2x128xf32>
    %c22_150 = arith.constant 22 : index
    %c0_151 = arith.constant 0 : index
    %149 = vector.load %arg20[%c22_150, %c0_151] : memref<104x64xbf16, #tpu.memory_space<vmem>>, vector<2x64xbf16>
    %c5 = arith.constant 5 : index
    %c0_152 = arith.constant 0 : index
    %c0_153 = arith.constant 0 : index
    %150 = vector.load %arg8[%c5, %c0_152, %c0_153] : memref<14x64x128xbf16, #tpu.memory_space<vmem>>, vector<1x64x128xbf16>
    %151 = vector.shape_cast %150 : vector<1x64x128xbf16> to vector<64x128xbf16>
    %cst_154 = arith.constant dense<0.000000e+00> : vector<2x128xf32>
    %152 = tpu.matmul %149, %151, %cst_154 {dimension_numbers = #tpu.dot_dimension_numbers<[1], [0], [0], [1], [0, 0, 1, 1], [], []>} : vector<2x64xbf16>, vector<64x128xbf16>, vector<2x128xf32> -> vector<2x128xf32>
    %153 = arith.addf %148, %152 : vector<2x128xf32>
    %c30 = arith.constant 30 : index
    %c0_155 = arith.constant 0 : index
    %154 = vector.load %arg20[%c30, %c0_155] : memref<104x64xbf16, #tpu.memory_space<vmem>>, vector<2x64xbf16>
    %c6 = arith.constant 6 : index
    %c0_156 = arith.constant 0 : index
    %c0_157 = arith.constant 0 : index
    %155 = vector.load %arg8[%c6, %c0_156, %c0_157] : memref<14x64x128xbf16, #tpu.memory_space<vmem>>, vector<1x64x128xbf16>
    %156 = vector.shape_cast %155 : vector<1x64x128xbf16> to vector<64x128xbf16>
    %cst_158 = arith.constant dense<0.000000e+00> : vector<2x128xf32>
    %157 = tpu.matmul %154, %156, %cst_158 {dimension_numbers = #tpu.dot_dimension_numbers<[1], [0], [0], [1], [0, 0, 1, 1], [], []>} : vector<2x64xbf16>, vector<64x128xbf16>, vector<2x128xf32> -> vector<2x128xf32>
    %158 = arith.addf %153, %157 : vector<2x128xf32>
    %c32 = arith.constant 32 : index
    %c0_159 = arith.constant 0 : index
    %159 = vector.load %arg20[%c32, %c0_159] : memref<104x64xbf16, #tpu.memory_space<vmem>>, vector<2x64xbf16>
    %c7 = arith.constant 7 : index
    %c0_160 = arith.constant 0 : index
    %c0_161 = arith.constant 0 : index
    %160 = vector.load %arg8[%c7, %c0_160, %c0_161] : memref<14x64x128xbf16, #tpu.memory_space<vmem>>, vector<1x64x128xbf16>
    %161 = vector.shape_cast %160 : vector<1x64x128xbf16> to vector<64x128xbf16>
    %cst_162 = arith.constant dense<0.000000e+00> : vector<2x128xf32>
    %162 = tpu.matmul %159, %161, %cst_162 {dimension_numbers = #tpu.dot_dimension_numbers<[1], [0], [0], [1], [0, 0, 1, 1], [], []>} : vector<2x64xbf16>, vector<64x128xbf16>, vector<2x128xf32> -> vector<2x128xf32>
    %163 = arith.addf %158, %162 : vector<2x128xf32>
    %c40 = arith.constant 40 : index
    %c0_163 = arith.constant 0 : index
    %164 = vector.load %arg20[%c40, %c0_163] : memref<104x64xbf16, #tpu.memory_space<vmem>>, vector<2x64xbf16>
    %c8 = arith.constant 8 : index
    %c0_164 = arith.constant 0 : index
    %c0_165 = arith.constant 0 : index
    %165 = vector.load %arg8[%c8, %c0_164, %c0_165] : memref<14x64x128xbf16, #tpu.memory_space<vmem>>, vector<1x64x128xbf16>
    %166 = vector.shape_cast %165 : vector<1x64x128xbf16> to vector<64x128xbf16>
    %cst_166 = arith.constant dense<0.000000e+00> : vector<2x128xf32>
    %167 = tpu.matmul %164, %166, %cst_166 {dimension_numbers = #tpu.dot_dimension_numbers<[1], [0], [0], [1], [0, 0, 1, 1], [], []>} : vector<2x64xbf16>, vector<64x128xbf16>, vector<2x128xf32> -> vector<2x128xf32>
    %168 = arith.addf %163, %167 : vector<2x128xf32>
    %c42 = arith.constant 42 : index
    %c0_167 = arith.constant 0 : index
    %169 = vector.load %arg20[%c42, %c0_167] : memref<104x64xbf16, #tpu.memory_space<vmem>>, vector<2x64xbf16>
    %c9 = arith.constant 9 : index
    %c0_168 = arith.constant 0 : index
    %c0_169 = arith.constant 0 : index
    %170 = vector.load %arg8[%c9, %c0_168, %c0_169] : memref<14x64x128xbf16, #tpu.memory_space<vmem>>, vector<1x64x128xbf16>
    %171 = vector.shape_cast %170 : vector<1x64x128xbf16> to vector<64x128xbf16>
    %cst_170 = arith.constant dense<0.000000e+00> : vector<2x128xf32>
    %172 = tpu.matmul %169, %171, %cst_170 {dimension_numbers = #tpu.dot_dimension_numbers<[1], [0], [0], [1], [0, 0, 1, 1], [], []>} : vector<2x64xbf16>, vector<64x128xbf16>, vector<2x128xf32> -> vector<2x128xf32>
    %173 = arith.addf %168, %172 : vector<2x128xf32>
    %c50 = arith.constant 50 : index
    %c0_171 = arith.constant 0 : index
    %174 = vector.load %arg20[%c50, %c0_171] : memref<104x64xbf16, #tpu.memory_space<vmem>>, vector<2x64xbf16>
    %c10_172 = arith.constant 10 : index
    %c0_173 = arith.constant 0 : index
    %c0_174 = arith.constant 0 : index
    %175 = vector.load %arg8[%c10_172, %c0_173, %c0_174] : memref<14x64x128xbf16, #tpu.memory_space<vmem>>, vector<1x64x128xbf16>
    %176 = vector.shape_cast %175 : vector<1x64x128xbf16> to vector<64x128xbf16>
    %cst_175 = arith.constant dense<0.000000e+00> : vector<2x128xf32>
    %177 = tpu.matmul %174, %176, %cst_175 {dimension_numbers = #tpu.dot_dimension_numbers<[1], [0], [0], [1], [0, 0, 1, 1], [], []>} : vector<2x64xbf16>, vector<64x128xbf16>, vector<2x128xf32> -> vector<2x128xf32>
    %178 = arith.addf %173, %177 : vector<2x128xf32>
    %c52 = arith.constant 52 : index
    %c0_176 = arith.constant 0 : index
    %179 = vector.load %arg20[%c52, %c0_176] : memref<104x64xbf16, #tpu.memory_space<vmem>>, vector<2x64xbf16>
    %c11 = arith.constant 11 : index
    %c0_177 = arith.constant 0 : index
    %c0_178 = arith.constant 0 : index
    %180 = vector.load %arg8[%c11, %c0_177, %c0_178] : memref<14x64x128xbf16, #tpu.memory_space<vmem>>, vector<1x64x128xbf16>
    %181 = vector.shape_cast %180 : vector<1x64x128xbf16> to vector<64x128xbf16>
    %cst_179 = arith.constant dense<0.000000e+00> : vector<2x128xf32>
    %182 = tpu.matmul %179, %181, %cst_179 {dimension_numbers = #tpu.dot_dimension_numbers<[1], [0], [0], [1], [0, 0, 1, 1], [], []>} : vector<2x64xbf16>, vector<64x128xbf16>, vector<2x128xf32> -> vector<2x128xf32>
    %183 = arith.addf %178, %182 : vector<2x128xf32>
    %c60 = arith.constant 60 : index
    %c0_180 = arith.constant 0 : index
    %184 = vector.load %arg20[%c60, %c0_180] : memref<104x64xbf16, #tpu.memory_space<vmem>>, vector<2x64xbf16>
    %c12_181 = arith.constant 12 : index
    %c0_182 = arith.constant 0 : index
    %c0_183 = arith.constant 0 : index
    %185 = vector.load %arg8[%c12_181, %c0_182, %c0_183] : memref<14x64x128xbf16, #tpu.memory_space<vmem>>, vector<1x64x128xbf16>
    %186 = vector.shape_cast %185 : vector<1x64x128xbf16> to vector<64x128xbf16>
    %cst_184 = arith.constant dense<0.000000e+00> : vector<2x128xf32>
    %187 = tpu.matmul %184, %186, %cst_184 {dimension_numbers = #tpu.dot_dimension_numbers<[1], [0], [0], [1], [0, 0, 1, 1], [], []>} : vector<2x64xbf16>, vector<64x128xbf16>, vector<2x128xf32> -> vector<2x128xf32>
    %188 = arith.addf %183, %187 : vector<2x128xf32>
    %c62 = arith.constant 62 : index
    %c0_185 = arith.constant 0 : index
    %189 = vector.load %arg20[%c62, %c0_185] : memref<104x64xbf16, #tpu.memory_space<vmem>>, vector<2x64xbf16>
    %c13 = arith.constant 13 : index
    %c0_186 = arith.constant 0 : index
    %c0_187 = arith.constant 0 : index
    %190 = vector.load %arg8[%c13, %c0_186, %c0_187] : memref<14x64x128xbf16, #tpu.memory_space<vmem>>, vector<1x64x128xbf16>
    %191 = vector.shape_cast %190 : vector<1x64x128xbf16> to vector<64x128xbf16>
    %cst_188 = arith.constant dense<0.000000e+00> : vector<2x128xf32>
    %192 = tpu.matmul %189, %191, %cst_188 {dimension_numbers = #tpu.dot_dimension_numbers<[1], [0], [0], [1], [0, 0, 1, 1], [], []>} : vector<2x64xbf16>, vector<64x128xbf16>, vector<2x128xf32> -> vector<2x128xf32>
    %193 = arith.addf %188, %192 : vector<2x128xf32>
    %c0_189 = arith.constant 0 : index
    %c0_190 = arith.constant 0 : index
    %194 = vector.load %arg9[%c0_189, %c0_190] : memref<1x128xf32, #tpu.memory_space<vmem>>, vector<1x128xf32>
    %195 = vector.broadcast %194 : vector<1x128xf32> to vector<2x128xf32>
    %196 = arith.addf %193, %195 : vector<2x128xf32>
    %cst_191 = arith.constant 0.000000e+00 : f32
    %197 = vector.broadcast %cst_191 : f32 to vector<2x128xf32>
    %198 = arith.maximumf %196, %197 : vector<2x128xf32>
    %199 = arith.truncf %198 : vector<2x128xf32> to vector<2x128xbf16>
    %c0_192 = arith.constant 0 : index
    %c0_193 = arith.constant 0 : index
    %200 = vector.load %arg10[%c0_192, %c0_193] : memref<128x64xbf16, #tpu.memory_space<vmem>>, vector<128x64xbf16>
    %cst_194 = arith.constant dense<0.000000e+00> : vector<2x64xf32>
    %201 = tpu.matmul %199, %200, %cst_194 {dimension_numbers = #tpu.dot_dimension_numbers<[1], [0], [0], [1], [0, 0, 1, 1], [], []>} : vector<2x128xbf16>, vector<128x64xbf16>, vector<2x64xf32> -> vector<2x64xf32>
    %c0_195 = arith.constant 0 : index
    %c0_196 = arith.constant 0 : index
    %202 = vector.load %arg11[%c0_195, %c0_196] : memref<1x64xf32, #tpu.memory_space<vmem>>, vector<1x64xf32>
    %203 = vector.broadcast %202 : vector<1x64xf32> to vector<2x64xf32>
    %204 = arith.addf %201, %203 : vector<2x64xf32>
    %cst_197 = arith.constant 0.000000e+00 : f32
    %205 = vector.broadcast %cst_197 : f32 to vector<2x64xf32>
    %206 = arith.maximumf %204, %205 : vector<2x64xf32>
    %207 = arith.truncf %206 : vector<2x64xf32> to vector<2x64xbf16>
    %c0_198 = arith.constant 0 : index
    %c0_199 = arith.constant 0 : index
    %208 = vector.load %arg12[%c0_198, %c0_199] : memref<64x32xbf16, #tpu.memory_space<vmem>>, vector<64x32xbf16>
    %cst_200 = arith.constant dense<0.000000e+00> : vector<2x32xf32>
    %209 = tpu.matmul %207, %208, %cst_200 {dimension_numbers = #tpu.dot_dimension_numbers<[1], [0], [0], [1], [0, 0, 1, 1], [], []>} : vector<2x64xbf16>, vector<64x32xbf16>, vector<2x32xf32> -> vector<2x32xf32>
    %c0_201 = arith.constant 0 : index
    %c0_202 = arith.constant 0 : index
    %210 = vector.load %arg13[%c0_201, %c0_202] : memref<1x32xf32, #tpu.memory_space<vmem>>, vector<1x32xf32>
    %211 = vector.broadcast %210 : vector<1x32xf32> to vector<2x32xf32>
    %212 = arith.addf %209, %211 : vector<2x32xf32>
    %cst_203 = arith.constant 0.000000e+00 : f32
    %213 = vector.broadcast %cst_203 : f32 to vector<2x32xf32>
    %214 = arith.maximumf %212, %213 : vector<2x32xf32>
    %215 = arith.truncf %214 : vector<2x32xf32> to vector<2x32xbf16>
    %c0_204 = arith.constant 0 : index
    %c0_205 = arith.constant 0 : index
    %216 = vector.load %arg14[%c0_204, %c0_205] : memref<32x4xbf16, #tpu.memory_space<vmem>>, vector<32x4xbf16>
    %cst_206 = arith.constant dense<0.000000e+00> : vector<2x4xf32>
    %217 = tpu.matmul %215, %216, %cst_206 {dimension_numbers = #tpu.dot_dimension_numbers<[1], [0], [0], [1], [0, 0, 1, 1], [], []>} : vector<2x32xbf16>, vector<32x4xbf16>, vector<2x4xf32> -> vector<2x4xf32>
    %c0_207 = arith.constant 0 : index
    %c0_208 = arith.constant 0 : index
    %218 = vector.load %arg15[%c0_207, %c0_208] : memref<1x4xf32, #tpu.memory_space<vmem>>, vector<1x4xf32>
    %219 = vector.broadcast %218 : vector<1x4xf32> to vector<2x4xf32>
    %220 = arith.addf %217, %219 : vector<2x4xf32>
    %cst_209 = arith.constant 2.000000e+00 : f32
    %221 = vector.broadcast %cst_209 : f32 to vector<2x4xf32>
    %222 = arith.mulf %221, %220 : vector<2x4xf32>
    %cst_210 = arith.constant dense<0.000000e+00> : vector<2xf32>
    %223 = vector.multi_reduction <add>, %220, %cst_210 [1] : vector<2x4xf32> to vector<2xf32>
    %224 = vector.shape_cast %223 : vector<2xf32> to vector<2x1xf32>
    %cst_211 = arith.constant 4.000000e+00 : f32
    %225 = vector.broadcast %cst_211 : f32 to vector<2x1xf32>
    %226 = arith.divf %224, %225 : vector<2x1xf32>
    %227 = vector.broadcast %226 : vector<2x1xf32> to vector<2x4xf32>
    %228 = arith.subf %222, %227 : vector<2x4xf32>
    %c0_212 = arith.constant 0 : index
    %c0_213 = arith.constant 0 : index
    %c0_214 = arith.constant 0 : index
    %229 = vector.load %arg16[%c0_212, %c0_213, %c0_214] : memref<1x2x4xf32, #tpu.memory_space<vmem>>, vector<1x2x4xf32>
    %230 = vector.shape_cast %229 : vector<1x2x4xf32> to vector<2x4xf32>
    %231 = vector.shape_cast %228 : vector<2x4xf32> to vector<1x2x4xf32>
    tpu.vector_store %arg16[%c0_212, %c0_213, %c0_214], %231 {strides = array<i32>} : memref<1x2x4xf32, #tpu.memory_space<vmem>>, vector<1x2x4xf32>,
    return
  }
  func.func @transform_0(%arg0: i32) -> (i32, i32, i32) {
    %c0_i32 = arith.constant 0 : i32
    %c0_i32_0 = arith.constant 0 : i32
    %c0_i32_1 = arith.constant 0 : i32
    return %arg0, %c0_i32, %c0_i32_0 : i32, i32, i32
  }
  func.func @transform_1(%arg0: i32) -> (i32, i32) {
    %c0_i32 = arith.constant 0 : i32
    %c0_i32_0 = arith.constant 0 : i32
    %c0_i32_1 = arith.constant 0 : i32
    return %c0_i32, %c0_i32_0 : i32, i32
  }
  func.func @transform_2(%arg0: i32) -> (i32, i32) {
    %c0_i32 = arith.constant 0 : i32
    %c0_i32_0 = arith.constant 0 : i32
    %c0_i32_1 = arith.constant 0 : i32
    return %c0_i32, %c0_i32_0 : i32, i32
  }
  func.func @transform_3(%arg0: i32) -> (i32, i32, i32) {
    %c0_i32 = arith.constant 0 : i32
    %c0_i32_0 = arith.constant 0 : i32
    %c0_i32_1 = arith.constant 0 : i32
    %c0_i32_2 = arith.constant 0 : i32
    return %c0_i32, %c0_i32_0, %c0_i32_1 : i32, i32, i32
  }
  func.func @transform_4(%arg0: i32) -> (i32, i32) {
    %c0_i32 = arith.constant 0 : i32
    %c0_i32_0 = arith.constant 0 : i32
    %c0_i32_1 = arith.constant 0 : i32
    return %c0_i32, %c0_i32_0 : i32, i32
  }
  func.func @transform_5(%arg0: i32) -> (i32, i32, i32) {
    %c0_i32 = arith.constant 0 : i32
    %c0_i32_0 = arith.constant 0 : i32
    %c0_i32_1 = arith.constant 0 : i32
    %c0_i32_2 = arith.constant 0 : i32
    return %c0_i32, %c0_i32_0, %c0_i32_1 : i32, i32, i32
  }
  func.func @transform_6(%arg0: i32) -> (i32, i32) {
    %c0_i32 = arith.constant 0 : i32
    %c0_i32_0 = arith.constant 0 : i32
    %c0_i32_1 = arith.constant 0 : i32
    return %c0_i32, %c0_i32_0 : i32, i32
  }
  func.func @transform_7(%arg0: i32) -> (i32, i32, i32) {
    %c0_i32 = arith.constant 0 : i32
    %c0_i32_0 = arith.constant 0 : i32
    %c0_i32_1 = arith.constant 0 : i32
    %c0_i32_2 = arith.constant 0 : i32
    return %c0_i32, %c0_i32_0, %c0_i32_1 : i32, i32, i32
  }
  func.func @transform_8(%arg0: i32) -> (i32, i32) {
    %c0_i32 = arith.constant 0 : i32
    %c0_i32_0 = arith.constant 0 : i32
    %c0_i32_1 = arith.constant 0 : i32
    return %c0_i32, %c0_i32_0 : i32, i32
  }
  func.func @transform_9(%arg0: i32) -> (i32, i32) {
    %c0_i32 = arith.constant 0 : i32
    %c0_i32_0 = arith.constant 0 : i32
    %c0_i32_1 = arith.constant 0 : i32
    return %c0_i32, %c0_i32_0 : i32, i32
  }
  func.func @transform_10(%arg0: i32) -> (i32, i32) {
    %c0_i32 = arith.constant 0 : i32
    %c0_i32_0 = arith.constant 0 : i32
    %c0_i32_1 = arith.constant 0 : i32
    return %c0_i32, %c0_i32_0 : i32, i32
  }
  func.func @transform_11(%arg0: i32) -> (i32, i32) {
    %c0_i32 = arith.constant 0 : i32
    %c0_i32_0 = arith.constant 0 : i32
    %c0_i32_1 = arith.constant 0 : i32
    return %c0_i32, %c0_i32_0 : i32, i32
  }
  func.func @transform_12(%arg0: i32) -> (i32, i32) {
    %c0_i32 = arith.constant 0 : i32
    %c0_i32_0 = arith.constant 0 : i32
    %c0_i32_1 = arith.constant 0 : i32
    return %c0_i32, %c0_i32_0 : i32, i32
  }
  func.func @transform_13(%arg0: i32) -> (i32, i32) {
    %c0_i32 = arith.constant 0 : i32
    %c0_i32_0 = arith.constant 0 : i32
    %c0_i32_1 = arith.constant 0 : i32
    return %c0_i32, %c0_i32_0 : i32, i32
  }
  func.func @transform_14(%arg0: i32) -> (i32, i32) {
    %c0_i32 = arith.constant 0 : i32
    %c0_i32_0 = arith.constant 0 : i32
    %c0_i32_1 = arith.constant 0 : i32
    return %c0_i32, %c0_i32_0 : i32, i32
  }
  func.func @transform_15(%arg0: i32) -> (i32, i32, i32) {
    %c0_i32 = arith.constant 0 : i32
    %c0_i32_0 = arith.constant 0 : i32
    %c0_i32_1 = arith.constant 0 : i32
    return %arg0, %c0_i32, %c0_i32_0 : i32, i32, i32
  }
}

</mosaic_0001>

<bundles_post_ra>
// kernel: qnetwork_forward.1
= control target key start
LH: loop header
LB: loop body
LE: loop exit
PB: predicated region body
PF: predicated region fallthrough
CT: control target
= control target key end

     0   :  { %vm56_vm0 = vcmask 523264   ;;  %s11128_s0 = inlined_call_operand.vmem [shape: bf16[1,400,192], index: 0, kind: input, shape index: {}]   ;;  %s11129_s1 = inlined_call_operand.vmem [shape: bf16[192,256], index: 1, kind: input, shape index: {}]   ;;  %s11130_s2 = inlined_call_operand.vmem [shape: f32[1,256], index: 2, kind: input, shape index: {}]   ;;  %s11131_s3 = inlined_call_operand.vmem [shape: bf16[4,256,256], index: 3, kind: input, shape index: {}]   ;;  %s11132_s4 = inlined_call_operand.vmem [shape: f32[1,64], index: 4, kind: input, shape index: {}]   ;;  %s11133_s5 = inlined_call_operand.vmem [shape: bf16[3,64,256], index: 5, kind: input, shape index: {}]   ;;  %s11134_s6 = inlined_call_operand.vmem [shape: f32[1,64], index: 6, kind: input, shape index: {}]   ;;  %s11135_s7 = inlined_call_operand.vmem [shape: bf16[14,64,128], index: 7, kind: input, shape index: {}]   ;;  %s11136_s8 = inlined_call_operand.vmem [shape: f32[1,128], index: 8, kind: input, shape index: {}]   ;;  %s11137_s9 = inlined_call_operand.vmem [shape: bf16[128,64], index: 9, kind: input, shape index: {}]   ;;  %s11138_s10 = inlined_call_operand.vmem [shape: f32[1,64], index: 10, kind: input, shape index: {}]   ;;  %s11139_s11 = inlined_call_operand.vmem [shape: bf16[64,32], index: 11, kind: input, shape index: {}]   ;;  %s11140_s12 = inlined_call_operand.vmem [shape: f32[1,32], index: 12, kind: input, shape index: {}]   ;;  %s11141_s13 = inlined_call_operand.vmem [shape: bf16[32,4], index: 13, kind: input, shape index: {}]   ;;  %s11142_s14 = inlined_call_operand.vmem [shape: f32[1,4], index: 14, kind: input, shape index: {}]   ;;  %s11143_s15 = inlined_call_operand.hbm [shape: f32[1,2,4], index: 15, kind: output, shape index: {}]  }
   0x1   :  { %v7579_v0 = vld [vmem:[%s11129_s1 + $0x4] ss:$8 sps:$4 sm:$0xff]   ;;  %v7581_v1 = vld [vmem:[%s11129_s1] ss:$8 sps:$4 sm:$0xff]   ;;  %v7582_v2 = vld [vmem:[%s11129_s1 + $0x14] ss:$8 sps:$4 sm:$0xff]  }
   0x2   :  { %392 = vmatprep.subr.bf16.mxu0 %v7579_v0  ;;  %833 = vmatprep.subr.bf16.mxu1 %v7579_v0  ;;  %v7584_v3 = vld [vmem:[%s11129_s1 + $0x10] ss:$8 sps:$4 sm:$0xff]   ;;  %v7585_v4 = vld [vmem:[%s11129_s1 + $0x24] ss:$8 sps:$4 sm:$0xff]   ;;  %v7587_v5 = vld [vmem:[%s11129_s1 + $0x20] ss:$8 sps:$4 sm:$0xff]  }
   0x3   :  { %393 = vmatpush1.bf16.msra.mxu0 %v7581_v1  ;;  %834 = vmatpush1.bf16.msra.mxu1 %v7581_v1  ;;  %v7588_v6 = vld [vmem:[%s11129_s1 + $0x34] ss:$8 sps:$4 sm:$0xff]   ;;  %v7590_v7 = vld [vmem:[%s11129_s1 + $0x30] ss:$8 sps:$4 sm:$0xff]   ;;  %v7591_v8 = vld [vmem:[%s11129_s1 + $0x44] ss:$8 sps:$4 sm:$0xff]  }
   0x4   :  { %394 = vmatprep.subr.bf16.mxu0 %v7582_v2  ;;  %835 = vmatprep.subr.bf16.mxu1 %v7582_v2  ;;  %v7593_v9 = vld [vmem:[%s11129_s1 + $0x40] ss:$8 sps:$4 sm:$0xff]   ;;  %v7594_v10 = vld [vmem:[%s11129_s1 + $0x54] ss:$8 sps:$4 sm:$0xff]   ;;  %v7617_v11 = vld [vmem:[%s11128_s0 + $0x4] ss:$8 sps:$4 sm:$0xff]  }
   0x5   :  { %v7596_v12 = vld [vmem:[%s11129_s1 + $0x50] ss:$8 sps:$4 sm:$0xff]   ;;  %6706 = vmatprep.mubr.msk.bf16.mxu0 %vm56_vm0, %v7617_v11  ;;  %v7597_v13 = vld [vmem:[%s11129_s1 + $0x64] ss:$8 sps:$4 sm:$0xff]   ;;  %v7599_v14 = vld [vmem:[%s11129_s1 + $0x60] ss:$8 sps:$4 sm:$0xff]  }
   0x6   :  { %v7632_v15 = vld [vmem:[%s11128_s0 + $0xcc] ss:$8 sps:$4 sm:$0xff]   ;;  %v7602_v17 = vld [vmem:[%s11129_s1 + $0x70] ss:$8 sps:$4 sm:$0xff]   ;;  %v7605_v19 = vld [vmem:[%s11129_s1 + $0x80] ss:$8 sps:$4 sm:$0xff]  }
   0x7   :  { %395 = vmatpush1.bf16.msra.mxu0 %v7584_v3  ;;  %836 = vmatpush1.bf16.msra.mxu1 %v7584_v3  ;;  %v7600_v16 = vld [vmem:[%s11129_s1 + $0x74] ss:$8 sps:$4 sm:$0xff]   ;;  %v7603_v18 = vld [vmem:[%s11129_s1 + $0x84] ss:$8 sps:$4 sm:$0xff]   ;;  %v7608_v21 = vld [vmem:[%s11129_s1 + $0x90] ss:$8 sps:$4 sm:$0xff]  }
   0x8   :  { %396 = vmatprep.subr.bf16.mxu0 %v7585_v4  ;;  %837 = vmatprep.subr.bf16.mxu1 %v7585_v4  ;;  %v7606_v20 = vld [vmem:[%s11129_s1 + $0x94] ss:$8 sps:$4 sm:$0xff]   ;;  %v7609_v22 = vld [vmem:[%s11129_s1 + $0xa4] ss:$8 sps:$4 sm:$0xff]   ;;  %v7611_v23 = vld [vmem:[%s11129_s1 + $0xa0] ss:$8 sps:$4 sm:$0xff]  }
   0x9   :  { %6745 = vmatprep.mubr.msk.bf16.mxu1 %vm56_vm0, %v7632_v15  ;;  %v7612_v24 = vld [vmem:[%s11129_s1 + $0xb4] ss:$8 sps:$4 sm:$0xff]   ;;  %v7614_v25 = vld [vmem:[%s11129_s1 + $0xb0] ss:$8 sps:$4 sm:$0xff]   ;;  %v7615_v26 = vld [vmem:[%s11128_s0] ss:$8 sps:$4 sm:$0xff]  }
   0xa   :  { %v7682_v27 = vld [vmem:[%s11131_s3 + $0x4] ss:$8 sps:$4 sm:$0xff]   ;;  %v7618_v28 = vld [vmem:[%s11128_s0 + $0x14] ss:$8 sps:$4 sm:$0xff]   ;;  %v7630_v29 = vld [vmem:[%s11128_s0 + $0xc8] ss:$8 sps:$4 sm:$0xff]  }
   0xb   :  { %397 = vmatpush1.bf16.msra.mxu0 %v7587_v5  ;;  %838 = vmatpush1.bf16.msra.mxu1 %v7587_v5  ;;  %v7636_v30 = vld [vmem:[%s11128_s0 + $0xdc] ss:$8 sps:$4 sm:$0xff]   ;;  %v7680_v31 = vld [vmem:[%s11131_s3] ss:$8 sps:$4 sm:$0xff]   ;;  %v7686_v33 = vld [vmem:[%s11131_s3 + $0x10] ss:$8 sps:$4 sm:$0xff]  }
   0xc   :  { %398 = vmatprep.subr.bf16.mxu0 %v7588_v6  ;;  %839 = vmatprep.subr.bf16.mxu1 %v7588_v6  ;;  %v7688_v32 = vld [vmem:[%s11131_s3 + $0x14] ss:$8 sps:$4 sm:$0xff]   ;;  %v7691_v34 = vld [vmem:[%s11131_s3 + $0x24] ss:$8 sps:$4 sm:$0xff]   ;;  %v7620_v35 = vld [vmem:[%s11128_s0 + $0x10] ss:$8 sps:$4 sm:$0xff]  }
   0xd   :  { %v7621_v36 = vld [vmem:[%s11128_s0 + $0x24] ss:$8 sps:$4 sm:$0xff]   ;;  %v7638_v37 = vld [vmem:[%s11128_s0 + $0xd8] ss:$8 sps:$4 sm:$0xff]   ;;  %v7697_v40 = vld [vmem:[%s11131_s3 + $0x34] ss:$8 sps:$4 sm:$0xff]  }
   0xe   :  { %v7642_v38 = vld [vmem:[%s11128_s0 + $0xec] ss:$8 sps:$4 sm:$0xff]   ;;  %v7689_v39 = vld [vmem:[%s11131_s3 + $0x20] ss:$8 sps:$4 sm:$0xff]   ;;  %v7695_v42 = vld [vmem:[%s11131_s3 + $0x30] ss:$8 sps:$4 sm:$0xff]  }
   0xf   :  { %399 = vmatpush1.bf16.msra.mxu0 %v7590_v7  ;;  %840 = vmatpush1.bf16.msra.mxu1 %v7590_v7  ;;  %v7623_v41 = vld [vmem:[%s11128_s0 + $0x20] ss:$8 sps:$4 sm:$0xff]   ;;  %v7703_v43 = vld [vmem:[%s11131_s3 + $0x44] ss:$8 sps:$4 sm:$0xff]   ;;  %v7624_v44 = vld [vmem:[%s11128_s0 + $0x34] ss:$8 sps:$4 sm:$0xff]  }
  0x10   :  { %400 = vmatprep.subr.bf16.mxu0 %v7591_v8  ;;  %841 = vmatprep.subr.bf16.mxu1 %v7591_v8  ;;  %v7718_v45 = vld [vmem:[%s11131_s3 + $0x100] ss:$8 sps:$4 sm:$0xff]   ;;  %v7720_v46 = vld [vmem:[%s11131_s3 + $0x104] ss:$8 sps:$4 sm:$0xff]   ;;  %v7726_v50 = vld [vmem:[%s11131_s3 + $0x114] ss:$8 sps:$4 sm:$0xff]  }
  0x11   :  { %v7644_v47 = vld [vmem:[%s11128_s0 + $0xe8] ss:$8 sps:$4 sm:$0xff]   ;;  %v7648_v48 = vld [vmem:[%s11128_s0 + $0xfc] ss:$8 sps:$4 sm:$0xff]   ;;  %v7650_v57 = vld [vmem:[%s11128_s0 + $0xf8] ss:$8 sps:$4 sm:$0xff]  }
  0x12   :  { %v7701_v49 = vld [vmem:[%s11131_s3 + $0x40] ss:$8 sps:$4 sm:$0xff]   ;;  %v7706_v51 = vld [vmem:[%s11131_s3 + $0x54] ss:$8 sps:$4 sm:$0xff]   ;;  %v7724_v52 = vld [vmem:[%s11131_s3 + $0x110] ss:$8 sps:$4 sm:$0xff]  }
  0x13   :  { %401 = vmatpush1.bf16.msra.mxu0 %v7593_v9  ;;  %842 = vmatpush1.bf16.msra.mxu1 %v7593_v9  ;;  %v7732_v53 = vld [vmem:[%s11131_s3 + $0x124] ss:$8 sps:$4 sm:$0xff]   ;;  %v7626_v54 = vld [vmem:[%s11128_s0 + $0x30] ss:$8 sps:$4 sm:$0xff]   ;;  %v7730_v59 = vld [vmem:[%s11131_s3 + $0x120] ss:$8 sps:$4 sm:$0xff]  }
  0x14   :  { %402 = vmatprep.subr.bf16.mxu0 %v7594_v10  ;;  %843 = vmatprep.subr.bf16.mxu1 %v7594_v10  ;;  %v7704_v55 = vld [vmem:[%s11131_s3 + $0x50] ss:$8 sps:$4 sm:$0xff]   ;;  %v7627_v56 = vld [vmem:[%s11128_s0 + $0x44] ss:$8 sps:$4 sm:$0xff]   ;;  %v7738_v61 = vld [vmem:[%s11131_s3 + $0x134] ss:$8 sps:$4 sm:$0xff]  }
  0x15   :  { %v7711_v58 = vld [vmem:[%s11131_s3 + $0x64] ss:$8 sps:$4 sm:$0xff]   ;;  %v7709_v62 = vld [vmem:[%s11131_s3 + $0x60] ss:$8 sps:$4 sm:$0xff]   ;;  %v7714_v63 = vld [vmem:[%s11131_s3 + $0x74] ss:$8 sps:$4 sm:$0xff]  }
  0x16   :  { %v7654_v60 = vld [vmem:[%s11128_s0 + $0x10c] ss:$8 sps:$4 sm:$0xff]   ;;  %v7736_v0 = vld [vmem:[%s11131_s3 + $0x130] ss:$8 sps:$4 sm:$0xff]   ;;  %v7742_v4 = vld [vmem:[%s11131_s3 + $0x140] ss:$8 sps:$4 sm:$0xff]  }
  0x17   :  { %403 = vmatpush1.bf16.msra.mxu0 %v7596_v12  ;;  %844 = vmatpush1.bf16.msra.mxu1 %v7596_v12  ;;  %v7744_v1 = vld [vmem:[%s11131_s3 + $0x144] ss:$8 sps:$4 sm:$0xff]   ;;  %v7712_v2 = vld [vmem:[%s11131_s3 + $0x70] ss:$8 sps:$4 sm:$0xff]   ;;  %v7629_v5 = vld [vmem:[%s11128_s0 + $0x40] ss:$8 sps:$4 sm:$0xff]  }
  0x18   :  { %404 = vmatprep.subr.bf16.mxu0 %v7597_v13  ;;  %845 = vmatprep.subr.bf16.mxu1 %v7597_v13  ;;  %v7717_v3 = vld [vmem:[%s11131_s3 + $0x84] ss:$8 sps:$4 sm:$0xff]   ;;  %v7633_v6 = vld [vmem:[%s11128_s0 + $0x54] ss:$8 sps:$4 sm:$0xff]   ;;  %v7656_v7 = vld [vmem:[%s11128_s0 + $0x108] ss:$8 sps:$4 sm:$0xff]  }
  0x19   :  { %v7663_v8 = vld [vmem:[%s11128_s0 + $0x11c] ss:$8 sps:$4 sm:$0xff]   ;;  %v7715_v9 = vld [vmem:[%s11131_s3 + $0x80] ss:$8 sps:$4 sm:$0xff]   ;;  %v7721_v11 = vld [vmem:[%s11131_s3 + $0x90] ss:$8 sps:$4 sm:$0xff]  }
  0x1a   :  { %v7723_v10 = vld [vmem:[%s11131_s3 + $0x94] ss:$8 sps:$4 sm:$0xff]   ;;  %v7729_v12 = vld [vmem:[%s11131_s3 + $0xa4] ss:$8 sps:$4 sm:$0xff]   ;;  %v7635_v13 = vld [vmem:[%s11128_s0 + $0x50] ss:$8 sps:$4 sm:$0xff]  }
  0x1b   :  { %405 = vmatpush1.bf16.msra.mxu0 %v7599_v14  ;;  %846 = vmatpush1.bf16.msra.mxu1 %v7599_v14  ;;  %v7639_v14 = vld [vmem:[%s11128_s0 + $0x64] ss:$8 sps:$4 sm:$0xff]   ;;  %v7665_v15 = vld [vmem:[%s11128_s0 + $0x118] ss:$8 sps:$4 sm:$0xff]  }
  0x1c   :  { %406 = vmatprep.subr.bf16.mxu0 %v7600_v16  ;;  %847 = vmatprep.subr.bf16.mxu1 %v7600_v16  ;;  %v7671_v16 = vld [vmem:[%s11128_s0 + $0x12c] ss:$8 sps:$4 sm:$0xff]  }
  0x1f   :  { %407 = vmatpush1.bf16.msra.mxu0 %v7602_v17  ;;  %848 = vmatpush1.bf16.msra.mxu1 %v7602_v17  ;;  %v7727_v17 = vld [vmem:[%s11131_s3 + $0xa0] ss:$8 sps:$4 sm:$0xff]  }
  0x20   :  { %408 = vmatprep.subr.bf16.mxu0 %v7603_v18  ;;  %849 = vmatprep.subr.bf16.mxu1 %v7603_v18  ;;  %v7735_v18 = vld [vmem:[%s11131_s3 + $0xb4] ss:$8 sps:$4 sm:$0xff]  }
  0x23   :  { %409 = vmatpush1.bf16.msra.mxu0 %v7605_v19  ;;  %850 = vmatpush1.bf16.msra.mxu1 %v7605_v19  ;;  %v7733_v19 = vld [vmem:[%s11131_s3 + $0xb0] ss:$8 sps:$4 sm:$0xff]  }
  0x24   :  { %410 = vmatprep.subr.bf16.mxu0 %v7606_v20  ;;  %851 = vmatprep.subr.bf16.mxu1 %v7606_v20  ;;  %v7741_v20 = vld [vmem:[%s11131_s3 + $0xc4] ss:$8 sps:$4 sm:$0xff]  }
  0x27   :  { %411 = vmatpush1.bf16.msra.mxu0 %v7608_v21  ;;  %852 = vmatpush1.bf16.msra.mxu1 %v7608_v21  ;;  %v7641_v21 = vld [vmem:[%s11128_s0 + $0x60] ss:$8 sps:$4 sm:$0xff]  }
  0x28   :  { %412 = vmatprep.subr.bf16.mxu0 %v7609_v22  ;;  %853 = vmatprep.subr.bf16.mxu1 %v7609_v22  ;;  %v7645_v22 = vld [vmem:[%s11128_s0 + $0x74] ss:$8 sps:$4 sm:$0xff]  }
  0x2b   :  { %413 = vmatpush1.bf16.msra.mxu0 %v7611_v23  ;;  %854 = vmatpush1.bf16.msra.mxu1 %v7611_v23  ;;  %v7673_v23 = vld [vmem:[%s11128_s0 + $0x128] ss:$8 sps:$4 sm:$0xff]  }
  0x2c   :  { %414 = vmatprep.subr.bf16.mxu0 %v7612_v24  ;;  %855 = vmatprep.subr.bf16.mxu1 %v7612_v24  ;;  %v7674_v24 = vld [vmem:[%s11128_s0 + $0x13c] ss:$8 sps:$4 sm:$0xff]  }
  0x2f   :  { %415 = vmatpush1.bf16.msra.mxu0 %v7614_v25  ;;  %856 = vmatpush1.bf16.msra.mxu1 %v7614_v25  ;;  %v7739_v25 = vld [vmem:[%s11131_s3 + $0xc0] ss:$8 sps:$4 sm:$0xff]  }
  0x30   :  { %1406 = vmatprep.subr.bf16.mxu0 %v7682_v27  ;;  %2085 = vmatprep.subr.bf16.mxu1 %v7720_v46  ;;  %v7651_v27 = vld [vmem:[%s11128_s0 + $0x84] ss:$8 sps:$4 sm:$0xff]   ;;  %v7668_v46 = vld [vmem:[%s11128_s0 + $0xb0] ss:$8 sps:$4 sm:$0xff]  }
  0x32   :  { %425 = vmatmul.mubr.bf16.vlgmr.msra.gmra.mrb[0].mxu0 %v7615_v26  ;;  %866 = vmatmul.mubr.bf16.vlgmr.msra.gmra.mrb[0].mxu1 %v7630_v29  ;;  %v7647_v26 = vld [vmem:[%s11128_s0 + $0x70] ss:$8 sps:$4 sm:$0xff]   ;;  %v7677_v29 = vld [vmem:[%s11128_s0 + $0x14c] ss:$8 sps:$4 sm:$0xff]  }
  0x33   :  { %6707 = vmatprep.mubr.msk.bf16.mxu0 %vm56_vm0, %v7618_v28  ;;  %6746 = vmatprep.mubr.msk.bf16.mxu1 %vm56_vm0, %v7636_v30  ;;  %v7676_v28 = vld [vmem:[%s11128_s0 + $0x138] ss:$8 sps:$4 sm:$0xff]  }
  0x34   :  { %1407 = vmatpush1.bf16.msra.mxu0 %v7680_v31  ;;  %2086 = vmatpush1.bf16.msra.mxu1 %v7718_v45  ;;  %v7653_v30 = vld [vmem:[%s11128_s0 + $0x80] ss:$8 sps:$4 sm:$0xff]   ;;  %v7657_v31 = vld [vmem:[%s11128_s0 + $0x94] ss:$8 sps:$4 sm:$0xff]  }
  0x35   :  { %1408 = vmatprep.subr.bf16.mxu0 %v7688_v32  ;;  %2087 = vmatprep.subr.bf16.mxu1 %v7726_v50  ;;  %v7679_v32 = vld [vmem:[%s11128_s0 + $0x148] ss:$8 sps:$4 sm:$0xff]  }
  0x36   :  { %v679_v45 = vld [vmem:[%s11128_s0 + $0x188] sm:$0xff] }
  0x38   :  { %1409 = vmatpush1.bf16.msra.mxu0 %v7686_v33  ;;  %2088 = vmatpush1.bf16.msra.mxu1 %v7724_v52  ;;  %v7683_v33 = vld [vmem:[%s11128_s0 + $0x15c] ss:$8 sps:$4 sm:$0xff]  }
  0x39   :  { %1410 = vmatprep.subr.bf16.mxu0 %v7691_v34  ;;  %2089 = vmatprep.subr.bf16.mxu1 %v7732_v53  ;;  %v7659_v34 = vld [vmem:[%s11128_s0 + $0x90] ss:$8 sps:$4 sm:$0xff]   ;;  %v7759_v52 = vld [vmem:[%s11131_s3 + $0xf4] ss:$8 sps:$4 sm:$0xff]  }
  0x3a   :  { %435 = vmatmul.mubr.bf16.gmra.mrb[4].mxu0 %v7620_v35  ;;  %876 = vmatmul.mubr.bf16.gmra.mrb[4].mxu1 %v7638_v37  ;;  %v7660_v35 = vld [vmem:[%s11128_s0 + $0xa4] ss:$8 sps:$4 sm:$0xff]   ;;  %v7757_v53 = vld [vmem:[%s11131_s3 + $0xf0] ss:$8 sps:$4 sm:$0xff]  }
  0x3b   :  { %6708 = vmatprep.mubr.msk.bf16.mxu0 %vm56_vm0, %v7621_v36  ;;  %6747 = vmatprep.mubr.msk.bf16.mxu1 %vm56_vm0, %v7642_v38  ;;  %v7685_v36 = vld [vmem:[%s11128_s0 + $0x158] ss:$8 sps:$4 sm:$0xff]   ;;  %v7692_v37 = vld [vmem:[%s11128_s0 + $0x16c] ss:$8 sps:$4 sm:$0xff]  }
  0x3c   :  { %1411 = vmatpush1.bf16.msra.mxu0 %v7689_v39  ;;  %2090 = vmatpush1.bf16.msra.mxu1 %v7730_v59  ;;  %v7662_v38 = vld [vmem:[%s11128_s0 + $0xa0] ss:$8 sps:$4 sm:$0xff]   ;;  %v7666_v39 = vld [vmem:[%s11128_s0 + $0xb4] ss:$8 sps:$4 sm:$0xff]  }
  0x3d   :  { %1412 = vmatprep.subr.bf16.mxu0 %v7697_v40  ;;  %2091 = vmatprep.subr.bf16.mxu1 %v7738_v61  ;;  %v7694_v40 = vld [vmem:[%s11128_s0 + $0x168] ss:$8 sps:$4 sm:$0xff]  }
  0x3e   :  { %v7754_v59 = vld [vmem:[%s11131_s3 + $0x160] ss:$8 sps:$4 sm:$0xff]   ;;  %v7763_v61 = vld [vmem:[%s11131_s3 + $0x170] ss:$8 sps:$4 sm:$0xff]  }
  0x40   :  { %1413 = vmatpush1.bf16.msra.mxu0 %v7695_v42  ;;  %2092 = vmatpush1.bf16.msra.mxu1 %v7736_v0  ;;  %v7747_v42 = vld [vmem:[%s11131_s3 + $0xd4] ss:$8 sps:$4 sm:$0xff]   ;;  %v7769_v0 = vld [vmem:[%s11131_s3 + $0x180] ss:$8 sps:$4 sm:$0xff]  }
  0x41   :  { %1414 = vmatprep.subr.bf16.mxu0 %v7703_v43  ;;  %2093 = vmatprep.subr.bf16.mxu1 %v7744_v1  ;;  %v107_v43 = vld [vmem:[%s11128_s0 + $0xc0] sm:$0xff]  ;;  %v7778_v1 = vld [vmem:[%s11131_s3 + $0x190] ss:$8 sps:$4 sm:$0xff]  }
  0x42   :  { %445 = vmatmul.mubr.bf16.gmra.mrb[8].mxu0 %v7623_v41  ;;  %886 = vmatmul.mubr.bf16.gmra.mrb[8].mxu1 %v7644_v47  ;;  %v7698_v41 = vld [vmem:[%s11128_s0 + $0x17c] ss:$8 sps:$4 sm:$0xff]   ;;  %v7700_v47 = vld [vmem:[%s11128_s0 + $0x178] ss:$8 sps:$4 sm:$0xff]   ;;  %v6681_v50 = vcombine.high %v107_v43, %v107_v43 }
  0x43   :  { %6709 = vmatprep.mubr.msk.bf16.mxu0 %vm56_vm0, %v7624_v44  ;;  %6748 = vmatprep.mubr.msk.bf16.mxu1 %vm56_vm0, %v7648_v48  ;;  %v7745_v44 = vld [vmem:[%s11131_s3 + $0xd0] ss:$8 sps:$4 sm:$0xff]   ;;  %v7753_v48 = vld [vmem:[%s11131_s3 + $0xe4] ss:$8 sps:$4 sm:$0xff]  }
  0x44   :  { %1415 = vmatpush1.bf16.msra.mxu0 %v7701_v49  ;;  %2094 = vmatpush1.bf16.msra.mxu1 %v7742_v4  ;;  %v7751_v49 = vld [vmem:[%s11131_s3 + $0xe0] ss:$8 sps:$4 sm:$0xff]  }
  0x45   :  { %1416 = vmatprep.subr.bf16.mxu0 %v7706_v51  ;;  %v6744_v51 = vcombine.high %v679_v45, %v679_v45 }
  0x48   :  { %1417 = vmatpush1.bf16.msra.mxu0 %v7704_v55  ;;  %v6680_v55 = vcombine.low %v107_v43, %v107_v43 }
  0x49   :  { %1418 = vmatprep.subr.bf16.mxu0 %v7711_v58  ;;  %v7750_v58 = vld [vmem:[%s11131_s3 + $0x154] ss:$8 sps:$4 sm:$0xff]  }
  0x4a   :  { %455 = vmatmul.mubr.bf16.gmra.mrb[12].mxu0 %v7626_v54  ;;  %896 = vmatmul.mubr.bf16.gmra.mrb[12].mxu1 %v7650_v57  ;;  %v7762_v54 = vld [vmem:[%s11131_s3 + $0x204] ss:$8 sps:$4 sm:$0xff]   ;;  %v7748_v57 = vld [vmem:[%s11131_s3 + $0x150] ss:$8 sps:$4 sm:$0xff]  }
  0x4b   :  { %6710 = vmatprep.mubr.msk.bf16.mxu0 %vm56_vm0, %v7627_v56  ;;  %6749 = vmatprep.mubr.msk.bf16.mxu1 %vm56_vm0, %v7654_v60  ;;  %v6743_v56 = vcombine.low %v679_v45, %v679_v45  ;;  %v7756_v60 = vld [vmem:[%s11131_s3 + $0x164] ss:$8 sps:$4 sm:$0xff]  }
  0x4c   :  { %1419 = vmatpush1.bf16.msra.mxu0 %v7709_v62  ;;  %2095 = vmatprep.subr.bf16.mxu1 %v7750_v58  ;;  %v7765_v62 = vld [vmem:[%s11131_s3 + $0x174] ss:$8 sps:$4 sm:$0xff]  }
  0x4d   :  { %1420 = vmatprep.subr.bf16.mxu0 %v7714_v63  ;;  %2096 = vmatpush1.bf16.msra.mxu1 %v7748_v57  ;;  %v7771_v63 = vld [vmem:[%s11131_s3 + $0x184] ss:$8 sps:$4 sm:$0xff]  }
  0x4e   :  { %2097 = vmatprep.subr.bf16.mxu1 %v7756_v60 }
  0x50   :  { %1421 = vmatpush1.bf16.msra.mxu0 %v7712_v2  ;;  %v7780_v2 = vld [vmem:[%s11131_s3 + $0x194] ss:$8 sps:$4 sm:$0xff]  }
  0x51   :  { %1422 = vmatprep.subr.bf16.mxu0 %v7717_v3  ;;  %2098 = vmatpush1.bf16.msra.mxu1 %v7754_v59 }
  0x52   :  { %465 = vmatmul.mubr.bf16.gmra.mrb[16].mxu0 %v7629_v5  ;;  %906 = vmatmul.mubr.bf16.gmra.mrb[16].mxu1 %v7656_v7 }
  0x53   :  { %6711 = vmatprep.mubr.msk.bf16.mxu0 %vm56_vm0, %v7633_v6  ;;  %6750 = vmatprep.mubr.msk.bf16.mxu1 %vm56_vm0, %v7663_v8 }
  0x54   :  { %1423 = vmatpush1.bf16.msra.mxu0 %v7715_v9  ;;  %2099 = vmatprep.subr.bf16.mxu1 %v7765_v62 }
  0x55   :  { %1424 = vmatprep.subr.bf16.mxu0 %v7723_v10  ;;  %2100 = vmatpush1.bf16.msra.mxu1 %v7763_v61 }
  0x56   :  { %2101 = vmatprep.subr.bf16.mxu1 %v7771_v63 }
  0x58   :  { %1425 = vmatpush1.bf16.msra.mxu0 %v7721_v11 }
  0x59   :  { %1426 = vmatprep.subr.bf16.mxu0 %v7729_v12  ;;  %2102 = vmatpush1.bf16.msra.mxu1 %v7769_v0 }
  0x5a   :  { %475 = vmatmul.mubr.bf16.gmra.mrb[20].mxu0 %v7635_v13  ;;  %916 = vmatmul.mubr.bf16.gmra.mrb[20].mxu1 %v7665_v15 }
  0x5b   :  { %6712 = vmatprep.mubr.msk.bf16.mxu0 %vm56_vm0, %v7639_v14  ;;  %6751 = vmatprep.mubr.msk.bf16.mxu1 %vm56_vm0, %v7671_v16 }
  0x5c   :  { %1427 = vmatpush1.bf16.msra.mxu0 %v7727_v17 }
  0x5d   :  { %1428 = vmatprep.subr.bf16.mxu0 %v7735_v18 }
  0x60   :  { %1429 = vmatpush1.bf16.msra.mxu0 %v7733_v19 }
  0x61   :  { %1430 = vmatprep.subr.bf16.mxu0 %v7741_v20 }
  0x62   :  { %485 = vmatmul.mubr.bf16.gmra.mrb[24].mxu0 %v7641_v21  ;;  %926 = vmatmul.mubr.bf16.gmra.mrb[24].mxu1 %v7673_v23 }
  0x63   :  { %6713 = vmatprep.mubr.msk.bf16.mxu0 %vm56_vm0, %v7645_v22  ;;  %6752 = vmatprep.mubr.msk.bf16.mxu1 %vm56_vm0, %v7674_v24 }
  0x64   :  { %1431 = vmatpush1.bf16.msra.mxu0 %v7739_v25 }
  0x65   :  { %1432 = vmatprep.subr.bf16.mxu0 %v7747_v42 }
  0x68   :  { %1433 = vmatpush1.bf16.msra.mxu0 %v7745_v44 }
  0x69   :  { %1434 = vmatprep.subr.bf16.mxu0 %v7753_v48 }
  0x6a   :  { %495 = vmatmul.mubr.bf16.gmra.mrb[28].mxu0 %v7647_v26  ;;  %936 = vmatmul.mubr.bf16.gmra.mrb[28].mxu1 %v7676_v28 }
  0x6b   :  { %6714 = vmatprep.mubr.msk.bf16.mxu0 %vm56_vm0, %v7651_v27  ;;  %6753 = vmatprep.mubr.msk.bf16.mxu1 %vm56_vm0, %v7677_v29 }
  0x6c   :  { %1435 = vmatpush1.bf16.msra.mxu0 %v7751_v49 }
  0x6d   :  { %1436 = vmatprep.subr.bf16.mxu0 %v7759_v52 }
  0x70   :  { %1437 = vmatpush1.bf16.msra.mxu0 %v7757_v53 }
  0x71   :  { %2761 = vmatprep.subr.bf16.mxu0 %v7762_v54 }
  0x72   :  { %505 = vmatmul.mubr.bf16.gmra.mrb[32].mxu0 %v7653_v30  ;;  %946 = vmatmul.mubr.bf16.gmra.mrb[32].mxu1 %v7679_v32 }
  0x73   :  { %6715 = vmatprep.mubr.msk.bf16.mxu0 %vm56_vm0, %v7657_v31  ;;  %6754 = vmatprep.mubr.msk.bf16.mxu1 %vm56_vm0, %v7683_v33 }
  0x7a   :  { %515 = vmatmul.mubr.bf16.gmra.mrb[36].mxu0 %v7659_v34  ;;  %956 = vmatmul.mubr.bf16.gmra.mrb[36].mxu1 %v7685_v36 }
  0x7b   :  { %6716 = vmatprep.mubr.msk.bf16.mxu0 %vm56_vm0, %v7660_v35  ;;  %6755 = vmatprep.mubr.msk.bf16.mxu1 %vm56_vm0, %v7692_v37 }
  0x82   :  { %525 = vmatmul.mubr.bf16.gmra.mrb[40].mxu0 %v7662_v38  ;;  %966 = vmatmul.mubr.bf16.gmra.mrb[40].mxu1 %v7694_v40 }
  0x83   :  { %6717 = vmatprep.mubr.msk.bf16.mxu0 %vm56_vm0, %v7666_v39  ;;  %6756 = vmatprep.mubr.msk.bf16.mxu1 %vm56_vm0, %v7698_v41 }
  0x8a   :  { %535 = vmatmul.mubr.bf16.gmra.mrb[44].mxu0 %v7668_v46  ;;  %976 = vmatmul.mubr.bf16.gmra.mrb[44].mxu1 %v7700_v47 }
  0x8b   :  { %6718 = vmatprep.mubr.msk.bf16.mxu0 %vm56_vm0, %v6681_v50  ;;  %6757 = vmatprep.mubr.msk.bf16.mxu1 %vm56_vm0, %v6744_v51 }
  0x92   :  { %545 = vmatmul.mubr.bf16.gmra.mrb[48].mxu0 %v6680_v55  ;;  %986 = vmatmul.mubr.bf16.gmra.mrb[48].mxu1 %v6743_v56 }
  0x93   :  { %20 = vsyncpa [#allocation7], 0  ;;  %2103 = vmatprep.subr.bf16.mxu1 %v7780_v2  ;;  %v7784_v3 = vld [vmem:[%s11131_s3 + $0x1a0] ss:$8 sps:$4 sm:$0xff]   ;;  %v7786_v4 = vld [vmem:[%s11131_s3 + $0x1a4] ss:$8 sps:$4 sm:$0xff]   ;;  %v109_v16 = vlaneseq }
  0x94   :  { %2104 = vmatpush1.bf16.msra.mxu1 %v7778_v1  ;;  %v7795_v5 = vld [vmem:[%s11131_s3 + $0x1b4] ss:$8 sps:$4 sm:$0xff]   ;;  %v7793_v6 = vld [vmem:[%s11131_s3 + $0x1b0] ss:$8 sps:$4 sm:$0xff]   ;;  %v7804_v7 = vld [vmem:[%s11131_s3 + $0x1c4] ss:$8 sps:$4 sm:$0xff]  }
  0x95   :  { %2105 = vmatprep.subr.bf16.mxu1 %v7786_v4  ;;  %v7802_v8 = vld [vmem:[%s11131_s3 + $0x1c0] ss:$8 sps:$4 sm:$0xff]   ;;  %v7810_v9 = vld [vmem:[%s11131_s3 + $0x1d4] ss:$8 sps:$4 sm:$0xff]   ;;  %v7808_v10 = vld [vmem:[%s11131_s3 + $0x1d0] ss:$8 sps:$4 sm:$0xff]  }
  0x96   :  { %v7819_v11 = vld [vmem:[%s11131_s3 + $0x1e4] ss:$8 sps:$4 sm:$0xff]   ;;  %v7817_v12 = vld [vmem:[%s11131_s3 + $0x1e0] ss:$8 sps:$4 sm:$0xff]   ;;  %v7828_v13 = vld [vmem:[%s11131_s3 + $0x1f4] ss:$8 sps:$4 sm:$0xff]  }
  0x97   :  { %v7826_v14 = vld [vmem:[%s11131_s3 + $0x1f0] ss:$8 sps:$4 sm:$0xff]   ;;  %v7834_v15 = vld [vmem:[%s11131_s3 + $0x304] ss:$8 sps:$4 sm:$0xff]   ;;  %v110_v17 = vshrl.u32 %v109_v16, 7  ;;  %vm1096_vm1 = vcmask 1043456  }
  0x98   :  { %2106 = vmatpush1.bf16.msra.mxu1 %v7784_v3  ;;  %v82_v19 = vld [vmem:[%s11130_s2] sm:$0x3]  ;;  %v7768_v54 = vld [vmem:[%s11131_s3 + $0x214] ss:$8 sps:$4 sm:$0xff]   ;;  %v7766_v4 = vld [vmem:[%s11131_s3 + $0x210] ss:$8 sps:$4 sm:$0xff]  }
  0x99   :  { %2107 = vmatprep.subr.bf16.mxu1 %v7795_v5  ;;  %v111_v18 = vsub.s32 0, %v110_v17  ;;  %v115_v20 = vsub.s32 1, %v110_v17  ;;  %v7760_v50 = vld [vmem:[%s11131_s3 + $0x200] ss:$8 sps:$4 sm:$0xff]   ;;  %vm1578_vm2 = vcmask 1045504   ;;  %vm3233_vm3 = vcmask 1041408  }
  0x9a   :  { %vm54_vm4 = vcmask 523266   ;;  %vm3890_vm5 = vcmask 517120   ;;  %vm8029_vm6 = vmmov 0   ;;  %vm5212_vm7 = vcmask 519168  }
  0x9b   :  { %v8560_v21 = vrot.slane %v82_v19, %v111_v18  ;;  %v8562_v22 = vrot.slane %v82_v19, %v115_v20  ;;  %v7772_v20 = vld [vmem:[%s11131_s3 + $0x220] ss:$8 sps:$4 sm:$0xff]   ;;  %vm6589_vm8 = vcmask 261120   ;;  %vm6634_vm9 = vcmask 25600  }
  0x9c   :  { %2108 = vmatpush1.bf16.msra.mxu1 %v7793_v6 }
  0x9d   :  { %2109 = vmatprep.subr.bf16.mxu1 %v7804_v7 }
  0xa0   :  { %2110 = vmatpush1.bf16.msra.mxu1 %v7802_v8 }
  0xa1   :  { %2111 = vmatprep.subr.bf16.mxu1 %v7810_v9 }
  0xa4   :  { %2112 = vmatpush1.bf16.msra.mxu1 %v7808_v10  ;;  %v7774_v10 = vld [vmem:[%s11131_s3 + $0x224] ss:$8 sps:$4 sm:$0xff]  }
  0xa5   :  { %2113 = vmatprep.subr.bf16.mxu1 %v7819_v11 }
  0xa8   :  { %2114 = vmatpush1.bf16.msra.mxu1 %v7817_v12 }
  0xa9   :  { %2115 = vmatprep.subr.bf16.mxu1 %v7828_v13 }
  0xac   :  { %2116 = vmatpush1.bf16.msra.mxu1 %v7826_v14 }
  0xad   :  { %3438 = vmatprep.subr.bf16.mxu1 %v7834_v15 }
 0x105   :  { %v426_v23 = vpop.f32.mrb[0].mxu0  ;;  %v867_v26 = vpop.f32.mrb[0].mxu1 }
 0x106   :  { %v427_v24 = vadd.f32 %v426_v23, %v8560_v21  ;;  %v428_v25 = vpop.f32.mrb[1].mxu0  ;;  %v868_v29 = vadd.f32 %v867_v26, %v8560_v21  ;;  %v869_v30 = vpop.f32.mrb[1].mxu1  ;;  %v7777_v26 = vld [vmem:[%s11131_s3 + $0x234] ss:$8 sps:$4 sm:$0xff]  }
 0x107   :  { %v429_v27 = vadd.f32 %v428_v25, %v8562_v22  ;;  %v430_v28 = vpop.f32.mrb[2].mxu0  ;;  %v870_v33 = vadd.f32 %v869_v30, %v8562_v22  ;;  %v871_v34 = vpop.f32.mrb[2].mxu1 }
 0x108   :  { %v431_v31 = vadd.f32 %v430_v28, %v8560_v21  ;;  %v432_v32 = vpop.f32.mrb[3].mxu0  ;;  %v994_v36 = vmax.f32 %v868_v29, 0.0  ;;  %v872_v37 = vadd.f32 %v871_v34, %v8560_v21  ;;  %v873_v38 = vpop.f32.mrb[3].mxu1  ;;  %v553_v39 = vmax.f32 %v427_v24, 0.0 }
 0x109   :  { %v433_v35 = vadd.f32 %v432_v32, %v8562_v22  ;;  %v995_v41 = vmax.f32 %v870_v33, 0.0  ;;  %v874_v42 = vadd.f32 %v873_v38, %v8562_v22  ;;  %v554_v43 = vmax.f32 %v429_v27, 0.0 }
 0x10a   :  { %v555_v40 = vmax.f32 %v431_v31, 0.0  ;;  %v996_v45 = vmax.f32 %v872_v37, 0.0 }
 0x10b   :  { %v556_v44 = vmax.f32 %v433_v35, 0.0  ;;  %v997_v47 = vmax.f32 %v874_v42, 0.0 }
 0x10c   :  { %v603_v46 = vpack.c.bf16 %v555_v40, %v553_v39  ;;  %v8575_v51 = vpack.c.bf16 %v996_v45, %v994_v36  ;;  %v7783_v45 = vld [vmem:[%s11131_s3 + $0x244] ss:$8 sps:$4 sm:$0xff]  }
 0x10d   :  { %v604_v48 = vpack.c.bf16 %v556_v44, %v554_v43  ;;  %v436_v49 = vpop.f32.mrb[4].mxu0  ;;  %v8581_v55 = vpack.c.bf16 %v997_v47, %v995_v41  ;;  %v877_v56 = vpop.f32.mrb[4].mxu1  ;;  %v7775_v41 = vld [vmem:[%s11131_s3 + $0x230] ss:$8 sps:$4 sm:$0xff]  }
 0x10e   :  { %v437_v52 = vadd.f32 %v436_v49, %v8560_v21  ;;  %v438_v53 = vpop.f32.mrb[5].mxu0  ;;  %v1097_v59 = vrot.slane %v8575_v51, 4  ;;  %v878_v60 = vadd.f32 %v877_v56, %v8560_v21  ;;  %v879_v61 = vpop.f32.mrb[5].mxu1 }
 0x10f   :  { %v439_v57 = vadd.f32 %v438_v53, %v8562_v22  ;;  %v440_v58 = vpop.f32.mrb[6].mxu0  ;;  %1438 = vmatprep.mubr.bf16.mxu0 %v604_v48  ;;  %v1098_v0 = vrot.slane %v8581_v55, 4  ;;  %v880_v1 = vadd.f32 %v879_v61, %v8562_v22  ;;  %v881_v2 = vpop.f32.mrb[6].mxu1  ;;  %v7789_v61 = vld [vmem:[%s11131_s3 + $0x254] ss:$8 sps:$4 sm:$0xff]  }
 0x110   :  { %v441_v62 = vadd.f32 %v440_v58, %v8560_v21  ;;  %v442_v63 = vpop.f32.mrb[7].mxu0  ;;  %1439 = vmatmul.mubr.bf16.vlgmr.msra.gmra.mrb[52].mxu0 %v603_v46  ;;  %1173 = vst [vmem:[#allocation2 + $0xc0] sm:$0xf0] %v1097_v59  ;;  %v998_v5 = vmax.f32 %v878_v60, 0.0  ;;  %v882_v6 = vadd.f32 %v881_v2, %v8560_v21  ;;  %v883_v7 = vpop.f32.mrb[7].mxu1  ;;  %v557_v8 = vmax.f32 %v437_v52, 0.0 }
 0x111   :  { %v443_v3 = vadd.f32 %v442_v63, %v8562_v22  ;;  %2762 = vmatpush1.bf16.msra.mxu0 %v7760_v50  ;;  %1174 = vst [vmem:[#allocation2 + $0xc8] sm:$0xf0] %v1098_v0  ;;  %v999_v11 = vmax.f32 %v880_v1, 0.0  ;;  %v884_v12 = vadd.f32 %v883_v7, %v8562_v22  ;;  %v558_v13 = vmax.f32 %v439_v57, 0.0  ;;  %v7781_v57 = vld [vmem:[%s11131_s3 + $0x240] ss:$8 sps:$4 sm:$0xff]  }
 0x112   :  { %v559_v9 = vmax.f32 %v441_v62, 0.0  ;;  %2763 = vmatprep.subr.bf16.mxu0 %v7768_v54  ;;  %v1000_v15 = vmax.f32 %v882_v6, 0.0 }
 0x113   :  { %v560_v14 = vmax.f32 %v443_v3, 0.0  ;;  %v1001_v17 = vmax.f32 %v884_v12, 0.0 }
 0x114   :  { %v605_v16 = vpack.c.bf16 %v559_v9, %v557_v8  ;;  %v8601_v23 = vpack.c.bf16 %v1000_v15, %v998_v5  ;;  %v7787_v15 = vld [vmem:[%s11131_s3 + $0x250] ss:$8 sps:$4 sm:$0xff]  }
 0x115   :  { %v606_v18 = vpack.c.bf16 %v560_v14, %v558_v13  ;;  %v446_v19 = vpop.f32.mrb[8].mxu0  ;;  %2764 = vmatpush1.bf16.msra.mxu0 %v7766_v4  ;;  %v8607_v27 = vpack.c.bf16 %v1001_v17, %v999_v11  ;;  %v887_v28 = vpop.f32.mrb[8].mxu1 }
 0x116   :  { %v447_v24 = vadd.f32 %v446_v19, %v8560_v21  ;;  %v448_v25 = vpop.f32.mrb[9].mxu0  ;;  %2765 = vmatprep.subr.bf16.mxu0 %v7774_v10  ;;  %v1099_v31 = vrot.slane %v8601_v23, 4  ;;  %v888_v32 = vadd.f32 %v887_v28, %v8560_v21  ;;  %v889_v33 = vpop.f32.mrb[9].mxu1 }
 0x117   :  { %v449_v29 = vadd.f32 %v448_v25, %v8562_v22  ;;  %v450_v30 = vpop.f32.mrb[10].mxu0  ;;  %1448 = vmatprep.mubr.bf16.mxu0 %v606_v18  ;;  %v1101_v36 = vrot.slane %v8607_v27, 4  ;;  %v890_v37 = vadd.f32 %v889_v33, %v8562_v22  ;;  %v891_v38 = vpop.f32.mrb[10].mxu1 }
 0x118   :  { %v451_v34 = vadd.f32 %v450_v30, %v8560_v21  ;;  %v452_v35 = vpop.f32.mrb[11].mxu0  ;;  %1449 = vmatmul.mubr.bf16.gmra.mrb[56].mxu0 %v605_v16  ;;  %v561_v39 = vmax.f32 %v447_v24, 0.0  ;;  %v8622_v42 = vsel %vm1096_vm1, %v1097_v59, %v1099_v31  ;;  %v893_v43 = vpop.f32.mrb[11].mxu1  ;;  %v1002_v47 = vmax.f32 %v888_v32, 0.0 }
 0x119   :  { %v453_v40 = vadd.f32 %v452_v35, %v8562_v22  ;;  %2766 = vmatpush1.bf16.msra.mxu0 %v7772_v20  ;;  %1175 = vst [vmem:[#allocation2 + $0xd0] sm:$0xff] %v8622_v42  ;;  %v8631_v46 = vsel %vm1096_vm1, %v1098_v0, %v1101_v36  ;;  %v892_v48 = vadd.f32 %v891_v38, %v8560_v21  ;;  %v562_v49 = vmax.f32 %v449_v29, 0.0  ;;  %v7792_v20 = vld [vmem:[%s11131_s3 + $0x264] ss:$8 sps:$4 sm:$0xff]  }
 0x11a   :  { %v563_v44 = vmax.f32 %v451_v34, 0.0  ;;  %2767 = vmatprep.subr.bf16.mxu0 %v7777_v26  ;;  %1176 = vst [vmem:[#allocation2 + $0xd8] sm:$0xff] %v8631_v46  ;;  %v1003_v51 = vmax.f32 %v890_v37, 0.0  ;;  %v894_v52 = vadd.f32 %v893_v43, %v8562_v22  ;;  %v2561_v0 = vrot.slane %v8631_v46, 4  ;;  %v7790_v37 = vld [vmem:[%s11131_s3 + $0x260] ss:$8 sps:$4 sm:$0xff]  }
 0x11b   :  { %v564_v50 = vmax.f32 %v453_v40, 0.0  ;;  %v1004_v54 = vmax.f32 %v892_v48, 0.0  ;;  %v2558_v6 = vrot.slane %v8622_v42, 4  ;;  %v7798_v40 = vld [vmem:[%s11131_s3 + $0x274] ss:$8 sps:$4 sm:$0xff]  }
 0x11c   :  { %v607_v53 = vpack.c.bf16 %v563_v44, %v561_v39  ;;  %v1005_v58 = vmax.f32 %v894_v52, 0.0 }
 0x11d   :  { %v608_v55 = vpack.c.bf16 %v564_v50, %v562_v49  ;;  %v456_v56 = vpop.f32.mrb[12].mxu0  ;;  %2768 = vmatpush1.bf16.msra.mxu0 %v7775_v41  ;;  %v8643_v62 = vpack.c.bf16 %v1004_v54, %v1002_v47  ;;  %v897_v63 = vpop.f32.mrb[12].mxu1 }
 0x11e   :  { %v457_v59 = vadd.f32 %v456_v56, %v8560_v21  ;;  %v458_v60 = vpop.f32.mrb[13].mxu0  ;;  %2769 = vmatprep.subr.bf16.mxu0 %v7783_v45  ;;  %v8647_v3 = vpack.c.bf16 %v1005_v58, %v1003_v51  ;;  %v898_v4 = vadd.f32 %v897_v63, %v8560_v21  ;;  %v899_v5 = vpop.f32.mrb[13].mxu1 }
 0x11f   :  { %v459_v1 = vadd.f32 %v458_v60, %v8562_v22  ;;  %v460_v2 = vpop.f32.mrb[14].mxu0  ;;  %1458 = vmatprep.mubr.bf16.mxu0 %v608_v55  ;;  %v1103_v10 = vrot.slane %v8643_v62, 4  ;;  %v900_v11 = vadd.f32 %v899_v5, %v8562_v22  ;;  %v901_v12 = vpop.f32.mrb[14].mxu1 }
 0x120   :  { %v565_v7 = vmax.f32 %v457_v59, 0.0  ;;  %v461_v8 = vadd.f32 %v460_v2, %v8560_v21  ;;  %v462_v9 = vpop.f32.mrb[15].mxu0  ;;  %1459 = vmatmul.mubr.bf16.gmra.mrb[60].mxu0 %v607_v53  ;;  %v1105_v16 = vrot.slane %v8647_v3, 4  ;;  %v1006_v17 = vmax.f32 %v898_v4, 0.0  ;;  %v903_v18 = vpop.f32.mrb[15].mxu1 }
 0x121   :  { %v566_v13 = vmax.f32 %v459_v1, 0.0  ;;  %v463_v14 = vadd.f32 %v462_v9, %v8562_v22  ;;  %2770 = vmatpush1.bf16.msra.mxu0 %v7781_v57  ;;  %v8665_v24 = vsel %vm1096_vm1, %v1099_v31, %v1103_v10  ;;  %v1007_v25 = vmax.f32 %v900_v11, 0.0  ;;  %v7796_v59 = vld [vmem:[%s11131_s3 + $0x270] ss:$8 sps:$4 sm:$0xff]   ;;  %v7801_v1 = vld [vmem:[%s11131_s3 + $0x284] ss:$8 sps:$4 sm:$0xff]  }
 0x122   :  { %v567_v19 = vmax.f32 %v461_v8, 0.0  ;;  %2771 = vmatprep.subr.bf16.mxu0 %v7789_v61  ;;  %v902_v26 = vadd.f32 %v901_v12, %v8560_v21  ;;  %v8671_v29 = vsel %vm1096_vm1, %v1101_v36, %v1105_v16  ;;  %v904_v30 = vadd.f32 %v903_v18, %v8562_v22 }
 0x123   :  { %v568_v28 = vmax.f32 %v463_v14, 0.0  ;;  %v2563_v32 = vrot.slane %v8665_v24, 4  ;;  %v2565_v23 = vrot.slane %v8671_v29, 4 }
 0x124   :  { %v609_v33 = vpack.c.bf16 %v567_v19, %v565_v7  ;;  %v1008_v34 = vmax.f32 %v902_v26, 0.0  ;;  %v1009_v38 = vmax.f32 %v904_v30, 0.0 }
 0x125   :  { %v610_v35 = vpack.c.bf16 %v568_v28, %v566_v13  ;;  %v466_v31 = vpop.f32.mrb[16].mxu0  ;;  %2772 = vmatpush1.bf16.msra.mxu0 %v7787_v15  ;;  %v8682_v27 = vsel %vm1096_vm1, %v2558_v6, %v2563_v32  ;;  %v907_v43 = vpop.f32.mrb[16].mxu1  ;;  %v8693_v44 = vsel %vm1096_vm1, %v2561_v0, %v2565_v23 }
 0x126   :  { %v467_v36 = vadd.f32 %v466_v31, %v8560_v21  ;;  %v468_v39 = vpop.f32.mrb[17].mxu0  ;;  %2773 = vmatprep.subr.bf16.mxu0 %v7792_v20  ;;  %v8688_v41 = vpack.c.bf16 %v1008_v34, %v1006_v17  ;;  %v8696_v48 = vpack.c.bf16 %v1009_v38, %v1007_v25  ;;  %v908_v49 = vadd.f32 %v907_v43, %v8560_v21  ;;  %v909_v50 = vpop.f32.mrb[17].mxu1  ;;  %v7807_v20 = vld [vmem:[%s11131_s3 + $0x294] ss:$8 sps:$4 sm:$0xff]  }
 0x127   :  { %v469_v45 = vadd.f32 %v468_v39, %v8562_v22  ;;  %v470_v47 = vpop.f32.mrb[18].mxu0  ;;  %1468 = vmatprep.mubr.bf16.mxu0 %v610_v35  ;;  %v910_v55 = vadd.f32 %v909_v50, %v8562_v22  ;;  %v911_v56 = vpop.f32.mrb[18].mxu1 }
 0x128   :  { %v569_v51 = vmax.f32 %v467_v36, 0.0  ;;  %v471_v52 = vadd.f32 %v470_v47, %v8560_v21  ;;  %v472_v53 = vpop.f32.mrb[19].mxu0  ;;  %1469 = vmatmul.mubr.bf16.gmra.mrb[64].mxu0 %v609_v33  ;;  %v1107_v54 = vrot.slane %v8688_v41, 4  ;;  %v1109_v60 = vrot.slane %v8696_v48, 4  ;;  %v913_v62 = vpop.f32.mrb[19].mxu1 }
 0x129   :  { %v570_v57 = vmax.f32 %v469_v45, 0.0  ;;  %v473_v58 = vadd.f32 %v472_v53, %v8562_v22  ;;  %2774 = vmatpush1.bf16.msra.mxu0 %v7790_v37  ;;  %v1010_v61 = vmax.f32 %v908_v49, 0.0  ;;  %v1011_v3 = vmax.f32 %v910_v55, 0.0  ;;  %v7813_v48 = vld [vmem:[%s11131_s3 + $0x2a4] ss:$8 sps:$4 sm:$0xff]  }
 0x12a   :  { %v571_v63 = vmax.f32 %v471_v52, 0.0  ;;  %2775 = vmatprep.subr.bf16.mxu0 %v7798_v40  ;;  %v8711_v2 = vsel %vm1096_vm1, %v1103_v10, %v1107_v54  ;;  %v912_v4 = vadd.f32 %v911_v56, %v8560_v21  ;;  %v8715_v7 = vsel %vm1096_vm1, %v1105_v16, %v1109_v60  ;;  %v7799_v10 = vld [vmem:[%s11131_s3 + $0x280] ss:$8 sps:$4 sm:$0xff]   ;;  %v7805_v40 = vld [vmem:[%s11131_s3 + $0x290] ss:$8 sps:$4 sm:$0xff]  }
 0x12b   :  { %v572_v5 = vmax.f32 %v473_v58, 0.0  ;;  %v914_v8 = vadd.f32 %v913_v62, %v8562_v22  ;;  %v2567_v9 = vrot.slane %v8711_v2, 4  ;;  %v2569_v13 = vrot.slane %v8715_v7, 4  ;;  %v8765_v58 = vld [vmem:[#allocation2 + $0xc8] sm:$0xf0] }
 0x12c   :  { %v611_v11 = vpack.c.bf16 %v571_v63, %v569_v51  ;;  %v1012_v12 = vmax.f32 %v912_v4, 0.0  ;;  %v7811_v63 = vld [vmem:[%s11131_s3 + $0x2a0] ss:$8 sps:$4 sm:$0xff]   ;;  %v8026_v2 = vmov 0  }
 0x12d   :  { %v612_v14 = vpack.c.bf16 %v572_v5, %v570_v57  ;;  %v476_v15 = vpop.f32.mrb[20].mxu0  ;;  %2776 = vmatpush1.bf16.msra.mxu0 %v7796_v59  ;;  %v1013_v17 = vmax.f32 %v914_v8, 0.0  ;;  %v8724_v18 = vsel %vm1096_vm1, %v2563_v32, %v2567_v9  ;;  %v917_v25 = vpop.f32.mrb[20].mxu1  ;;  %v8735_v26 = vsel %vm1096_vm1, %v2565_v23, %v2569_v13  ;;  %53 = vst [vmem:[#allocation2 + $0x198] sm:$0xff] %v8026_v2  ;;  %v7816_v5 = vld [vmem:[%s11131_s3 + $0x2b4] ss:$8 sps:$4 sm:$0xff]  }
 0x12e   :  { %v477_v16 = vadd.f32 %v476_v15, %v8560_v21  ;;  %v478_v19 = vpop.f32.mrb[21].mxu0  ;;  %2777 = vmatprep.subr.bf16.mxu0 %v7801_v1  ;;  %v8730_v24 = vpack.c.bf16 %v1012_v12, %v1010_v61  ;;  %v918_v32 = vadd.f32 %v917_v25, %v8560_v21  ;;  %v919_v33 = vpop.f32.mrb[21].mxu1  ;;  %52 = vst [vmem:[#allocation2 + $0x190] sm:$0xff] %v8026_v2  ;;  %57 = vst.msk [vmem:[#allocation4 + $0x38] sm:$0xff] %vm56_vm0, %v8026_v2 }
 0x12f   :  { %v479_v28 = vadd.f32 %v478_v19, %v8562_v22  ;;  %v480_v29 = vpop.f32.mrb[22].mxu0  ;;  %1478 = vmatprep.mubr.bf16.mxu0 %v612_v14  ;;  %v8738_v30 = vpack.c.bf16 %v1013_v17, %v1011_v3  ;;  %v920_v38 = vadd.f32 %v919_v33, %v8562_v22  ;;  %v921_v23 = vpop.f32.mrb[22].mxu1  ;;  %v2560_v15 = vrot.slane %v8765_v58, 4  ;;  %v7814_v33 = vld [vmem:[%s11131_s3 + $0x2b0] ss:$8 sps:$4 sm:$0xff]  }
 0x130   :  { %v573_v34 = vmax.f32 %v477_v16, 0.0  ;;  %v481_v35 = vadd.f32 %v480_v29, %v8560_v21  ;;  %v482_v31 = vpop.f32.mrb[23].mxu0  ;;  %1479 = vmatmul.mubr.bf16.gmra.mrb[68].mxu0 %v611_v11  ;;  %v1111_v37 = vrot.slane %v8730_v24, 4  ;;  %v1014_v43 = vmax.f32 %v918_v32, 0.0  ;;  %v923_v45 = vpop.f32.mrb[23].mxu1 }
 0x131   :  { %v574_v36 = vmax.f32 %v479_v28, 0.0  ;;  %v483_v39 = vadd.f32 %v482_v31, %v8562_v22  ;;  %2778 = vmatpush1.bf16.msra.mxu0 %v7799_v10  ;;  %v1113_v41 = vrot.slane %v8738_v30, 4  ;;  %v1015_v50 = vmax.f32 %v920_v38, 0.0  ;;  %v7825_v58 = vld [vmem:[%s11131_s3 + $0x2d4] ss:$8 sps:$4 sm:$0xff]  }
 0x132   :  { %v575_v47 = vmax.f32 %v481_v35, 0.0  ;;  %2779 = vmatprep.subr.bf16.mxu0 %v7807_v20  ;;  %v8755_v49 = vsel %vm1096_vm1, %v1107_v54, %v1111_v37  ;;  %v922_v51 = vadd.f32 %v921_v23, %v8560_v21  ;;  %v924_v55 = vadd.f32 %v923_v45, %v8562_v22  ;;  %v7822_v23 = vld [vmem:[%s11131_s3 + $0x2c4] ss:$8 sps:$4 sm:$0xff]  }
 0x133   :  { %v576_v52 = vmax.f32 %v483_v39, 0.0  ;;  %v8761_v53 = vsel %vm1096_vm1, %v1109_v60, %v1113_v41  ;;  %v2571_v56 = vrot.slane %v8755_v49, 4 }
 0x134   :  { %v613_v57 = vpack.c.bf16 %v575_v47, %v573_v34  ;;  %v1016_v59 = vmax.f32 %v922_v51, 0.0  ;;  %v2573_v54 = vrot.slane %v8761_v53, 4  ;;  %v1017_v1 = vmax.f32 %v924_v55, 0.0  ;;  %v7823_v53 = vld [vmem:[%s11131_s3 + $0x2d0] ss:$8 sps:$4 sm:$0xff]  }
 0x135   :  { %v614_v61 = vpack.c.bf16 %v576_v52, %v574_v36  ;;  %v486_v62 = vpop.f32.mrb[24].mxu0  ;;  %2780 = vmatpush1.bf16.msra.mxu0 %v7805_v40  ;;  %v8772_v60 = vsel %vm1096_vm1, %v2567_v9, %v2571_v56  ;;  %v927_v9 = vpop.f32.mrb[24].mxu1  ;;  %v7820_v52 = vld [vmem:[%s11131_s3 + $0x2c0] ss:$8 sps:$4 sm:$0xff]  }
 0x136   :  { %v487_v3 = vadd.f32 %v486_v62, %v8560_v21  ;;  %v488_v4 = vpop.f32.mrb[25].mxu0  ;;  %2781 = vmatprep.subr.bf16.mxu0 %v7813_v48  ;;  %v8782_v8 = vpack.c.bf16 %v1016_v59, %v1014_v43  ;;  %v8789_v11 = vsel %vm1096_vm1, %v2569_v13, %v2573_v54  ;;  %v8793_v10 = vpack.c.bf16 %v1017_v1, %v1015_v50  ;;  %v929_v16 = vpop.f32.mrb[25].mxu1 }
 0x137   :  { %v489_v12 = vadd.f32 %v488_v4, %v8562_v22  ;;  %v490_v14 = vpop.f32.mrb[26].mxu0  ;;  %1488 = vmatprep.mubr.bf16.mxu0 %v614_v61  ;;  %v928_v17 = vadd.f32 %v927_v9, %v8560_v21  ;;  %v930_v13 = vadd.f32 %v929_v16, %v8562_v22  ;;  %v931_v28 = vpop.f32.mrb[26].mxu1  ;;  %v2562_v59 = vsel %vm1096_vm1, %v2560_v15, %v2561_v0  ;;  %v8860_v16 = vld [vmem:[#allocation2 + $0xc0] sm:$0xf0] }
 0x138   :  { %v577_v19 = vmax.f32 %v487_v3, 0.0  ;;  %v491_v20 = vadd.f32 %v490_v14, %v8560_v21  ;;  %v492_v25 = vpop.f32.mrb[27].mxu0  ;;  %1489 = vmatmul.mubr.bf16.gmra.mrb[72].mxu0 %v613_v57  ;;  %v1115_v7 = vrot.slane %v8782_v8, 4  ;;  %v1117_v34 = vrot.slane %v8793_v10, 4  ;;  %v933_v31 = vpop.f32.mrb[27].mxu1 }
 0x139   :  { %v578_v29 = vmax.f32 %v489_v12, 0.0  ;;  %v493_v32 = vadd.f32 %v492_v25, %v8562_v22  ;;  %2782 = vmatpush1.bf16.msra.mxu0 %v7811_v63  ;;  %v1018_v35 = vmax.f32 %v928_v17, 0.0  ;;  %v1019_v39 = vmax.f32 %v930_v13, 0.0 }
 0x13a   :  { %v579_v38 = vmax.f32 %v491_v20, 0.0  ;;  %2783 = vmatprep.subr.bf16.mxu0 %v7816_v5  ;;  %v8812_v36 = vsel %vm1096_vm1, %v1111_v37, %v1115_v7  ;;  %v932_v40 = vadd.f32 %v931_v28, %v8560_v21  ;;  %v8820_v45 = vsel %vm1096_vm1, %v1113_v41, %v1117_v34  ;;  %v7831_v28 = vld [vmem:[%s11131_s3 + $0x2e4] ss:$8 sps:$4 sm:$0xff]  }
 0x13b   :  { %v580_v43 = vmax.f32 %v493_v32, 0.0  ;;  %v934_v47 = vadd.f32 %v933_v31, %v8562_v22  ;;  %v2575_v48 = vrot.slane %v8812_v36, 4  ;;  %v2577_v37 = vrot.slane %v8820_v45, 4  ;;  %v7829_v31 = vld [vmem:[%s11131_s3 + $0x2e0] ss:$8 sps:$4 sm:$0xff]  }
 0x13c   :  { %v615_v49 = vpack.c.bf16 %v579_v38, %v577_v19  ;;  %v1020_v24 = vmax.f32 %v932_v40, 0.0  ;;  %v2557_v40 = vrot.slane %v8860_v16, 4 }
 0x13d   :  { %v616_v50 = vpack.c.bf16 %v580_v43, %v578_v29  ;;  %v496_v51 = vpop.f32.mrb[28].mxu0  ;;  %2784 = vmatpush1.bf16.msra.mxu0 %v7814_v33  ;;  %v1021_v55 = vmax.f32 %v934_v47, 0.0  ;;  %v8831_v30 = vsel %vm1096_vm1, %v2571_v56, %v2575_v48  ;;  %v937_v62 = vpop.f32.mrb[28].mxu1  ;;  %v8847_v56 = vsel %vm1096_vm1, %v2573_v54, %v2577_v37 }
 0x13e   :  { %641 = vst [vmem:[#allocation2 + $0x60] sm:$0xff] %v615_v49  ;;  %v497_v41 = vadd.f32 %v496_v51, %v8560_v21  ;;  %v498_v57 = vpop.f32.mrb[29].mxu0  ;;  %2785 = vmatprep.subr.bf16.mxu0 %v7822_v23  ;;  %v8840_v61 = vpack.c.bf16 %v1020_v24, %v1018_v35  ;;  %v938_v46 = vadd.f32 %v937_v62, %v8560_v21  ;;  %v939_v0 = vpop.f32.mrb[29].mxu1 }
 0x13f   :  { %642 = vst [vmem:[#allocation2 + $0x68] sm:$0xff] %v616_v50  ;;  %v499_v63 = vadd.f32 %v498_v57, %v8562_v22  ;;  %v500_v1 = vpop.f32.mrb[30].mxu0  ;;  %1498 = vmatprep.mubr.bf16.mxu0 %v616_v50  ;;  %v8850_v3 = vpack.c.bf16 %v1021_v55, %v1019_v39  ;;  %v940_v12 = vadd.f32 %v939_v0, %v8562_v22  ;;  %v941_v14 = vpop.f32.mrb[30].mxu1  ;;  %v7837_v39 = vld [vmem:[%s11131_s3 + $0x2f4] ss:$8 sps:$4 sm:$0xff]  }
 0x140   :  { %v581_v4 = vmax.f32 %v497_v41, 0.0  ;;  %v501_v5 = vadd.f32 %v500_v1, %v8560_v21  ;;  %v502_v9 = vpop.f32.mrb[31].mxu0  ;;  %1499 = vmatmul.mubr.bf16.gmra.mrb[76].mxu0 %v615_v49  ;;  %v1119_v54 = vrot.slane %v8840_v61, 4  ;;  %v1022_v20 = vmax.f32 %v938_v46, 0.0  ;;  %v943_v25 = vpop.f32.mrb[31].mxu1 }
 0x141   :  { %v582_v15 = vmax.f32 %v499_v63, 0.0  ;;  %v503_v17 = vadd.f32 %v502_v9, %v8562_v22  ;;  %2786 = vmatpush1.bf16.msra.mxu0 %v7820_v52  ;;  %2793 = vmatprep.mubr.bf16.mxu0 %v2562_v59  ;;  %v1121_v19 = vrot.slane %v8850_v3, 4  ;;  %v1023_v32 = vmax.f32 %v940_v12, 0.0  ;;  %v7835_v12 = vld [vmem:[%s11131_s3 + $0x2f0] ss:$8 sps:$4 sm:$0xff]  }
 0x142   :  { %v583_v13 = vmax.f32 %v501_v5, 0.0  ;;  %2787 = vmatprep.subr.bf16.mxu0 %v7825_v58  ;;  %v8871_v29 = vsel %vm1096_vm1, %v1115_v7, %v1119_v54  ;;  %v942_v33 = vadd.f32 %v941_v14, %v8560_v21  ;;  %v944_v8 = vadd.f32 %v943_v25, %v8562_v22 }
 0x143   :  { %v584_v35 = vmax.f32 %v503_v17, 0.0  ;;  %1185 = vst [vmem:[#allocation2 + $0x120] sm:$0xff] %v8871_v29  ;;  %v8883_v38 = vsel %vm1096_vm1, %v1117_v34, %v1121_v19  ;;  %v2579_v7 = vrot.slane %v8871_v29, 4 }
 0x144   :  { %v8887_v23 = vpack.c.bf16 %v583_v13, %v581_v4  ;;  %1186 = vst [vmem:[#allocation2 + $0x128] sm:$0xff] %v8883_v38  ;;  %v1024_v43 = vmax.f32 %v942_v33, 0.0  ;;  %v1025_v49 = vmax.f32 %v944_v8, 0.0  ;;  %v2581_v24 = vrot.slane %v8883_v38, 4  ;;  %v7840_v13 = vld [vmem:[%s11131_s3 + $0x314] ss:$8 sps:$4 sm:$0xff]  }
 0x145   :  { %v8894_v10 = vpack.c.bf16 %v584_v35, %v582_v15  ;;  %v506_v34 = vpop.f32.mrb[32].mxu0  ;;  %2788 = vmatpush1.bf16.msra.mxu0 %v7823_v53  ;;  %v1815_v47 = vld [vmem:[#allocation2 + $0x60] sm:$0xfc]  ;;  %v8902_v50 = vsel %vm1096_vm1, %v2575_v48, %v2579_v7  ;;  %v947_v59 = vpop.f32.mrb[32].mxu1  ;;  %v7874_v38 = vld [vmem:[%s11131_s3 + $0x3d0] ss:$8 sps:$4 sm:$0xff]  }
 0x146   :  { %v507_v51 = vadd.f32 %v506_v34, %v8560_v21  ;;  %v508_v52 = vpop.f32.mrb[33].mxu0  ;;  %2789 = vmatprep.subr.bf16.mxu0 %v7831_v28  ;;  %v1816_v55 = vld [vmem:[#allocation2 + $0x68] sm:$0xfc]  ;;  %v1881_v41 = vrot.slane %v1815_v47, 2  ;;  %v1882_v57 = vrot.slane %v8887_v23, 2  ;;  %v8906_v58 = vpack.c.bf16 %v1024_v43, %v1022_v20  ;;  %v949_v0 = vpop.f32.mrb[33].mxu1 }
 0x147   :  { %v509_v62 = vadd.f32 %v508_v52, %v8562_v22  ;;  %v510_v63 = vpop.f32.mrb[34].mxu0  ;;  %v1884_v1 = vrot.slane %v1816_v55, 2  ;;  %v1885_v36 = vrot.slane %v8894_v10, 2  ;;  %v7832_v48 = vld [vmem:[%s11131_s3 + $0x300] ss:$8 sps:$4 sm:$0xff]   ;;  %v8913_v46 = vpack.c.bf16 %v1025_v49, %v1023_v32  ;;  %v951_v15 = vpop.f32.mrb[34].mxu1 }
 0x148   :  { %v585_v4 = vmax.f32 %v507_v51, 0.0  ;;  %v511_v5 = vadd.f32 %v510_v63, %v8560_v21  ;;  %v512_v9 = vpop.f32.mrb[35].mxu0  ;;  %v1883_v53 = vsel %vm1578_vm2, %v1881_v41, %v1882_v57  ;;  %v1123_v14 = vrot.slane %v8906_v58, 4  ;;  %v953_v32 = vpop.f32.mrb[35].mxu1  ;;  %v7843_v49 = vld [vmem:[%s11131_s3 + $0x324] ss:$8 sps:$4 sm:$0xff]  }
 0x149   :  { %v586_v17 = vmax.f32 %v509_v62, 0.0  ;;  %v513_v20 = vadd.f32 %v512_v9, %v8562_v22  ;;  %2790 = vmatpush1.bf16.msra.mxu0 %v7829_v31  ;;  %v1886_v25 = vsel %vm1578_vm2, %v1884_v1, %v1885_v36  ;;  %v1125_v28 = vrot.slane %v8913_v46, 4  ;;  %v7846_v23 = vld [vmem:[%s11131_s3 + $0x334] ss:$8 sps:$4 sm:$0xff]  }
 0x14a   :  { %v587_v33 = vmax.f32 %v511_v5, 0.0  ;;  %2117 = vmatprep.mubr.bf16.mxu1 %v1886_v25  ;;  %2791 = vmatprep.subr.bf16.mxu0 %v7837_v39  ;;  %v8936_v35 = vsel %vm1096_vm1, %v1119_v54, %v1123_v14  ;;  %v8943_v31 = vsel %vm1096_vm1, %v2577_v37, %v2581_v24  ;;  %v948_v8 = vadd.f32 %v947_v59, %v8560_v21  ;;  %v7838_v37 = vld [vmem:[%s11131_s3 + $0x310] ss:$8 sps:$4 sm:$0xff]   ;;  %v3168_v29 = vld [vmem:[#allocation2 + $0x120] sm:$0xc0] }
 0x14b   :  { %v588_v43 = vmax.f32 %v513_v20, 0.0  ;;  %2118 = vmatmul.mubr.bf16.vlgmr.msra.gmra.mrb[52].mxu1 %v1883_v53  ;;  %1187 = vst [vmem:[#allocation2 + $0x130] sm:$0xff] %v8936_v35  ;;  %v8952_v61 = vsel %vm1096_vm1, %v1121_v19, %v1125_v28  ;;  %v950_v54 = vadd.f32 %v949_v0, %v8562_v22  ;;  %v952_v45 = vadd.f32 %v951_v15, %v8560_v21 }
 0x14c   :  { %v8956_v39 = vpack.c.bf16 %v587_v33, %v585_v4  ;;  %3439 = vmatpush1.bf16.msra.mxu1 %v7832_v48  ;;  %1188 = vst [vmem:[#allocation2 + $0x138] sm:$0xff] %v8952_v61  ;;  %v1026_v34 = vmax.f32 %v948_v8, 0.0  ;;  %v954_v47 = vadd.f32 %v953_v32, %v8562_v22  ;;  %v2559_v59 = vsel %vm1096_vm1, %v2557_v40, %v2558_v6  ;;  %v7841_v6 = vld [vmem:[%s11131_s3 + $0x320] ss:$8 sps:$4 sm:$0xff]  }
 0x14d   :  { %v8963_v3 = vpack.c.bf16 %v588_v43, %v586_v17  ;;  %v516_v19 = vpop.f32.mrb[36].mxu0  ;;  %2792 = vmatpush1.bf16.msra.mxu0 %v7835_v12  ;;  %3440 = vmatprep.subr.bf16.mxu1 %v7840_v13  ;;  %v1027_v51 = vmax.f32 %v950_v54, 0.0  ;;  %v1028_v52 = vmax.f32 %v952_v45, 0.0  ;;  %v957_v1 = vpop.f32.mrb[36].mxu1 }
 0x14e   :  { %v517_v55 = vadd.f32 %v516_v19, %v8560_v21  ;;  %v518_v41 = vpop.f32.mrb[37].mxu0  ;;  %v1887_v62 = vrot.slane %v8956_v39, 2  ;;  %v1029_v63 = vmax.f32 %v954_v47, 0.0  ;;  %v958_v9 = vadd.f32 %v957_v1, %v8560_v21  ;;  %v959_v53 = vpop.f32.mrb[37].mxu1  ;;  %v7849_v47 = vld [vmem:[%s11131_s3 + $0x344] ss:$8 sps:$4 sm:$0xff]  }
 0x14f   :  { %v519_v48 = vadd.f32 %v518_v41, %v8562_v22  ;;  %v520_v0 = vpop.f32.mrb[38].mxu0  ;;  %v1889_v4 = vrot.slane %v8963_v3, 2  ;;  %v8977_v5 = vpack.c.bf16 %v1028_v52, %v1026_v34  ;;  %v961_v17 = vpop.f32.mrb[38].mxu1  ;;  %v7852_v39 = vld [vmem:[%s11131_s3 + $0x354] ss:$8 sps:$4 sm:$0xff]  }
 0x150   :  { %v589_v12 = vmax.f32 %v517_v55, 0.0  ;;  %v521_v42 = vadd.f32 %v520_v0, %v8560_v21  ;;  %v522_v16 = vpop.f32.mrb[39].mxu0  ;;  %2794 = vmatmul.mubr.bf16.vlgmr.msra.gmra.mrb[80].mxu0 %v2559_v59  ;;  %3441 = vmatpush1.bf16.msra.mxu1 %v7838_v37  ;;  %v1888_v40 = vsel %vm1578_vm2, %v1882_v57, %v1887_v62  ;;  %v8989_v15 = vpack.c.bf16 %v1029_v63, %v1027_v51  ;;  %v963_v13 = vpop.f32.mrb[39].mxu1  ;;  %v7844_v37 = vld [vmem:[%s11131_s3 + $0x330] ss:$8 sps:$4 sm:$0xff]  }
 0x151   :  { %v523_v20 = vadd.f32 %v522_v16, %v8562_v22  ;;  %2803 = vmatprep.mubr.bf16.mxu0 %v8693_v44  ;;  %v1890_v25 = vsel %vm1578_vm2, %v1885_v36, %v1889_v4  ;;  %3442 = vmatprep.subr.bf16.mxu1 %v7843_v49  ;;  %v1127_v57 = vrot.slane %v8977_v5, 4  ;;  %v590_v32 = vmax.f32 %v519_v48, 0.0 }
 0x152   :  { %v591_v33 = vmax.f32 %v521_v42, 0.0  ;;  %2127 = vmatprep.mubr.bf16.mxu1 %v1890_v25  ;;  %v1129_v8 = vrot.slane %v8989_v15, 4  ;;  %v960_v44 = vadd.f32 %v959_v53, %v8562_v22  ;;  %v1030_v36 = vmax.f32 %v958_v9, 0.0 }
 0x153   :  { %v592_v43 = vmax.f32 %v523_v20, 0.0  ;;  %2128 = vmatmul.mubr.bf16.gmra.mrb[56].mxu1 %v1888_v40  ;;  %v9007_v10 = vsel %vm1096_vm1, %v1123_v14, %v1127_v57  ;;  %v962_v54 = vadd.f32 %v961_v17, %v8560_v21  ;;  %v964_v49 = vadd.f32 %v963_v13, %v8562_v22 }
 0x154   :  { %v9010_v45 = vpack.c.bf16 %v591_v33, %v589_v12  ;;  %3443 = vmatpush1.bf16.msra.mxu1 %v7841_v6  ;;  %v9020_v34 = vsel %vm1096_vm1, %v1125_v28, %v1129_v8  ;;  %v1031_v46 = vmax.f32 %v960_v44, 0.0  ;;  %v7847_v12 = vld [vmem:[%s11131_s3 + $0x340] ss:$8 sps:$4 sm:$0xff]   ;;  %v3238_v16 = vrot.slane %v8952_v61, 6 }
 0x155   :  { %v9022_v58 = vpack.c.bf16 %v592_v43, %v590_v32  ;;  %v526_v14 = vpop.f32.mrb[40].mxu0  ;;  %3444 = vmatprep.subr.bf16.mxu1 %v7846_v23  ;;  %v1032_v19 = vmax.f32 %v962_v54, 0.0  ;;  %v967_v28 = vpop.f32.mrb[40].mxu1  ;;  %v1033_v48 = vmax.f32 %v964_v49, 0.0  ;;  %v7850_v43 = vld [vmem:[%s11131_s3 + $0x350] ss:$8 sps:$4 sm:$0xff]  }
 0x156   :  { %v527_v51 = vadd.f32 %v526_v14, %v8560_v21  ;;  %v528_v52 = vpop.f32.mrb[41].mxu0  ;;  %v1891_v55 = vrot.slane %v9010_v45, 2  ;;  %v969_v0 = vpop.f32.mrb[41].mxu1  ;;  %v968_v13 = vadd.f32 %v967_v28, %v8560_v21  ;;  %v7858_v45 = vld [vmem:[%s11131_s3 + $0x374] ss:$8 sps:$4 sm:$0xff]   ;;  %v3234_v61 = vrot.slane %v3168_v29, 6 }
 0x157   :  { %v529_v41 = vadd.f32 %v528_v52, %v8562_v22  ;;  %v530_v59 = vpop.f32.mrb[42].mxu0  ;;  %v1893_v63 = vrot.slane %v9022_v58, 2  ;;  %v9032_v1 = vpack.c.bf16 %v1032_v19, %v1030_v36  ;;  %v971_v6 = vpop.f32.mrb[42].mxu1  ;;  %v9056_v23 = vpack.c.bf16 %v1033_v48, %v1031_v46 }
 0x158   :  { %v593_v5 = vmax.f32 %v527_v51, 0.0  ;;  %v531_v9 = vadd.f32 %v530_v59, %v8560_v21  ;;  %v532_v53 = vpop.f32.mrb[43].mxu0  ;;  %2804 = vmatmul.mubr.bf16.gmra.mrb[84].mxu0 %v8682_v27  ;;  %3445 = vmatpush1.bf16.msra.mxu1 %v7844_v37  ;;  %v1892_v42 = vsel %vm1578_vm2, %v1887_v62, %v1891_v55  ;;  %v973_v20 = vpop.f32.mrb[43].mxu1  ;;  %v970_v33 = vadd.f32 %v969_v0, %v8562_v22 }
 0x159   :  { %v594_v40 = vmax.f32 %v529_v41, 0.0  ;;  %v533_v17 = vadd.f32 %v532_v53, %v8562_v22  ;;  %2813 = vmatprep.mubr.bf16.mxu0 %v8735_v26  ;;  %v1894_v27 = vsel %vm1578_vm2, %v1889_v4, %v1893_v63  ;;  %3446 = vmatprep.subr.bf16.mxu1 %v7849_v47  ;;  %v1131_v62 = vrot.slane %v9032_v1, 4  ;;  %v7855_v47 = vld [vmem:[%s11131_s3 + $0x364] ss:$8 sps:$4 sm:$0xff]  }
 0x15a   :  { %v595_v25 = vmax.f32 %v531_v9, 0.0  ;;  %2137 = vmatprep.mubr.bf16.mxu1 %v1894_v27  ;;  %v3235_v26 = vrot.slane %v8936_v35, 6  ;;  %v3242_v4 = vrot.slane %v9020_v34, 6  ;;  %v1133_v36 = vrot.slane %v9056_v23, 4 }
 0x15b   :  { %v596_v32 = vmax.f32 %v533_v17, 0.0  ;;  %2138 = vmatmul.mubr.bf16.gmra.mrb[60].mxu1 %v1892_v42  ;;  %v9063_v3 = vsel %vm1096_vm1, %v1127_v57, %v1131_v62  ;;  %v1034_v54 = vmax.f32 %v968_v13, 0.0  ;;  %v3240_v37 = vrot.slane %v9007_v10, 6  ;;  %v7862_v10 = vld [vmem:[%s11131_s3 + $0x390] ss:$8 sps:$4 sm:$0xff]  }
 0x15c   :  { %v9067_v44 = vpack.c.bf16 %v595_v25, %v593_v5  ;;  %3447 = vmatpush1.bf16.msra.mxu1 %v7847_v12  ;;  %v9084_v19 = vsel %vm3233_vm3, %v3238_v16, %v3242_v4  ;;  %v1035_v49 = vmax.f32 %v970_v33, 0.0  ;;  %v972_v51 = vadd.f32 %v971_v6, %v8560_v21 }
 0x15d   :  { %v9074_v14 = vpack.c.bf16 %v596_v32, %v594_v40  ;;  %v536_v57 = vpop.f32.mrb[44].mxu0  ;;  %3448 = vmatprep.subr.bf16.mxu1 %v7852_v39  ;;  %v9094_v41 = vsel %vm1096_vm1, %v1129_v8, %v1133_v36  ;;  %v9101_v59 = vsel %vm3233_vm3, %v3235_v26, %v3240_v37  ;;  %v977_v48 = vpop.f32.mrb[44].mxu1  ;;  %v974_v12 = vadd.f32 %v973_v20, %v8562_v22  ;;  %v7853_v40 = vld [vmem:[%s11131_s3 + $0x360] ss:$8 sps:$4 sm:$0xff]  }
 0x15e   :  { %v537_v52 = vadd.f32 %v536_v57, %v8560_v21  ;;  %v538_v46 = vpop.f32.mrb[45].mxu0  ;;  %v1895_v28 = vrot.slane %v9067_v44, 2  ;;  %v1036_v53 = vmax.f32 %v972_v51, 0.0  ;;  %v979_v15 = vpop.f32.mrb[45].mxu1  ;;  %v978_v27 = vadd.f32 %v977_v48, %v8560_v21  ;;  %v7864_v44 = vld [vmem:[%s11131_s3 + $0x394] ss:$8 sps:$4 sm:$0xff]  }
 0x15f   :  { %v539_v0 = vadd.f32 %v538_v46, %v8562_v22  ;;  %v540_v5 = vpop.f32.mrb[46].mxu0  ;;  %v1897_v9 = vrot.slane %v9074_v14, 2  ;;  %v981_v39 = vpop.f32.mrb[46].mxu1  ;;  %v1037_v33 = vmax.f32 %v974_v12, 0.0 }
 0x160   :  { %v597_v42 = vmax.f32 %v537_v52, 0.0  ;;  %v541_v8 = vadd.f32 %v540_v5, %v8560_v21  ;;  %v542_v6 = vpop.f32.mrb[47].mxu0  ;;  %2814 = vmatmul.mubr.bf16.gmra.mrb[88].mxu0 %v8724_v18  ;;  %3449 = vmatpush1.bf16.msra.mxu1 %v7850_v43  ;;  %v1896_v17 = vsel %vm1578_vm2, %v1891_v55, %v1895_v28  ;;  %v9127_v55 = vpack.c.bf16 %v1036_v53, %v1034_v54  ;;  %v983_v13 = vpop.f32.mrb[47].mxu1  ;;  %v7856_v54 = vld [vmem:[%s11131_s3 + $0x370] ss:$8 sps:$4 sm:$0xff]  }
 0x161   :  { %v598_v20 = vmax.f32 %v539_v0, 0.0  ;;  %v543_v25 = vadd.f32 %v542_v6, %v8562_v22  ;;  %2823 = vmatprep.mubr.bf16.mxu0 %v8789_v11  ;;  %v1898_v18 = vsel %vm1578_vm2, %v1893_v63, %v1897_v9  ;;  %3450 = vmatprep.subr.bf16.mxu1 %v7855_v47  ;;  %v1038_v43 = vmax.f32 %v978_v27, 0.0  ;;  %v7861_v53 = vld [vmem:[%s11131_s3 + $0x384] ss:$8 sps:$4 sm:$0xff]  }
 0x162   :  { %v599_v32 = vmax.f32 %v541_v8, 0.0  ;;  %2147 = vmatprep.mubr.bf16.mxu1 %v1898_v18  ;;  %v980_v11 = vadd.f32 %v979_v15, %v8562_v22  ;;  %v1135_v58 = vrot.slane %v9127_v55, 4  ;;  %v982_v63 = vadd.f32 %v981_v39, %v8560_v21 }
 0x163   :  { %v600_v57 = vmax.f32 %v543_v25, 0.0  ;;  %2148 = vmatmul.mubr.bf16.gmra.mrb[64].mxu1 %v1896_v17  ;;  %v3246_v47 = vrot.slane %v9094_v41, 6  ;;  %v1065_v52 = vpack.c.bf16 %v1037_v33, %v1035_v49  ;;  %v984_v48 = vadd.f32 %v983_v13, %v8562_v22  ;;  %v7865_v41 = vld [vmem:[%s11131_s3 + $0x3a0] ss:$8 sps:$4 sm:$0xff]  }
 0x164   :  { %v9133_v51 = vpack.c.bf16 %v599_v32, %v597_v42  ;;  %3451 = vmatpush1.bf16.msra.mxu1 %v7853_v40  ;;  %v1039_v46 = vmax.f32 %v980_v11, 0.0  ;;  %v1136_v12 = vsel %vm1096_vm1, %v1131_v62, %v1135_v58  ;;  %v1040_v15 = vmax.f32 %v982_v63, 0.0 }
 0x165   :  { %v9139_v0 = vpack.c.bf16 %v600_v57, %v598_v20  ;;  %v546_v5 = vpop.f32.mrb[48].mxu0  ;;  %3452 = vmatprep.subr.bf16.mxu1 %v7858_v45  ;;  %v9152_v49 = vsel %vm3233_vm3, %v3242_v4, %v3246_v47  ;;  %v1137_v40 = vrot.slane %v1065_v52, 4  ;;  %v1041_v17 = vmax.f32 %v984_v48, 0.0  ;;  %v987_v27 = vpop.f32.mrb[48].mxu1  ;;  %v7859_v4 = vld [vmem:[%s11131_s3 + $0x380] ss:$8 sps:$4 sm:$0xff]  }
 0x166   :  { %v547_v42 = vadd.f32 %v546_v5, %v8560_v21  ;;  %v548_v8 = vpop.f32.mrb[49].mxu0  ;;  %v1899_v6 = vrot.slane %v9133_v51, 2  ;;  %v1066_v20 = vpack.c.bf16 %v1040_v15, %v1038_v43  ;;  %v3244_v25 = vrot.slane %v9063_v3, 6  ;;  %v989_v34 = vpop.f32.mrb[49].mxu1  ;;  %v7876_v51 = vld [vmem:[%s11131_s3 + $0x3d4] ss:$8 sps:$4 sm:$0xff]  }
 0x167   :  { %v549_v1 = vadd.f32 %v548_v8, %v8562_v22  ;;  %v1901_v62 = vrot.slane %v9139_v0, 2  ;;  %v550_v39 = vpop.f32.mrb[50].mxu0  ;;  %v1138_v3 = vsel %vm1096_vm1, %v1133_v36, %v1137_v40  ;;  %v1067_v13 = vpack.c.bf16 %v1041_v17, %v1039_v46  ;;  %v991_v32 = vpop.f32.mrb[50].mxu1  ;;  %v2507_v17 = vld [vmem:[#allocation2 + $0x138] sm:$0xf] }
 0x168   :  { %v601_v18 = vmax.f32 %v547_v42, 0.0  ;;  %2824 = vmatmul.mubr.bf16.gmra.mrb[92].mxu0 %v8772_v60  ;;  %3453 = vmatpush1.bf16.msra.mxu1 %v7856_v54  ;;  %v1900_v45 = vsel %vm1578_vm2, %v1895_v28, %v1899_v6  ;;  %v551_v55 = vpop.f32.mrb[51].mxu0  ;;  %v1139_v28 = vrot.slane %v1066_v20, 4  ;;  %v9183_v23 = vsel %vm3233_vm3, %v3240_v37, %v3244_v25  ;;  %v992_v36 = vpop.f32.mrb[51].mxu1  ;;  %v7868_v39 = vld [vmem:[%s11131_s3 + $0x3b0] ss:$8 sps:$4 sm:$0xff]  }
 0x169   :  { %v602_v33 = vmax.f32 %v549_v1, 0.0  ;;  %v1902_v60 = vsel %vm1578_vm2, %v1897_v9, %v1901_v62  ;;  %3454 = vmatprep.subr.bf16.mxu1 %v7861_v53  ;;  %2833 = vmatprep.mubr.bf16.mxu0 %v8847_v56  ;;  %v1141_v11 = vrot.slane %v1067_v13, 4  ;;  %v988_v14 = vadd.f32 %v987_v27, %v8560_v21  ;;  %v7867_v21 = vld [vmem:[%s11131_s3 + $0x3a4] ss:$8 sps:$4 sm:$0xff]   ;;  %v2506_v36 = vld [vmem:[#allocation2 + $0x130] sm:$0xf] }
 0x16a   :  { %v627_v43 = vpack.c.bf16 %v601_v18, %v601_v18  ;;  %2157 = vmatprep.mubr.bf16.mxu1 %v1902_v60  ;;  %v990_v9 = vadd.f32 %v989_v34, %v8562_v22  ;;  %v1140_v56 = vsel %vm1096_vm1, %v1135_v58, %v1139_v28  ;;  %v3250_v63 = vrot.slane %v1138_v3, 6  ;;  %v7873_v13 = vld [vmem:[%s11131_s3 + $0x3c4] ss:$8 sps:$4 sm:$0xff]  }
 0x16b   :  { %v628_v57 = vpack.c.bf16 %v602_v33, %v602_v33  ;;  %2158 = vmatmul.mubr.bf16.gmra.mrb[68].mxu1 %v1900_v45  ;;  %v3248_v54 = vrot.slane %v1136_v12, 6  ;;  %v1142_v37 = vsel %vm1096_vm1, %v1137_v40, %v1141_v11  ;;  %v1042_v52 = vmax.f32 %v988_v14, 0.0  ;;  %v7870_v40 = vld [vmem:[%s11131_s3 + $0x3b4] ss:$8 sps:$4 sm:$0xff]  }
 0x16c   :  { %653 = vst [vmem:[#allocation2 + $0xc0] sm:$0xf] %v627_v43  ;;  %3455 = vmatpush1.bf16.msra.mxu1 %v7859_v4  ;;  %v1043_v46 = vmax.f32 %v990_v9, 0.0  ;;  %v3252_v48 = vrot.slane %v1140_v56, 6  ;;  %v9198_v22 = vsel %vm3233_vm3, %v3246_v47, %v3250_v63  ;;  %v3254_v5 = vrot.slane %v1142_v37, 6 }
 0x16d   :  { %654 = vst [vmem:[#allocation2 + $0xc8] sm:$0xf] %v628_v57  ;;  %3456 = vmatprep.subr.bf16.mxu1 %v7864_v44  ;;  %v9201_v58 = vsel %vm3233_vm3, %v3244_v25, %v3248_v54  ;;  %v1068_v53 = vpack.c.bf16 %v1042_v52, %v1042_v52  ;;  %v2585_v4 = vrot.slane %v2507_v17, 4  ;;  %v7871_v44 = vld [vmem:[%s11131_s3 + $0x3c0] ss:$8 sps:$4 sm:$0xff]  }
 0x16e   :  { %v1069_v12 = vpack.c.bf16 %v1043_v46, %v1043_v46  ;;  %v9204_v15 = vsel %vm3233_vm3, %v3248_v54, %v3252_v48  ;;  %v9207_v42 = vsel %vm3233_vm3, %v3250_v63, %v3254_v5  ;;  %v3169_v43 = vld [vmem:[#allocation2 + $0x128] sm:$0xc0]  ;;  %v7877_v56 = vld [vmem:[%s11131_s3 + $0x3e0] ss:$8 sps:$4 sm:$0xff]   ;;  %v7882_v63 = vld [vmem:[%s11131_s3 + $0x3f4] ss:$8 sps:$4 sm:$0xff]  }
 0x16f   :  { %v1143_v47 = vrot.slane %v1068_v53, 4  ;;  %v3183_v54 = vld [vmem:[#allocation2 + $0x198] sm:$0x3f] }
 0x170   :  { %2834 = vmatmul.mubr.bf16.gmra.mrb[96].mxu0 %v8831_v30  ;;  %3457 = vmatpush1.bf16.msra.mxu1 %v7862_v10  ;;  %v1145_v8 = vrot.slane %v1069_v12, 4  ;;  %v3262_v35 = vrot.slane %v3183_v54, 6 }
 0x171   :  { %3458 = vmatprep.subr.bf16.mxu1 %v7867_v21  ;;  %2843 = vmatprep.mubr.bf16.mxu0 %v8943_v31  ;;  %v9218_v27 = vsel %vm1096_vm1, %v1139_v28, %v1143_v47  ;;  %v1830_v31 = vld [vmem:[#allocation2 + $0xd8] sm:$0x3]  ;;  %v2586_v28 = vsel %vm1096_vm1, %v2581_v24, %v2585_v4  ;;  %v7879_v24 = vld [vmem:[%s11131_s3 + $0x3e4] ss:$8 sps:$4 sm:$0xff]  }
 0x172   :  { %v9221_v30 = vsel %vm1096_vm1, %v1141_v11, %v1145_v8  ;;  %v3256_v25 = vrot.slane %v9218_v27, 6  ;;  %v1909_v33 = vrot.slane %v1830_v31, 2  ;;  %v3237_v11 = vrot.slane %v3169_v43, 6 }
 0x173   :  { %v1827_v1 = vld [vmem:[#allocation2 + $0xc0] sm:$0xff]  ;;  %v3258_v20 = vrot.slane %v9221_v30, 6 }
 0x174   :  { %v1828_v34 = vld [vmem:[#allocation2 + $0xc8] sm:$0xff]  ;;  %v1903_v18 = vrot.slane %v1827_v1, 2  ;;  %3459 = vmatpush1.bf16.msra.mxu1 %v7865_v41  ;;  %v3257_v3 = vsel %vm3233_vm3, %v3252_v48, %v3256_v25  ;;  %v3239_v9 = vsel %vm3233_vm3, %v3237_v11, %v3238_v16  ;;  %v3236_v16 = vsel %vm3233_vm3, %v3234_v61, %v3235_v26 }
 0x175   :  { %v1905_v45 = vrot.slane %v1828_v34, 2  ;;  %3460 = vmatprep.subr.bf16.mxu1 %v7870_v40  ;;  %v3259_v55 = vsel %vm3233_vm3, %v3254_v5, %v3258_v20  ;;  %v3263_v26 = vsel %vm3233_vm3, %v3258_v20, %v3262_v35 }
 0x176   :  { %v1904_v60 = vsel %vm1578_vm2, %v1899_v6, %v1903_v18  ;;  %v1829_v6 = vld [vmem:[#allocation2 + $0xd0] sm:$0x3] }
 0x177   :  { %v1906_v32 = vsel %vm1578_vm2, %v1901_v62, %v1905_v45  ;;  %v1910_v0 = vsel %vm1578_vm2, %v1905_v45, %v1909_v33  ;;  %v2583_v62 = vrot.slane %v2506_v36, 4 }
 0x178   :  { %2167 = vmatprep.mubr.bf16.mxu1 %v1906_v32  ;;  %3461 = vmatpush1.bf16.msra.mxu1 %v7868_v39 }
 0x179   :  { %2168 = vmatmul.mubr.bf16.gmra.mrb[72].mxu1 %v1904_v60  ;;  %2844 = vmatmul.mubr.bf16.gmra.mrb[100].mxu0 %v8902_v50  ;;  %v1907_v50 = vrot.slane %v1829_v6, 2  ;;  %v2584_v14 = vsel %vm1096_vm1, %v2579_v7, %v2583_v62  ;;  %v7880_v7 = vld [vmem:[%s11131_s3 + $0x3f0] ss:$8 sps:$4 sm:$0xff]   ;;  %s8027_s3 = smov 64  }
 0x17a   :  { %2177 = vmatprep.mubr.bf16.mxu1 %v1910_v0  ;;  %3462 = vmatprep.subr.bf16.mxu1 %v7873_v13 }
 0x17b   :  { %2853 = vmatprep.mubr.bf16.mxu0 %v2586_v28  ;;  %v1908_v57 = vsel %vm1578_vm2, %v1903_v18, %v1907_v50 }
 0x17c   :  { %3463 = vmatpush1.bf16.msra.mxu1 %v7871_v44 }
 0x17d   :  { %3464 = vmatprep.subr.bf16.mxu1 %v7876_v51 }
 0x180   :  { %3465 = vmatpush1.bf16.msra.mxu1 %v7874_v38 }
 0x181   :  { %2178 = vmatmul.mubr.bf16.gmra.mrb[76].mxu1 %v1908_v57  ;;  %3466 = vmatprep.subr.bf16.mxu1 %v7879_v24 }
 0x182   :  { %2854 = vmatmul.mubr.bf16.gmra.mrb[104].mxu0 %v2584_v14  ;;  %3470 = vmatprep.mubr.bf16.mxu1 %v3239_v9 }
 0x183   :  { %4005 = vmatprep.mubr.bf16.mxu0 %v8026_v2 }
 0x184   :  { %3467 = vmatpush1.bf16.msra.mxu1 %v7877_v56 }
 0x185   :  { %3468 = vmatprep.subr.bf16.mxu1 %v7882_v63 }
 0x188   :  { %3469 = vmatpush1.bf16.msra.mxu1 %v7880_v7 }
 0x18b   :  { %3471 = vmatmul.mubr.bf16.vlgmr.msra.gmra.mrb[80].mxu1 %v3236_v16 }
 0x18c   :  { %3480 = vmatprep.mubr.bf16.mxu1 %v9084_v19  ;;  %v3182_v19 = vld [vmem:[#allocation2 + $0x190] sm:$0x3f] }
 0x193   :  { %3481 = vmatmul.mubr.bf16.gmra.mrb[84].mxu1 %v9101_v59  ;;  %v3260_v59 = vrot.slane %v3182_v19, 6 }
 0x194   :  { %3490 = vmatprep.mubr.bf16.mxu1 %v9152_v49 }
 0x195   :  { %v3261_v49 = vsel %vm3233_vm3, %v3256_v25, %v3260_v59 }
 0x19b   :  { %3491 = vmatmul.mubr.bf16.gmra.mrb[88].mxu1 %v9183_v23 }
 0x19c   :  { %3500 = vmatprep.mubr.bf16.mxu1 %v9198_v22 }
 0x1a3   :  { %3501 = vmatmul.mubr.bf16.gmra.mrb[92].mxu1 %v9201_v58 }
 0x1a4   :  { %3510 = vmatprep.mubr.bf16.mxu1 %v9207_v42 }
 0x1ab   :  { %3511 = vmatmul.mubr.bf16.gmra.mrb[96].mxu1 %v9204_v15 }
 0x1ac   :  { %3520 = vmatprep.mubr.bf16.mxu1 %v3259_v55 }
 0x1b3   :  { %3521 = vmatmul.mubr.bf16.gmra.mrb[100].mxu1 %v3257_v3 }
 0x1b4   :  { %3530 = vmatprep.mubr.bf16.mxu1 %v3263_v26 }
 0x1bb   :  { %3531 = vmatmul.mubr.bf16.gmra.mrb[104].mxu1 %v3261_v49 }
 0x1bc   :  { %4394 = vmatprep.mubr.bf16.mxu1 %v8026_v2 }
 0x1e3   :  { %v9295_v23 = vpop.f32.mrb[52].mxu0 }
 0x1e4   :  { %1509 = vst [vmem:[#allocation3] sm:$0xff] %v9295_v23  ;;  %v1442_v10 = vpop.f32.mrb[53].mxu0 }
 0x1e5   :  { %v9298_v37 = vpop.f32.mrb[54].mxu0 }
 0x1e6   :  { %v1446_v52 = vpop.f32.mrb[55].mxu0  ;;  %v1580_v58 = vrot.slane %v9298_v37, 2 }
 0x1e7   :  { %1512 = vst [vmem:[#allocation3 + $0x18] sm:$0xff] %v1446_v52 }
 0x1eb   :  { %v9300_v46 = vpop.f32.mrb[56].mxu0  ;;  %v1563_v48 = vld [vmem:[#allocation3] sm:$0xfc] }
 0x1ec   :  { %v9302_v21 = vpop.f32.mrb[57].mxu0  ;;  %v1579_v22 = vrot.slane %v1563_v48, 2  ;;  %v1582_v5 = vrot.slane %v9300_v46, 2 }
 0x1ed   :  { %v9306_v2 = vpop.f32.mrb[58].mxu0  ;;  %v1739_v41 = vrot.slane %v9302_v21, 4  ;;  %v11146_v17 = vrot.slane %v9302_v21, 2 }
 0x1ee   :  { %v1456_v53 = vpop.f32.mrb[59].mxu0  ;;  %v1581_v12 = vsel %vm1578_vm2, %v1579_v22, %v1580_v58  ;;  %v1583_v15 = vsel %vm1578_vm2, %v1580_v58, %v1582_v5  ;;  %v1733_v42 = vld [vmem:[#allocation3 + $0x18] sm:$0xf0]  ;;  %v1584_v47 = vrot.slane %v9306_v2, 2 }
 0x1ef   :  { %1604 = vrot.lane.b32.xlu0 %v1581_v12, %s8027_s3  ;;  %v1738_v8 = vrot.slane %v1733_v42, 4  ;;  %v1741_v40 = vrot.slane %v1456_v53, 4  ;;  %v1685_v27 = vrot.slane %v1456_v53, 2 }
 0x1f0   :  { %v1585_v30 = vsel %vm1578_vm2, %v1582_v5, %v1584_v47 }
 0x1f1   :  { %v1740_v1 = vsel %vm1096_vm1, %v1738_v8, %v1739_v41  ;;  %v1742_v39 = vsel %vm1096_vm1, %v1739_v41, %v1741_v40  ;;  %v9320_v20 = vsel %vm1578_vm2, %v11146_v17, %v1685_v27 }
 0x1f2   :  { %1763 = vrot.lane.b32.xlu1 %v1740_v1, %s8027_s3 }
 0x1f3   :  { %v9323_v25 = vpop.f32.mrb[60].mxu0  ;;  %1606 = vrot.lane.b32.xlu0 %v1583_v15, %s8027_s3 }
 0x1f4   :  { %v1462_v34 = vpop.f32.mrb[61].mxu0  ;;  %v1586_v18 = vrot.slane %v9323_v25, 2 }
 0x1f5   :  { %v9327_v31 = vpop.f32.mrb[62].mxu0  ;;  %v1743_v4 = vrot.slane %v1462_v34, 4  ;;  %v1687_v45 = vrot.slane %v1462_v34, 2 }
 0x1f6   :  { %v1466_v55 = vpop.f32.mrb[63].mxu0  ;;  %1765 = vrot.lane.b32.xlu1 %v1742_v39, %s8027_s3  ;;  %v1587_v3 = vsel %vm1578_vm2, %v1584_v47, %v1586_v18  ;;  %v1588_v13 = vrot.slane %v9327_v31, 2 }
 0x1f7   :  { %1608 = vrot.lane.b32.xlu0 %v1585_v30, %s8027_s3  ;;  %v1744_v32 = vsel %vm1096_vm1, %v1741_v40, %v1743_v4  ;;  %v1745_v33 = vrot.slane %v1466_v55, 4  ;;  %v9335_v60 = vsel %vm1578_vm2, %v1685_v27, %v1687_v45  ;;  %v1689_v44 = vrot.slane %v1466_v55, 2 }
 0x1f8   :  { %v1589_v28 = vsel %vm1578_vm2, %v1586_v18, %v1588_v13 }
 0x1f9   :  { %v1746_v36 = vsel %vm1096_vm1, %v1743_v4, %v1745_v33  ;;  %v9340_v43 = vsel %vm1578_vm2, %v1687_v45, %v1689_v44 }
 0x1fa   :  { %1610 = vrot.lane.b32.xlu1 %v1587_v3, %s8027_s3 }
 0x1fb   :  { %v9343_v0 = vpop.f32.mrb[64].mxu0  ;;  %1767 = vrot.lane.b32.xlu0 %v1744_v32, %s8027_s3 }
 0x1fc   :  { %v1472_v51 = vpop.f32.mrb[65].mxu0  ;;  %v1590_v6 = vrot.slane %v9343_v0, 2 }
 0x1fd   :  { %v9347_v62 = vpop.f32.mrb[66].mxu0  ;;  %v1747_v11 = vrot.slane %v1472_v51, 4  ;;  %v1691_v38 = vrot.slane %v1472_v51, 2 }
 0x1fe   :  { %v1476_v24 = vpop.f32.mrb[67].mxu0  ;;  %1769 = vrot.lane.b32.xlu1 %v1746_v36, %s8027_s3  ;;  %v1591_v50 = vsel %vm1578_vm2, %v1588_v13, %v1590_v6  ;;  %v1592_v14 = vrot.slane %v9347_v62, 2 }
 0x1ff   :  { %1612 = vrot.lane.b32.xlu0 %v1589_v28, %s8027_s3  ;;  %v1748_v9 = vsel %vm1096_vm1, %v1745_v33, %v1747_v11  ;;  %v1749_v57 = vrot.slane %v1476_v24, 4  ;;  %v9355_v56 = vsel %vm1578_vm2, %v1689_v44, %v1691_v38  ;;  %v1693_v63 = vrot.slane %v1476_v24, 2 }
 0x200   :  { %v1593_v29 = vsel %vm1578_vm2, %v1590_v6, %v1592_v14 }
 0x201   :  { %v1750_v7 = vsel %vm1096_vm1, %v1747_v11, %v1749_v57  ;;  %v9360_v61 = vsel %vm1578_vm2, %v1691_v38, %v1693_v63 }
 0x202   :  { %1614 = vrot.lane.b32.xlu1 %v1591_v50, %s8027_s3 }
 0x203   :  { %v9363_v16 = vpop.f32.mrb[68].mxu0  ;;  %1771 = vrot.lane.b32.xlu0 %v1748_v9, %s8027_s3 }
 0x204   :  { %11194 = vst [vmem:[#allocation9_spill] sm:$0xff] %v9363_v16  ;;  %v1482_v54 = vpop.f32.mrb[69].mxu0  ;;  %v1594_v35 = vrot.slane %v9363_v16, 2 }
 0x205   :  { %v9367_v26 = vpop.f32.mrb[70].mxu0  ;;  %v1751_v19 = vrot.slane %v1482_v54, 4  ;;  %v1695_v59 = vrot.slane %v1482_v54, 2 }
 0x206   :  { %11195 = vst [vmem:[#allocation10_spill] sm:$0xff] %v9367_v26  ;;  %v1486_v49 = vpop.f32.mrb[71].mxu0  ;;  %1773 = vrot.lane.b32.xlu1 %v1750_v7, %s8027_s3  ;;  %v1595_v10 = vsel %vm1578_vm2, %v1592_v14, %v1594_v35  ;;  %v1596_v52 = vrot.slane %v9367_v26, 2 }
 0x207   :  { %1616 = vrot.lane.b32.xlu0 %v1593_v29, %s8027_s3  ;;  %v1752_v48 = vsel %vm1096_vm1, %v1749_v57, %v1751_v19  ;;  %v1753_v22 = vrot.slane %v1486_v49, 4  ;;  %v9375_v58 = vsel %vm1578_vm2, %v1693_v63, %v1695_v59  ;;  %v1697_v5 = vrot.slane %v1486_v49, 2 }
 0x208   :  { %v1597_v53 = vsel %vm1578_vm2, %v1594_v35, %v1596_v52  ;;  %v9422_v35 = vld [vmem:[#allocation3 + $0x18] sm:$0xfc] }
 0x209   :  { %v1754_v12 = vsel %vm1096_vm1, %v1751_v19, %v1753_v22  ;;  %v9380_v15 = vsel %vm1578_vm2, %v1695_v59, %v1697_v5 }
 0x20a   :  { %1618 = vrot.lane.b32.xlu1 %v1595_v10, %s8027_s3 }
 0x20b   :  { %v9383_v42 = vpop.f32.mrb[72].mxu0  ;;  %1775 = vrot.lane.b32.xlu0 %v1752_v48, %s8027_s3 }
 0x20c   :  { %11196 = vst [vmem:[#allocation11_spill] sm:$0xff] %v9383_v42  ;;  %v1492_v41 = vpop.f32.mrb[73].mxu0  ;;  %v1598_v47 = vrot.slane %v9383_v42, 2 }
 0x20d   :  { %v9387_v8 = vpop.f32.mrb[74].mxu0  ;;  %v1755_v40 = vrot.slane %v1492_v41, 4  ;;  %v1699_v27 = vrot.slane %v1492_v41, 2 }
 0x20e   :  { %11197 = vst [vmem:[#allocation12_spill] sm:$0xff] %v9387_v8  ;;  %v1496_v30 = vpop.f32.mrb[75].mxu0  ;;  %1777 = vrot.lane.b32.xlu1 %v1754_v12, %s8027_s3  ;;  %v1599_v1 = vsel %vm1578_vm2, %v1596_v52, %v1598_v47  ;;  %v1600_v39 = vrot.slane %v9387_v8, 2 }
 0x20f   :  { %1620 = vrot.lane.b32.xlu0 %v1597_v53, %s8027_s3  ;;  %v1756_v34 = vsel %vm1096_vm1, %v1753_v22, %v1755_v40  ;;  %v1757_v18 = vrot.slane %v1496_v30, 4  ;;  %v9395_v4 = vsel %vm1578_vm2, %v1697_v5, %v1699_v27  ;;  %v1701_v45 = vrot.slane %v1496_v30, 2 }
 0x210   :  { %11198 = vst [vmem:[#allocation13_spill] sm:$0xff] %v9395_v4  ;;  %v1601_v55 = vsel %vm1578_vm2, %v1598_v47, %v1600_v39 }
 0x211   :  { %v1758_v3 = vsel %vm1096_vm1, %v1755_v40, %v1757_v18  ;;  %v9400_v13 = vsel %vm1578_vm2, %v1699_v27, %v1701_v45 }
 0x212   :  { %11199 = vst [vmem:[#allocation14_spill] sm:$0xff] %v9400_v13  ;;  %1622 = vrot.lane.b32.xlu1 %v1599_v1, %s8027_s3 }
 0x213   :  { %v1500_v32 = vpop.f32.mrb[76].mxu0  ;;  %1779 = vrot.lane.b32.xlu0 %v1756_v34, %s8027_s3 }
 0x214   :  { %1533 = vst [vmem:[#allocation3 + $0xc0] sm:$0xff] %v1500_v32  ;;  %v1502_v33 = vpop.f32.mrb[77].mxu0 }
 0x215   :  { %v1504_v44 = vpop.f32.mrb[78].mxu0  ;;  %v1759_v28 = vrot.slane %v1502_v33, 4  ;;  %v1703_v36 = vrot.slane %v1502_v33, 2 }
 0x216   :  { %v1506_v51 = vpop.f32.mrb[79].mxu0  ;;  %1781 = vrot.lane.b32.xlu1 %v1758_v3, %s8027_s3 }
 0x217   :  { %1536 = vst [vmem:[#allocation3 + $0xd8] sm:$0xff] %v1506_v51  ;;  %1624 = vrot.lane.b32.xlu0 %v1601_v55, %s8027_s3  ;;  %v1760_v6 = vsel %vm1096_vm1, %v1757_v18, %v1759_v28  ;;  %v1761_v11 = vrot.slane %v1506_v51, 4  ;;  %v9408_v38 = vsel %vm1578_vm2, %v1701_v45, %v1703_v36 }
 0x218   :  { %11200 = vst [vmem:[#allocation15_spill] sm:$0xff] %v9408_v38 }
 0x219   :  { %v1762_v24 = vsel %vm1096_vm1, %v1759_v28, %v1761_v11 }
 0x21b   :  { %v1564_v50 = vld [vmem:[#allocation3 + $0xc0] sm:$0x3f] }
 0x21c   :  { %v1602_v14 = vrot.slane %v1564_v50, 2 }
 0x21e   :  { %v9411_v9 = vpop.f32.mrb[52].mxu1  ;;  %1628 = vrot.lane.b32.xlu0 %v1602_v14, %s8027_s3  ;;  %v1603_v57 = vsel %vm1578_vm2, %v1600_v39, %v1602_v14  ;;  %v9415_v63 = vld [vmem:[#allocation3 + $0xd8] sm:$0x3f] }
 0x21f   :  { %11201 = vst [vmem:[#allocation16_spill] sm:$0xff] %v9415_v63  ;;  %2188 = vst [vmem:[#allocation3] sm:$0xff] %v9411_v9  ;;  %v2121_v29 = vpop.f32.mrb[53].mxu1  ;;  %1626 = vrot.lane.b32.xlu1 %v1603_v57, %s8027_s3  ;;  %v11145_v7 = vrot.slane %v9415_v63, 2 }
 0x220   :  { %v9420_v54 = vpop.f32.mrb[54].mxu1 }
 0x221   :  { %v2125_v19 = vpop.f32.mrb[55].mxu1  ;;  %v9427_v59 = vsel %vm1578_vm2, %v1703_v36, %v11145_v7  ;;  %v2258_v41 = vrot.slane %v9420_v54, 2 }
 0x222   :  { %11202 = vst [vmem:[#allocation17_spill] sm:$0xff] %v9427_v59  ;;  %2191 = vst [vmem:[#allocation3 + $0x18] sm:$0xff] %v2125_v19  ;;  %1783 = vrot.lane.b32.xlu0 %v1760_v6, %s8027_s3 }
 0x223   :  { %v9430_v49 = vpop.f32.mrb[80].mxu0  ;;  %1787 = vrot.lane.b32.xlu1 %v1761_v11, %s8027_s3 }
 0x224   :  { %11203 = vst [vmem:[#allocation18_spill] sm:$0xff] %v9430_v49  ;;  %v2797_v10 = vpop.f32.mrb[81].mxu0 }
 0x225   :  { %v9433_v52 = vpop.f32.mrb[82].mxu0 }
 0x226   :  { %11204 = vst [vmem:[#allocation19_spill] sm:$0xff] %v9433_v52  ;;  %v2242_v48 = vld [vmem:[#allocation3] sm:$0xfc]  ;;  %v2801_v22 = vpop.f32.mrb[83].mxu0  ;;  %v9435_v5 = vpop.f32.mrb[56].mxu1  ;;  %v2934_v11 = vrot.slane %v9433_v52, 2 }
 0x227   :  { %2864 = vst [vmem:[#allocation3] sm:$0xff] %v9430_v49  ;;  %v9438_v53 = vpop.f32.mrb[57].mxu1  ;;  %1785 = vrot.lane.b32.xlu1 %v1762_v24, %s8027_s3  ;;  %v2257_v12 = vrot.slane %v2242_v48, 2  ;;  %v2260_v47 = vrot.slane %v9435_v5, 2 }
 0x228   :  { %11205 = vst [vmem:[#allocation20_spill] sm:$0xff] %v9438_v53  ;;  %v9443_v40 = vpop.f32.mrb[58].mxu1  ;;  %v2416_v3 = vrot.slane %v9438_v53, 4  ;;  %v11144_v44 = vrot.slane %v9438_v53, 2 }
 0x229   :  { %v9445_v27 = vld [vmem:[#allocation3 + $0x18] sm:$0xfc]  ;;  %v2135_v1 = vpop.f32.mrb[59].mxu1  ;;  %v2259_v39 = vsel %vm1578_vm2, %v2257_v12, %v2258_v41  ;;  %v2261_v34 = vsel %vm1578_vm2, %v2258_v41, %v2260_v47  ;;  %v2262_v18 = vrot.slane %v9443_v40, 2 }
 0x22a   :  { %11206 = vst [vmem:[#allocation21_spill] sm:$0xff] %v9445_v27  ;;  %v2411_v30 = vld [vmem:[#allocation3 + $0x18] sm:$0xf0]  ;;  %2282 = vrot.lane.b32.xlu0 %v2259_v39, %s8027_s3  ;;  %v2363_v45 = vrot.slane %v2135_v1, 2  ;;  %v2418_v32 = vrot.slane %v2135_v1, 4 }
 0x22b   :  { %2867 = vst [vmem:[#allocation3 + $0x18] sm:$0xff] %v2801_v22  ;;  %v2415_v55 = vrot.slane %v2411_v30, 4  ;;  %v9452_v33 = vpop.f32.mrb[84].mxu0  ;;  %2284 = vrot.lane.b32.xlu1 %v2261_v34, %s8027_s3  ;;  %v2263_v28 = vsel %vm1578_vm2, %v2260_v47, %v2262_v18 }
 0x22c   :  { %11207 = vst [vmem:[#allocation22_spill] sm:$0xff] %v9452_v33  ;;  %v9457_v36 = vpop.f32.mrb[85].mxu0  ;;  %v2419_v6 = vsel %vm1096_vm1, %v2416_v3, %v2418_v32  ;;  %v2936_v24 = vrot.slane %v9452_v33, 2  ;;  %v9468_v14 = vsel %vm1578_vm2, %v11144_v44, %v2363_v45 }
 0x22d   :  { %11208 = vst [vmem:[#allocation23_spill] sm:$0xff] %v9457_v36  ;;  %v2417_v51 = vsel %vm1096_vm1, %v2415_v55, %v2416_v3  ;;  %v9463_v50 = vpop.f32.mrb[86].mxu0  ;;  %11210 = vst [vmem:[#allocation25_spill] sm:$0xff] %v9468_v14  ;;  %v11148_v41 = vrot.slane %v9457_v36, 4  ;;  %v11152_v3 = vrot.slane %v9457_v36, 2 }
 0x22e   :  { %11209 = vst [vmem:[#allocation24_spill] sm:$0xff] %v9463_v50  ;;  %v2811_v57 = vpop.f32.mrb[87].mxu0  ;;  %v9470_v29 = vpop.f32.mrb[60].mxu1  ;;  %2440 = vrot.lane.b32.xlu0 %v2417_v51, %s8027_s3  ;;  %v2918_v19 = vld [vmem:[#allocation3] sm:$0xfc]  ;;  %v2937_v10 = vsel %vm1578_vm2, %v2934_v11, %v2936_v24  ;;  %v2938_v48 = vrot.slane %v9463_v50, 2 }
 0x22f   :  { %v2141_v22 = vpop.f32.mrb[61].mxu1  ;;  %2442 = vrot.lane.b32.xlu1 %v2419_v6, %s8027_s3  ;;  %v2264_v12 = vrot.slane %v9470_v29, 2  ;;  %v3094_v47 = vrot.slane %v2811_v57, 4  ;;  %v3039_v30 = vrot.slane %v2811_v57, 2  ;;  %v2933_v7 = vrot.slane %v2918_v19, 2 }
 0x230   :  { %v9478_v1 = vpop.f32.mrb[62].mxu1  ;;  %v2365_v39 = vrot.slane %v2141_v22, 2  ;;  %v2420_v34 = vrot.slane %v2141_v22, 4  ;;  %v9481_v55 = vsel %vm1578_vm2, %v2936_v24, %v2938_v48 }
 0x231   :  { %v2145_v51 = vpop.f32.mrb[63].mxu1  ;;  %v2265_v44 = vsel %vm1578_vm2, %v2262_v18, %v2264_v12  ;;  %v9488_v6 = vsel %vm1096_vm1, %v11148_v41, %v3094_v47  ;;  %v2266_v57 = vrot.slane %v9478_v1, 2  ;;  %v9505_v41 = vsel %vm1578_vm2, %v11152_v3, %v3039_v30 }
 0x232   :  { %v2367_v17 = vrot.slane %v2145_v51, 2  ;;  %2286 = vrot.lane.b32.xlu0 %v2263_v28, %s8027_s3  ;;  %v2421_v22 = vsel %vm1096_vm1, %v2418_v32, %v2420_v34  ;;  %v2422_v24 = vrot.slane %v2145_v51, 4  ;;  %v9500_v19 = vsel %vm1578_vm2, %v2363_v45, %v2365_v39  ;;  %11213 = vst [vmem:[#allocation28_spill] sm:$0xff] %v9505_v41  ;;  %v3087_v3 = vld [vmem:[#allocation3 + $0x18] sm:$0xf0] }
 0x233   :  { %v9493_v50 = vpop.f32.mrb[88].mxu0  ;;  %2288 = vrot.lane.b32.xlu1 %v2265_v44, %s8027_s3  ;;  %v9497_v18 = vsel %vm1578_vm2, %v2264_v12, %v2266_v57  ;;  %11212 = vst [vmem:[#allocation27_spill] sm:$0xff] %v9500_v19  ;;  %v2935_v12 = vsel %vm1578_vm2, %v2933_v7, %v2934_v11  ;;  %v3091_v27 = vrot.slane %v3087_v3, 4 }
 0x234   :  { %11211 = vst [vmem:[#allocation26_spill] sm:$0xff] %v9493_v50  ;;  %v2817_v33 = vpop.f32.mrb[89].mxu0  ;;  %v2423_v28 = vsel %vm1096_vm1, %v2420_v34, %v2422_v24  ;;  %v2940_v32 = vrot.slane %v9493_v50, 2  ;;  %v9510_v51 = vsel %vm1578_vm2, %v2365_v39, %v2367_v17 }
 0x235   :  { %11214 = vst [vmem:[#allocation29_spill] sm:$0xff] %v9510_v51  ;;  %v9512_v44 = vpop.f32.mrb[90].mxu0  ;;  %v3096_v52 = vrot.slane %v2817_v33, 4  ;;  %v3041_v45 = vrot.slane %v2817_v33, 2 }
 0x236   :  { %11215 = vst [vmem:[#allocation30_spill] sm:$0xff] %v9512_v44  ;;  %v2821_v19 = vpop.f32.mrb[91].mxu0  ;;  %v9515_v49 = vpop.f32.mrb[64].mxu1  ;;  %2958 = vrot.lane.b32.xlu0 %v2935_v12, %s8027_s3  ;;  %v9519_v41 = vsel %vm1578_vm2, %v2938_v48, %v2940_v32  ;;  %v2942_v34 = vrot.slane %v9512_v44, 2 }
 0x237   :  { %v2151_v50 = vpop.f32.mrb[65].mxu1  ;;  %2960 = vrot.lane.b32.xlu1 %v2937_v10, %s8027_s3  ;;  %v2268_v39 = vrot.slane %v9515_v49, 2  ;;  %v9525_v7 = vsel %vm1096_vm1, %v3094_v47, %v3096_v52  ;;  %v3098_v33 = vrot.slane %v2821_v19, 4  ;;  %v9528_v11 = vsel %vm1578_vm2, %v3039_v30, %v3041_v45 }
 0x238   :  { %11216 = vst [vmem:[#allocation31_spill] sm:$0xff] %v9528_v11  ;;  %v9530_v51 = vpop.f32.mrb[66].mxu1  ;;  %v2369_v12 = vrot.slane %v2151_v50, 2  ;;  %v2424_v14 = vrot.slane %v2151_v50, 4  ;;  %v9533_v48 = vsel %vm1578_vm2, %v2940_v32, %v2942_v34  ;;  %v3043_v44 = vrot.slane %v2821_v19, 2 }
 0x239   :  { %11217 = vst [vmem:[#allocation32_spill] sm:$0xff] %v9530_v51  ;;  %v2155_v53 = vpop.f32.mrb[67].mxu1  ;;  %v2269_v10 = vsel %vm1578_vm2, %v2266_v57, %v2268_v39  ;;  %v9537_v59 = vsel %vm1096_vm1, %v3096_v52, %v3098_v33  ;;  %v2270_v47 = vrot.slane %v9530_v51, 2  ;;  %v11223_v11 = vrot.slane %v9457_v36, 4 }
 0x23a   :  { %v2371_v63 = vrot.slane %v2155_v53, 2  ;;  %2444 = vrot.lane.b32.xlu0 %v2421_v22, %s8027_s3  ;;  %v9542_v30 = vsel %vm1096_vm1, %v2422_v24, %v2424_v14  ;;  %v2426_v50 = vrot.slane %v2155_v53, 4  ;;  %v9545_v32 = vsel %vm1578_vm2, %v2367_v17, %v2369_v12 }
 0x23b   :  { %11218 = vst [vmem:[#allocation33_spill] sm:$0xff] %v9545_v32  ;;  %v9547_v19 = vpop.f32.mrb[92].mxu0  ;;  %2446 = vrot.lane.b32.xlu1 %v2423_v28, %s8027_s3  ;;  %v9551_v3 = vsel %vm1578_vm2, %v2268_v39, %v2270_v47  ;;  %v9554_v52 = vsel %vm1578_vm2, %v3041_v45, %v3043_v44  ;;  %v3093_v28 = vsel %vm1096_vm1, %v3091_v27, %v11223_v11 }
 0x23c   :  { %11219 = vst [vmem:[#allocation34_spill] sm:$0xff] %v9547_v19  ;;  %11220 = vst [vmem:[#allocation35_spill] sm:$0xff] %v9554_v52  ;;  %v2827_v57 = vpop.f32.mrb[93].mxu0  ;;  %v2427_v22 = vsel %vm1096_vm1, %v2424_v14, %v2426_v50  ;;  %v2944_v24 = vrot.slane %v9547_v19, 2  ;;  %v9559_v53 = vsel %vm1578_vm2, %v2369_v12, %v2371_v63 }
 0x23d   :  { %11221 = vst [vmem:[#allocation36_spill] sm:$0xff] %v9559_v53  ;;  %v9561_v17 = vpop.f32.mrb[94].mxu0  ;;  %v3100_v32 = vrot.slane %v2827_v57, 4  ;;  %v3045_v39 = vrot.slane %v2827_v57, 2 }
 0x23e   :  { %11222 = vst [vmem:[#allocation37_spill] sm:$0xff] %v9561_v17  ;;  %v2831_v8 = vpop.f32.mrb[95].mxu0  ;;  %v9566_v38 = vpop.f32.mrb[68].mxu1  ;;  %3116 = vrot.lane.b32.xlu0 %v3093_v28, %s8027_s3  ;;  %v9570_v14 = vsel %vm1578_vm2, %v2942_v34, %v2944_v24  ;;  %v2946_v45 = vrot.slane %v9561_v17, 2 }
 0x23f   :  { %11224 = vst [vmem:[#allocation38_spill] sm:$0xff] %v9566_v38  ;;  %v2161_v12 = vpop.f32.mrb[69].mxu1  ;;  %3118 = vrot.lane.b32.xlu1 %v9488_v6, %s8027_s3  ;;  %v2272_v19 = vrot.slane %v9566_v38, 2  ;;  %v9577_v27 = vsel %vm1096_vm1, %v3098_v33, %v3100_v32  ;;  %v3102_v11 = vrot.slane %v2831_v8, 4  ;;  %v9580_v57 = vsel %vm1578_vm2, %v3043_v44, %v3045_v39 }
 0x240   :  { %11225 = vst [vmem:[#allocation39_spill] sm:$0xff] %v9580_v57  ;;  %v9582_v52 = vpop.f32.mrb[70].mxu1  ;;  %v2373_v28 = vrot.slane %v2161_v12, 2  ;;  %v2428_v34 = vrot.slane %v2161_v12, 4  ;;  %v9585_v53 = vsel %vm1578_vm2, %v2944_v24, %v2946_v45  ;;  %v3047_v17 = vrot.slane %v2831_v8, 2 }
 0x241   :  { %11226 = vst [vmem:[#allocation40_spill] sm:$0xff] %v9582_v52  ;;  %v9587_v36 = vpop.f32.mrb[71].mxu1  ;;  %v9590_v6 = vsel %vm1578_vm2, %v2270_v47, %v2272_v19  ;;  %v9593_v33 = vsel %vm1096_vm1, %v3100_v32, %v3102_v11  ;;  %v2274_v42 = vrot.slane %v9582_v52, 2 }
 0x242   :  { %v2375_v44 = vrot.slane %v9587_v36, 2  ;;  %2290 = vrot.lane.b32.xlu0 %v9497_v18, %s8027_s3  ;;  %v9600_v12 = vsel %vm1096_vm1, %v2426_v50, %v2428_v34  ;;  %v2430_v8 = vrot.slane %v9587_v36, 4  ;;  %v9604_v24 = vsel %vm1578_vm2, %v2371_v63, %v2373_v28 }
 0x243   :  { %11227 = vst [vmem:[#allocation41_spill] sm:$0xff] %v9604_v24  ;;  %v9606_v47 = vpop.f32.mrb[96].mxu0  ;;  %2292 = vrot.lane.b32.xlu1 %v2269_v10, %s8027_s3  ;;  %v9610_v32 = vsel %vm1578_vm2, %v2272_v19, %v2274_v42  ;;  %v9613_v57 = vsel %vm1578_vm2, %v3045_v39, %v3047_v17 }
 0x244   :  { %11228 = vst [vmem:[#allocation42_spill] sm:$0xff] %v9606_v47  ;;  %11229 = vst [vmem:[#allocation43_spill] sm:$0xff] %v9613_v57  ;;  %v2837_v52 = vpop.f32.mrb[97].mxu0  ;;  %v9616_v18 = vsel %vm1096_vm1, %v2428_v34, %v2430_v8  ;;  %v2948_v50 = vrot.slane %v9606_v47, 2  ;;  %v9620_v36 = vsel %vm1578_vm2, %v2373_v28, %v2375_v44 }
 0x245   :  { %11230 = vst [vmem:[#allocation44_spill] sm:$0xff] %v9620_v36  ;;  %v9622_v63 = vpop.f32.mrb[98].mxu0  ;;  %v3104_v24 = vrot.slane %v2837_v52, 4  ;;  %v3049_v38 = vrot.slane %v2837_v52, 2 }
 0x246   :  { %11231 = vst [vmem:[#allocation45_spill] sm:$0xff] %v9622_v63  ;;  %v2841_v10 = vpop.f32.mrb[99].mxu0  ;;  %2962 = vrot.lane.b32.xlu0 %v9481_v55, %s8027_s3  ;;  %v9627_v19 = vsel %vm1578_vm2, %v2946_v45, %v2948_v50  ;;  %v2950_v39 = vrot.slane %v9622_v63, 2 }
 0x247   :  { %2964 = vrot.lane.b32.xlu1 %v9519_v41, %s8027_s3  ;;  %v9633_v34 = vsel %vm1096_vm1, %v3102_v11, %v3104_v24  ;;  %v3106_v28 = vrot.slane %v2841_v10, 4  ;;  %v9636_v47 = vsel %vm1578_vm2, %v3047_v17, %v3049_v38  ;;  %v3051_v52 = vrot.slane %v2841_v10, 2 }
 0x248   :  { %11232 = vst [vmem:[#allocation46_spill] sm:$0xff] %v9636_v47  ;;  %v9639_v57 = vsel %vm1578_vm2, %v2948_v50, %v2950_v39 }
 0x249   :  { %v9642_v55 = vsel %vm1096_vm1, %v3104_v24, %v3106_v28  ;;  %v9645_v45 = vsel %vm1578_vm2, %v3049_v38, %v3051_v52 }
 0x24a   :  { %11233 = vst [vmem:[#allocation47_spill] sm:$0xff] %v9645_v45  ;;  %2448 = vrot.lane.b32.xlu0 %v9542_v30, %s8027_s3 }
 0x24b   :  { %2450 = vrot.lane.b32.xlu1 %v2427_v22, %s8027_s3 }
 0x24c   :  { %v9650_v41 = vpop.f32.mrb[72].mxu1  ;;  %v9652_v11 = vpop.f32.mrb[100].mxu0 }
 0x24d   :  { %11234 = vst [vmem:[#allocation48_spill] sm:$0xff] %v9650_v41  ;;  %11235 = vst [vmem:[#allocation49_spill] sm:$0xff] %v9652_v11  ;;  %v2171_v17 = vpop.f32.mrb[73].mxu1  ;;  %v2847_v10 = vpop.f32.mrb[101].mxu0  ;;  %v2276_v50 = vrot.slane %v9650_v41, 2  ;;  %v2952_v63 = vrot.slane %v9652_v11, 2 }
 0x24e   :  { %v9656_v24 = vpop.f32.mrb[74].mxu1  ;;  %v2377_v47 = vrot.slane %v2171_v17, 2  ;;  %v9658_v38 = vpop.f32.mrb[102].mxu0  ;;  %3120 = vrot.lane.b32.xlu0 %v9525_v7, %s8027_s3  ;;  %v2432_v30 = vrot.slane %v2171_v17, 4  ;;  %v3108_v22 = vrot.slane %v2847_v10, 4  ;;  %v3053_v45 = vrot.slane %v2847_v10, 2 }
 0x24f   :  { %11236 = vst [vmem:[#allocation50_spill] sm:$0xff] %v9658_v38  ;;  %v2175_v36 = vpop.f32.mrb[75].mxu1  ;;  %v2851_v13 = vpop.f32.mrb[103].mxu0  ;;  %3122 = vrot.lane.b32.xlu1 %v9537_v59, %s8027_s3  ;;  %v9665_v41 = vsel %vm1578_vm2, %v2274_v42, %v2276_v50  ;;  %v11172_v11 = vrot.slane %v9656_v24, 2  ;;  %v9669_v26 = vsel %vm1578_vm2, %v2950_v39, %v2952_v63  ;;  %v11171_v4 = vrot.slane %v9658_v38, 2 }
 0x250   :  { %v2379_v51 = vrot.slane %v2175_v36, 2  ;;  %v9673_v7 = vsel %vm1096_vm1, %v2430_v8, %v2432_v30  ;;  %v2434_v17 = vrot.slane %v2175_v36, 4  ;;  %v9676_v10 = vsel %vm1096_vm1, %v3106_v28, %v3108_v22 }
 0x251   :  { %v9681_v42 = vsel %vm1578_vm2, %v2276_v50, %v11172_v11  ;;  %v9686_v59 = vsel %vm1578_vm2, %v2952_v63, %v11171_v4  ;;  %v3110_v39 = vrot.slane %v2851_v13, 4  ;;  %v9689_v16 = vsel %vm1578_vm2, %v2375_v44, %v2377_v47  ;;  %v9707_v44 = vld [vmem:[#allocation3 + $0xc0] sm:$0xf] }
 0x252   :  { %11237 = vst [vmem:[#allocation51_spill] sm:$0xff] %v9689_v16  ;;  %2294 = vrot.lane.b32.xlu0 %v9551_v3, %s8027_s3  ;;  %v9694_v8 = vsel %vm1096_vm1, %v2432_v30, %v2434_v17  ;;  %v9697_v36 = vsel %vm1578_vm2, %v2377_v47, %v2379_v51  ;;  %v9700_v28 = vsel %vm1578_vm2, %v3051_v52, %v3053_v45  ;;  %v3055_v50 = vrot.slane %v2851_v13, 2 }
 0x253   :  { %11238 = vst [vmem:[#allocation52_spill] sm:$0xff] %v9697_v36  ;;  %11239 = vst [vmem:[#allocation53_spill] sm:$0xff] %v9700_v28  ;;  %2296 = vrot.lane.b32.xlu1 %v9590_v6, %s8027_s3  ;;  %v9705_v63 = vsel %vm1096_vm1, %v3108_v22, %v3110_v39 }
 0x254   :  { %v2179_v4 = vpop.f32.mrb[76].mxu1  ;;  %v9710_v3 = vsel %vm1578_vm2, %v3053_v45, %v3055_v50 }
 0x255   :  { %11240 = vst [vmem:[#allocation54_spill] sm:$0xff] %v9710_v3  ;;  %2212 = vst [vmem:[#allocation3 + $0xc0] sm:$0xff] %v2179_v4  ;;  %v2181_v30 = vpop.f32.mrb[77].mxu1  ;;  %v2855_v47 = vpop.f32.mrb[104].mxu0 }
 0x256   :  { %v2183_v11 = vpop.f32.mrb[78].mxu1  ;;  %v2381_v36 = vrot.slane %v2181_v30, 2  ;;  %v9712_v52 = vpop.f32.mrb[105].mxu0  ;;  %2966 = vrot.lane.b32.xlu0 %v9533_v48, %s8027_s3  ;;  %v2436_v13 = vrot.slane %v2181_v30, 4 }
 0x257   :  { %v9716_v6 = vpop.f32.mrb[79].mxu1  ;;  %v2859_v22 = vpop.f32.mrb[106].mxu0  ;;  %2968 = vrot.lane.b32.xlu1 %v9570_v14, %s8027_s3  ;;  %v3112_v45 = vrot.slane %v9712_v52, 4  ;;  %v11173_v4 = vrot.slane %v9712_v52, 2 }
 0x258   :  { %2215 = vst [vmem:[#allocation3 + $0xd8] sm:$0xff] %v9716_v6  ;;  %v9723_v11 = vpop.f32.mrb[107].mxu0  ;;  %v9726_v3 = vsel %vm1096_vm1, %v2434_v17, %v2436_v13  ;;  %v11175_v48 = vrot.slane %v9716_v6, 4  ;;  %v9730_v30 = vsel %vm1578_vm2, %v2379_v51, %v2381_v36 }
 0x259   :  { %11241 = vst [vmem:[#allocation55_spill] sm:$0xff] %v9730_v30  ;;  %v11174_v22 = vrot.slane %v9723_v11, 4  ;;  %v9734_v14 = vsel %vm1096_vm1, %v3110_v39, %v3112_v45  ;;  %v9739_v28 = vsel %vm1578_vm2, %v3055_v50, %v11173_v4 }
 0x25a   :  { %11242 = vst [vmem:[#allocation56_spill] sm:$0xff] %v9739_v28  ;;  %2452 = vrot.lane.b32.xlu0 %v9600_v12, %s8027_s3  ;;  %v9746_v17 = vsel %vm1096_vm1, %v2436_v13, %v11175_v48 }
 0x25b   :  { %2454 = vrot.lane.b32.xlu1 %v9616_v18, %s8027_s3  ;;  %v9753_v51 = vsel %vm1096_vm1, %v3112_v45, %v11174_v22  ;;  %v1682_v18 = vrot.slane %v9422_v35, 2  ;;  %v9769_v22 = vld [vmem:[#allocation3 + $0x18] sm:$0xfc] }
 0x25c   :  { %v9755_v39 = vld [vmem:[#allocation3 + $0xc0] sm:$0xf] }
 0x25d   :  { %v9757_v50 = vld [vmem:[#allocation3 + $0xc0] sm:$0x3f] }
 0x25e   :  { %2888 = vst [vmem:[#allocation3 + $0xc0] sm:$0xff] %v2855_v47  ;;  %v3472_v4 = vpop.f32.mrb[80].mxu1  ;;  %3124 = vrot.lane.b32.xlu0 %v9577_v27, %s8027_s3  ;;  %v7883_v27 = vld [vmem:[%s11133_s5] ss:$8 sps:$4 sm:$0xff]  }
 0x25f   :  { %3541 = vst [vmem:[#allocation3] sm:$0xff] %v3472_v4  ;;  %v9761_v12 = vld [vmem:[#allocation3 + $0xd8] sm:$0x3f]  ;;  %v3474_v13 = vpop.f32.mrb[81].mxu1  ;;  %3126 = vrot.lane.b32.xlu1 %v9593_v33, %s8027_s3  ;;  %v7885_v33 = vld [vmem:[%s11133_s5 + $0x4] ss:$8 sps:$4 sm:$0xff]  }
 0x260   :  { %11243 = vst [vmem:[#allocation57_spill] sm:$0xff] %v9761_v12  ;;  %2891 = vst [vmem:[#allocation3 + $0xd8] sm:$0xff] %v9723_v11  ;;  %v9767_v45 = vpop.f32.mrb[82].mxu1  ;;  %v11177_v47 = vrot.slane %v9761_v12, 2  ;;  %v11244_v13 = vrot.slane %v9302_v21, 2  ;;  %3973 = vmatprep.subr.bf16.mxu0 %v7885_v33 }
 0x261   :  { %v3478_v48 = vpop.f32.mrb[83].mxu1  ;;  %v1605_v28 = vpop.permute.xlu0 %1604  ;;  %3974 = vmatpush1.bf16.msra.mxu0 %v7883_v27 }
 0x262   :  { %3544 = vst [vmem:[#allocation3 + $0x18] sm:$0xff] %v3478_v48  ;;  %v1643_v35 = vadd.f32 %v1605_v28, %v9295_v23  ;;  %2298 = vrot.lane.b32.xlu0 %v9610_v32, %s8027_s3  ;;  %v9784_v4 = vsel %vm1578_vm2, %v2381_v36, %v11177_v47  ;;  %v1684_v30 = vsel %vm1578_vm2, %v1682_v18, %v11244_v13  ;;  %v11178_v28 = vrot.slane %v9767_v45, 2 }
 0x263   :  { %2300 = vrot.lane.b32.xlu1 %v9665_v41, %s8027_s3  ;;  %v11246_v47 = vrot.slane %v9712_v52, 2 }
 0x264   :  { %v1764_v16 = vpop.permute.xlu1 %1763  ;;  %v1720_v48 = vadd.f32 %v1684_v30, %v1643_v35 }
 0x265   :  { %v1607_v23 = vpop.permute.xlu0 %1606 }
 0x266   :  { %v9792_v32 = vpop.f32.mrb[84].mxu1  ;;  %v1644_v12 = vadd.f32 %v1607_v23, %v9298_v37  ;;  %v1802_v36 = vadd.f32 %v1764_v16, %v1720_v48  ;;  %2970 = vrot.lane.b32.xlu0 %v9585_v53, %s8027_s3 }
 0x267   :  { %v9797_v21 = vpop.f32.mrb[85].mxu1  ;;  %2972 = vrot.lane.b32.xlu1 %v9627_v19, %s8027_s3  ;;  %v3613_v41 = vrot.slane %v9792_v32, 2  ;;  %v9802_v30 = vld [vmem:[#allocation3 + $0xd8] sm:$0x3f] }
 0x268   :  { %11245 = vst [vmem:[#allocation58_spill] sm:$0xff] %v9802_v30  ;;  %v9804_v18 = vpop.f32.mrb[86].mxu1  ;;  %v1766_v27 = vpop.permute.xlu1 %1765  ;;  %v1721_v33 = vadd.f32 %v9320_v20, %v1644_v12  ;;  %v11180_v37 = vrot.slane %v9797_v21, 4  ;;  %v9809_v16 = vadd.f32 %v9411_v9, %v1802_v36  ;;  %v11179_v53 = vrot.slane %v9802_v30, 2 }
 0x269   :  { %v1609_v35 = vpop.permute.xlu0 %1608  ;;  %v3488_v13 = vpop.f32.mrb[87].mxu1  ;;  %v9815_v19 = vsel %vm1578_vm2, %v11178_v28, %v3613_v41  ;;  %v3615_v48 = vrot.slane %v9804_v18, 2  ;;  %v11248_v52 = vrot.slane %v9797_v21, 2 }
 0x26a   :  { %v1645_v20 = vadd.f32 %v1609_v35, %v9300_v46  ;;  %v1803_v12 = vadd.f32 %v1766_v27, %v1721_v33  ;;  %2456 = vrot.lane.b32.xlu0 %v9673_v7, %s8027_s3  ;;  %v3771_v9 = vrot.slane %v3488_v13, 4  ;;  %v9832_v28 = vsel %vm1578_vm2, %v11246_v47, %v11179_v53 }
 0x26b   :  { %2302 = vrot.lane.b32.xlu1 %v9681_v42, %s8027_s3  ;;  %v9825_v36 = vsel %vm1578_vm2, %v3613_v41, %v3615_v48  ;;  %11247 = vst [vmem:[#allocation59_spill] sm:$0xff] %v9832_v28  ;;  %v3716_v23 = vrot.slane %v3488_v13, 2 }
 0x26c   :  { %v1611_v46 = vpop.permute.xlu1 %1610  ;;  %v1722_v27 = vadd.f32 %v9335_v60, %v1645_v20  ;;  %v9838_v7 = vsel %vm1096_vm1, %v11180_v37, %v3771_v9  ;;  %v9841_v42 = vadd.f32 %v9420_v54, %v1803_v12  ;;  %v2280_v12 = vrot.slane %v9757_v50, 2 }
 0x26d   :  { %v1646_v41 = vadd.f32 %v1611_v46, %v9306_v2  ;;  %v1768_v33 = vpop.permute.xlu0 %1767  ;;  %v9847_v47 = vsel %vm1578_vm2, %v11248_v52, %v3716_v23 }
 0x26e   :  { %11249 = vst [vmem:[#allocation60_spill] sm:$0xff] %v9847_v47  ;;  %v9849_v35 = vpop.f32.mrb[88].mxu1  ;;  %v1804_v13 = vadd.f32 %v1768_v33, %v1722_v27  ;;  %3128 = vrot.lane.b32.xlu0 %v9633_v34, %s8027_s3 }
 0x26f   :  { %v3494_v60 = vpop.f32.mrb[89].mxu1  ;;  %v1723_v20 = vadd.f32 %v9340_v43, %v1646_v41  ;;  %2974 = vrot.lane.b32.xlu1 %v9639_v57, %s8027_s3  ;;  %v3617_v2 = vrot.slane %v9849_v35, 2 }
 0x270   :  { %v1770_v54 = vpop.permute.xlu1 %1769  ;;  %v9858_v46 = vpop.f32.mrb[90].mxu1  ;;  %v3773_v52 = vrot.slane %v3494_v60, 4  ;;  %v9861_v53 = vadd.f32 %v9435_v5, %v1804_v13  ;;  %v3718_v27 = vrot.slane %v3494_v60, 2  ;;  %v7888_v13 = vld [vmem:[%s11133_s5 + $0x14] ss:$8 sps:$4 sm:$0xff]  }
 0x271   :  { %v1613_v33 = vpop.permute.xlu0 %1612  ;;  %v1805_v34 = vadd.f32 %v1770_v54, %v1723_v20  ;;  %v3498_v37 = vpop.f32.mrb[91].mxu1  ;;  %v9864_v43 = vsel %vm1578_vm2, %v3615_v48, %v3617_v2  ;;  %v3619_v57 = vrot.slane %v9858_v46, 2  ;;  %v11252_v54 = vrot.slane %v9656_v24, 2  ;;  %3975 = vmatprep.subr.bf16.mxu0 %v7888_v13 }
 0x272   :  { %v1647_v41 = vadd.f32 %v1613_v33, %v9323_v25  ;;  %2306 = vrot.lane.b32.xlu0 %v2280_v12, %s8027_s3  ;;  %v3775_v50 = vrot.slane %v3498_v37, 4  ;;  %v9870_v47 = vsel %vm1096_vm1, %v3771_v9, %v3773_v52  ;;  %v3720_v28 = vrot.slane %v3498_v37, 2  ;;  %v7886_v25 = vld [vmem:[%s11133_s5 + $0x10] ss:$8 sps:$4 sm:$0xff]  }
 0x273   :  { %2458 = vrot.lane.b32.xlu1 %v9694_v8, %s8027_s3  ;;  %v9875_v5 = vsel %vm1578_vm2, %v3617_v2, %v3619_v57  ;;  %v9878_v48 = vadd.f32 %v9443_v40, %v1805_v34  ;;  %v9887_v9 = vsel %vm1578_vm2, %v3716_v23, %v3718_v27  ;;  %v2281_v33 = vsel %vm1578_vm2, %v11252_v54, %v2280_v12 }
 0x274   :  { %11250 = vst [vmem:[#allocation61_spill] sm:$0xff] %v9887_v9  ;;  %v1615_v37 = vpop.permute.xlu1 %1614  ;;  %v1724_v8 = vadd.f32 %v9355_v56, %v1647_v41  ;;  %v9891_v60 = vsel %vm1096_vm1, %v3773_v52, %v3775_v50  ;;  %v9894_v40 = vsel %vm1578_vm2, %v3718_v27, %v3720_v28  ;;  %3976 = vmatpush1.bf16.msra.mxu0 %v7886_v25  ;;  %v11262_v9 = vld [vmem:[#allocation10_spill] sm:$0xff] }
 0x275   :  { %11251 = vst [vmem:[#allocation62_spill] sm:$0xff] %v9894_v40  ;;  %v1648_v20 = vadd.f32 %v1615_v37, %v9327_v31  ;;  %v1772_v2 = vpop.permute.xlu0 %1771 }
 0x276   :  { %v1806_v34 = vadd.f32 %v1772_v2, %v1724_v8  ;;  %2304 = vrot.lane.b32.xlu0 %v2281_v33, %s8027_s3  ;;  %v9901_v23 = vpop.f32.mrb[92].mxu1 }
 0x277   :  { %v3504_v56 = vpop.f32.mrb[93].mxu1  ;;  %v1725_v52 = vadd.f32 %v9360_v61, %v1648_v20  ;;  %3130 = vrot.lane.b32.xlu1 %v9642_v55, %s8027_s3  ;;  %v3621_v31 = vrot.slane %v9901_v23, 2 }
 0x278   :  { %v1774_v27 = vpop.permute.xlu1 %1773  ;;  %v9907_v41 = vpop.f32.mrb[94].mxu1  ;;  %v3777_v37 = vrot.slane %v3504_v56, 4  ;;  %v9910_v12 = vadd.f32 %v9470_v29, %v1806_v34  ;;  %v3722_v13 = vrot.slane %v3504_v56, 2 }
 0x279   :  { %v1617_v8 = vpop.permute.xlu0 %1616  ;;  %v1807_v2 = vadd.f32 %v1774_v27, %v1725_v52  ;;  %v3508_v54 = vpop.f32.mrb[95].mxu1  ;;  %v9913_v25 = vsel %vm1578_vm2, %v3619_v57, %v3621_v31  ;;  %v3623_v61 = vrot.slane %v9907_v41, 2 }
 0x27a   :  { %v1649_v55 = vadd.f32 %v1617_v8, %v9343_v0  ;;  %2976 = vrot.lane.b32.xlu0 %v9669_v26, %s8027_s3  ;;  %v9920_v20 = vsel %vm1096_vm1, %v3775_v50, %v3777_v37  ;;  %v3779_v33 = vrot.slane %v3508_v54, 4  ;;  %v9923_v29 = vsel %vm1578_vm2, %v3720_v28, %v3722_v13 }
 0x27b   :  { %11253 = vst [vmem:[#allocation63_spill] sm:$0xff] %v9923_v29  ;;  %2978 = vrot.lane.b32.xlu1 %v9686_v59, %s8027_s3  ;;  %v9928_v57 = vsel %vm1578_vm2, %v3621_v31, %v3623_v61  ;;  %v9931_v34 = vadd.f32 %v9478_v1, %v1807_v2  ;;  %v3724_v0 = vrot.slane %v3508_v54, 2  ;;  %v7889_v59 = vld [vmem:[%s11133_s5 + $0x20] ss:$8 sps:$4 sm:$0xff]   ;;  %v7891_v31 = vld [vmem:[%s11133_s5 + $0x24] ss:$8 sps:$4 sm:$0xff]  }
 0x27c   :  { %v1619_v56 = vpop.permute.xlu1 %1618  ;;  %v1726_v26 = vadd.f32 %v9375_v58, %v1649_v55  ;;  %v9935_v50 = vsel %vm1096_vm1, %v3777_v37, %v3779_v33  ;;  %v11256_v8 = vrot.slane %v9716_v6, 4  ;;  %3977 = vmatprep.subr.bf16.mxu0 %v7891_v31  ;;  %v2919_v29 = vld [vmem:[#allocation3 + $0xc0] sm:$0x3f] }
 0x27d   :  { %v1650_v52 = vadd.f32 %v1619_v56, %v9347_v62  ;;  %v1776_v28 = vpop.permute.xlu0 %1775  ;;  %v9945_v1 = vsel %vm1578_vm2, %v3722_v13, %v3724_v0  ;;  %3978 = vmatpush1.bf16.msra.mxu0 %v7889_v59 }
 0x27e   :  { %11254 = vst [vmem:[#allocation64_spill] sm:$0xff] %v9945_v1  ;;  %v1808_v27 = vadd.f32 %v1776_v28, %v1726_v26  ;;  %2460 = vrot.lane.b32.xlu0 %v9726_v3, %s8027_s3  ;;  %v9949_v58 = vpop.f32.mrb[96].mxu1 }
 0x27f   :  { %11255 = vst [vmem:[#allocation65_spill] sm:$0xff] %v9949_v58  ;;  %v3514_v37 = vpop.f32.mrb[97].mxu1  ;;  %v1727_v62 = vadd.f32 %v9380_v15, %v1650_v52  ;;  %2464 = vrot.lane.b32.xlu1 %v11256_v8, %s8027_s3  ;;  %v3625_v2 = vrot.slane %v9949_v58, 2  ;;  %v11258_v8 = vld [vmem:[#allocation9_spill] sm:$0xff]  ;;  %v3595_v58 = vld [vmem:[#allocation3] sm:$0xfc] }
 0x280   :  { %v1778_v54 = vpop.permute.xlu1 %1777  ;;  %v9956_v55 = vpop.f32.mrb[98].mxu1  ;;  %v3781_v13 = vrot.slane %v3514_v37, 4  ;;  %v9959_v56 = vadd.f32 %v9515_v49, %v1808_v27  ;;  %v3726_v3 = vrot.slane %v3514_v37, 2  ;;  %v11260_v27 = vld [vmem:[#allocation32_spill] sm:$0xff] }
 0x281   :  { %11257 = vst [vmem:[#allocation66_spill] sm:$0xff] %v9956_v55  ;;  %v1621_v26 = vpop.permute.xlu0 %1620  ;;  %v1809_v28 = vadd.f32 %v1778_v54, %v1727_v62  ;;  %v3518_v15 = vpop.f32.mrb[99].mxu1  ;;  %v9962_v52 = vsel %vm1578_vm2, %v3623_v61, %v3625_v2  ;;  %v3627_v6 = vrot.slane %v9956_v55, 2 }
 0x282   :  { %v1651_v31 = vadd.f32 %v1621_v26, %v11258_v8  ;;  %3132 = vrot.lane.b32.xlu0 %v9676_v10, %s8027_s3  ;;  %v9969_v1 = vsel %vm1096_vm1, %v3779_v33, %v3781_v13  ;;  %v3783_v49 = vrot.slane %v3518_v15, 4  ;;  %v9972_v59 = vsel %vm1578_vm2, %v3724_v0, %v3726_v3  ;;  %v11261_v26 = vld [vmem:[#allocation13_spill] sm:$0xff] }
 0x283   :  { %11259 = vst [vmem:[#allocation9_spill] sm:$0xff] %v9972_v59  ;;  %2462 = vrot.lane.b32.xlu1 %v9746_v17, %s8027_s3  ;;  %v9977_v61 = vsel %vm1578_vm2, %v3625_v2, %v3627_v6  ;;  %v9980_v37 = vadd.f32 %v11260_v27, %v1809_v28  ;;  %v3728_v62 = vrot.slane %v3518_v15, 2  ;;  %v2956_v8 = vrot.slane %v2919_v29, 2  ;;  %v11265_v15 = vld [vmem:[#allocation14_spill] sm:$0xff] }
 0x284   :  { %v1623_v54 = vpop.permute.xlu1 %1622  ;;  %v1728_v10 = vadd.f32 %v11261_v26, %v1651_v31  ;;  %v9984_v33 = vsel %vm1096_vm1, %v3781_v13, %v3783_v49 }
 0x285   :  { %v1652_v0 = vadd.f32 %v1623_v54, %v11262_v9  ;;  %v1780_v59 = vpop.permute.xlu0 %1779  ;;  %v9988_v40 = vsel %vm1578_vm2, %v3726_v3, %v3728_v62  ;;  %v11266_v54 = vld [vmem:[#allocation38_spill] sm:$0xff] }
 0x286   :  { %11263 = vst [vmem:[#allocation32_spill] sm:$0xff] %v9988_v40  ;;  %v1810_v17 = vadd.f32 %v1780_v59, %v1728_v10  ;;  %2982 = vrot.lane.b32.xlu0 %v2956_v8, %s8027_s3  ;;  %v9991_v2 = vpop.f32.mrb[100].mxu1  ;;  %v11267_v40 = vrot.slane %v9658_v38, 2 }
 0x287   :  { %11264 = vst [vmem:[#allocation13_spill] sm:$0xff] %v9991_v2  ;;  %v3524_v28 = vpop.f32.mrb[101].mxu1  ;;  %v1729_v27 = vadd.f32 %v11265_v15, %v1652_v0  ;;  %3134 = vrot.lane.b32.xlu1 %v9705_v63, %s8027_s3  ;;  %v3629_v29 = vrot.slane %v9991_v2, 2  ;;  %v11268_v2 = vld [vmem:[#allocation11_spill] sm:$0xff] }
 0x288   :  { %v1782_v13 = vpop.permute.xlu1 %1781  ;;  %v9997_v31 = vpop.f32.mrb[102].mxu1  ;;  %v3785_v9 = vrot.slane %v3524_v28, 4  ;;  %v10000_v3 = vadd.f32 %v11266_v54, %v1810_v17  ;;  %v3730_v59 = vrot.slane %v3524_v28, 2  ;;  %v2957_v55 = vsel %vm1578_vm2, %v11267_v40, %v2956_v8 }
 0x289   :  { %v1625_v26 = vpop.permute.xlu0 %1624  ;;  %v1811_v10 = vadd.f32 %v1782_v13, %v1729_v27  ;;  %v3528_v0 = vpop.f32.mrb[103].mxu1  ;;  %v10006_v15 = vsel %vm1578_vm2, %v3627_v6, %v3629_v29  ;;  %v11185_v63 = vrot.slane %v9997_v31, 2  ;;  %v11270_v6 = vld [vmem:[#allocation40_spill] sm:$0xff]  ;;  %v3610_v54 = vrot.slane %v3595_v58, 2 }
 0x28a   :  { %v1653_v30 = vadd.f32 %v1625_v26, %v11268_v2  ;;  %2980 = vrot.lane.b32.xlu0 %v2957_v55, %s8027_s3  ;;  %v10012_v17 = vsel %vm1096_vm1, %v3783_v49, %v3785_v9  ;;  %v3787_v28 = vrot.slane %v3528_v0, 4  ;;  %v10015_v27 = vsel %vm1578_vm2, %v3728_v62, %v3730_v59  ;;  %v7894_v55 = vld [vmem:[%s11133_s5 + $0x44] ss:$8 sps:$4 sm:$0xff]   ;;  %v10042_v26 = vld [vmem:[#allocation3 + $0xc0] sm:$0xf] }
 0x28b   :  { %11269 = vst [vmem:[#allocation10_spill] sm:$0xff] %v10015_v27  ;;  %3138 = vrot.lane.b32.xlu1 %v9753_v51, %s8027_s3  ;;  %v10022_v40 = vsel %vm1578_vm2, %v3629_v29, %v11185_v63  ;;  %v10025_v8 = vadd.f32 %v11270_v6, %v1811_v10  ;;  %v3732_v49 = vrot.slane %v3528_v0, 2  ;;  %v11271_v2 = vld [vmem:[#allocation15_spill] sm:$0xff]  ;;  %4362 = vmatprep.subr.bf16.mxu1 %v7894_v55  ;;  %11273 = vst [vmem:[#allocation38_spill] sm:$0xff] %v10042_v26  ;;  %v3764_v0 = vld [vmem:[#allocation3 + $0x18] sm:$0xf0] }
 0x28c   :  { %v1730_v13 = vadd.f32 %v11271_v2, %v1653_v30  ;;  %v10032_v62 = vsel %vm1096_vm1, %v3785_v9, %v3787_v28  ;;  %v7892_v51 = vld [vmem:[%s11133_s5 + $0x40] ss:$8 sps:$4 sm:$0xff]   ;;  %v7900_v58 = vld [vmem:[%s11133_s5 + $0x54] ss:$8 sps:$4 sm:$0xff]   ;;  %v3768_v63 = vrot.slane %v3764_v0, 4 }
 0x28d   :  { %v10038_v29 = vsel %vm1578_vm2, %v3730_v59, %v3732_v49  ;;  %4363 = vmatpush1.bf16.msra.mxu1 %v7892_v51  ;;  %v7897_v27 = vld [vmem:[%s11133_s5 + $0x34] ss:$8 sps:$4 sm:$0xff]  }
 0x28e   :  { %11272 = vst [vmem:[#allocation14_spill] sm:$0xff] %v10038_v29  ;;  %3136 = vrot.lane.b32.xlu0 %v9734_v14, %s8027_s3  ;;  %v3532_v10 = vpop.f32.mrb[104].mxu1  ;;  %v7898_v14 = vld [vmem:[%s11133_s5 + $0x50] ss:$8 sps:$4 sm:$0xff]   ;;  %4364 = vmatprep.subr.bf16.mxu1 %v7900_v58 }
 0x28f   :  { %3565 = vst [vmem:[#allocation3 + $0xc0] sm:$0xff] %v3532_v10  ;;  %3637 = vrot.lane.b32.xlu1 %v9815_v19, %s8027_s3  ;;  %v10046_v30 = vpop.f32.mrb[105].mxu1  ;;  %v11274_v19 = vrot.slane %v9767_v45, 2  ;;  %v11275_v55 = vld [vmem:[#allocation12_spill] sm:$0xff]  ;;  %3979 = vmatprep.subr.bf16.mxu0 %v7897_v27  ;;  %v11280_v27 = vrot.slane %v9797_v21, 4 }
 0x290   :  { %v1629_v9 = vpop.permute.xlu0 %1628  ;;  %v3536_v59 = vpop.f32.mrb[106].mxu1  ;;  %v3789_v6 = vrot.slane %v10046_v30, 4  ;;  %v11276_v0 = vrot.slane %v10046_v30, 2 }
 0x291   :  { %v1655_v2 = vadd.f32 %v1629_v9, %v9707_v44  ;;  %v1627_v51 = vpop.permute.xlu1 %1626  ;;  %v3612_v10 = vsel %vm1578_vm2, %v3610_v54, %v11274_v19  ;;  %v10060_v29 = vpop.f32.mrb[107].mxu1  ;;  %v7895_v59 = vld [vmem:[%s11133_s5 + $0x30] ss:$8 sps:$4 sm:$0xff]   ;;  %4365 = vmatpush1.bf16.msra.mxu1 %v7898_v14 }
 0x292   :  { %v1654_v38 = vadd.f32 %v1627_v51, %v11275_v55  ;;  %3635 = vrot.lane.b32.xlu0 %v3612_v10, %s8027_s3  ;;  %3568 = vst [vmem:[#allocation3 + $0xd8] sm:$0xff] %v10060_v29  ;;  %v10072_v44 = vsel %vm1096_vm1, %v3787_v28, %v3789_v6  ;;  %v3791_v54 = vrot.slane %v10060_v29, 4  ;;  %v10078_v9 = vsel %vm1578_vm2, %v3732_v49, %v11276_v0  ;;  %v11277_v19 = vld [vmem:[#allocation16_spill] sm:$0xff]  ;;  %v11279_v51 = vld [vmem:[#allocation17_spill] sm:$0xff]  ;;  %v7901_v49 = vld [vmem:[%s11133_s5 + $0x60] ss:$8 sps:$4 sm:$0xff]  }
 0x293   :  { %v11278_v26 = vrot.slane %v11277_v19, 2  ;;  %3795 = vrot.lane.b32.xlu1 %v9838_v7, %s8027_s3  ;;  %v7903_v28 = vld [vmem:[%s11133_s5 + $0x64] ss:$8 sps:$4 sm:$0xff]   ;;  %3980 = vmatpush1.bf16.msra.mxu0 %v7895_v59 }
 0x294   :  { %v1784_v55 = vpop.permute.xlu0 %1783  ;;  %v1731_v10 = vadd.f32 %v11279_v51, %v1654_v38  ;;  %v10091_v14 = vsel %vm1096_vm1, %v3789_v6, %v3791_v54  ;;  %4366 = vmatprep.subr.bf16.mxu1 %v7903_v28  ;;  %v11281_v38 = vld [vmem:[#allocation48_spill] sm:$0xff] }
 0x295   :  { %v1732_v58 = vadd.f32 %v11278_v26, %v1655_v2  ;;  %v1812_v26 = vadd.f32 %v1784_v55, %v1730_v13  ;;  %v1788_v7 = vpop.permute.xlu1 %1787  ;;  %v3770_v2 = vsel %vm1096_vm1, %v3768_v63, %v11280_v27  ;;  %4367 = vmatpush1.bf16.msra.mxu1 %v7901_v49  ;;  %v7906_v13 = vld [vmem:[%s11133_s5 + $0x74] ss:$8 sps:$4 sm:$0xff]   ;;  %v7904_v63 = vld [vmem:[%s11133_s5 + $0x70] ss:$8 sps:$4 sm:$0xff]  }
 0x296   :  { %3793 = vrot.lane.b32.xlu0 %v3770_v2, %s8027_s3  ;;  %4368 = vmatprep.subr.bf16.mxu1 %v7906_v13 }
 0x297   :  { %v1814_v0 = vadd.f32 %v1788_v7, %v1732_v58  ;;  %3641 = vrot.lane.b32.xlu1 %v9864_v43, %s8027_s3  ;;  %v10103_v6 = vadd.f32 %v11281_v38, %v1812_v26  ;;  %v11282_v43 = vld [vmem:[#allocation21_spill] sm:$0xff]  ;;  %v11283_v26 = vld [vmem:[#allocation20_spill] sm:$0xff] }
 0x298   :  { %v2360_v28 = vrot.slane %v11282_v43, 2  ;;  %v11284_v7 = vrot.slane %v11283_v26, 2 }
 0x299   :  { %v10109_v59 = vadd.f32 %v9755_v39, %v1814_v0  ;;  %v1786_v19 = vpop.permute.xlu1 %1785  ;;  %4369 = vmatpush1.bf16.msra.mxu1 %v7904_v63 }
 0x29a   :  { %v1813_v58 = vadd.f32 %v1786_v19, %v1731_v10  ;;  %3639 = vrot.lane.b32.xlu0 %v9825_v36, %s8027_s3  ;;  %v7909_v10 = vld [vmem:[%s11133_s5 + $0x84] ss:$8 sps:$4 sm:$0xff]  }
 0x29b   :  { %3799 = vrot.lane.b32.xlu1 %v9891_v60, %s8027_s3  ;;  %v2362_v60 = vsel %vm1578_vm2, %v2360_v28, %v11284_v7  ;;  %4796 = vmatprep.subr.bf16.mxu0 %v7909_v10  ;;  %v11287_v19 = vld [vmem:[#allocation19_spill] sm:$0xff] }
 0x29c   :  { %v2283_v55 = vpop.permute.xlu0 %2282  ;;  %v10120_v39 = vadd.f32 %v9656_v24, %v1813_v58  ;;  %v11290_v7 = vld [vmem:[#allocation23_spill] sm:$0xff] }
 0x29d   :  { %v2321_v51 = vadd.f32 %v2283_v55, %v9809_v16  ;;  %v2285_v49 = vpop.permute.xlu1 %2284  ;;  %v11285_v16 = vld [vmem:[#allocation25_spill] sm:$0xff]  ;;  %v3036_v55 = vrot.slane %v9769_v22, 2 }
 0x29e   :  { %3797 = vrot.lane.b32.xlu0 %v9870_v47, %s8027_s3  ;;  %v2322_v36 = vadd.f32 %v2285_v49, %v9841_v42  ;;  %v11286_v42 = vld [vmem:[#allocation18_spill] sm:$0xff]  ;;  %v11289_v49 = vld [vmem:[#allocation29_spill] sm:$0xff] }
 0x29f   :  { %v2398_v27 = vadd.f32 %v2362_v60, %v2321_v51  ;;  %3645 = vrot.lane.b32.xlu1 %v9913_v25, %s8027_s3  ;;  %v11292_v60 = vld [vmem:[#allocation28_spill] sm:$0xff] }
 0x2a0   :  { %v2441_v24 = vpop.permute.xlu0 %2440  ;;  %v2399_v2 = vadd.f32 %v11285_v16, %v2322_v36 }
 0x2a1   :  { %v2479_v0 = vadd.f32 %v2441_v24, %v2398_v27  ;;  %v2443_v38 = vpop.permute.xlu1 %2442 }
 0x2a2   :  { %3643 = vrot.lane.b32.xlu0 %v9875_v5, %s8027_s3  ;;  %v2480_v47 = vadd.f32 %v2443_v38, %v2399_v2  ;;  %v11288_v5 = vld [vmem:[#allocation27_spill] sm:$0xff] }
 0x2a3   :  { %3647 = vrot.lane.b32.xlu1 %v9928_v57, %s8027_s3  ;;  %v2905_v13 = vadd.f32 %v11286_v42, %v2479_v0 }
 0x2a4   :  { %v2287_v63 = vpop.permute.xlu0 %2286  ;;  %v2906_v58 = vadd.f32 %v11287_v19, %v2480_v47  ;;  %v11294_v47 = vld [vmem:[#allocation24_spill] sm:$0xff] }
 0x2a5   :  { %v2323_v25 = vadd.f32 %v2287_v63, %v9861_v53  ;;  %v2289_v43 = vpop.permute.xlu1 %2288  ;;  %v3596_v63 = vld [vmem:[#allocation3 + $0xc0] sm:$0x3f] }
 0x2a6   :  { %3801 = vrot.lane.b32.xlu0 %v9920_v20, %s8027_s3  ;;  %v2324_v28 = vadd.f32 %v2289_v43, %v9878_v48  ;;  %v11291_v20 = vrot.slane %v11290_v7, 2 }
 0x2a7   :  { %3803 = vrot.lane.b32.xlu1 %v9935_v50, %s8027_s3  ;;  %v2400_v57 = vadd.f32 %v11288_v5, %v2323_v25  ;;  %v3633_v25 = vrot.slane %v3596_v63, 2  ;;  %v11304_v63 = vld [vmem:[#allocation44_spill] sm:$0xff] }
 0x2a8   :  { %v2959_v51 = vpop.permute.xlu0 %2958  ;;  %v2401_v10 = vadd.f32 %v11289_v49, %v2324_v28  ;;  %v3038_v48 = vsel %vm1578_vm2, %v3036_v55, %v11291_v20 }
 0x2a9   :  { %v2997_v36 = vadd.f32 %v2959_v51, %v2905_v13  ;;  %v2961_v26 = vpop.permute.xlu1 %2960 }
 0x2aa   :  { %3649 = vrot.lane.b32.xlu0 %v9962_v52, %s8027_s3  ;;  %v2998_v53 = vadd.f32 %v2961_v26, %v2906_v58  ;;  %v11293_v52 = vld [vmem:[#allocation22_spill] sm:$0xff] }
 0x2ab   :  { %3651 = vrot.lane.b32.xlu1 %v9977_v61, %s8027_s3  ;;  %v10157_v22 = vadd.f32 %v3038_v48, %v2997_v36  ;;  %v11300_v36 = vld [vmem:[#allocation35_spill] sm:$0xff]  ;;  %v11301_v48 = vld [vmem:[#allocation26_spill] sm:$0xff] }
 0x2ac   :  { %v2445_v50 = vpop.permute.xlu0 %2444  ;;  %v3075_v27 = vadd.f32 %v11292_v60, %v2998_v53 }
 0x2ad   :  { %v2481_v24 = vadd.f32 %v2445_v50, %v2400_v57  ;;  %v2447_v16 = vpop.permute.xlu1 %2446 }
 0x2ae   :  { %3805 = vrot.lane.b32.xlu0 %v9969_v1, %s8027_s3  ;;  %v2482_v2 = vadd.f32 %v2447_v16, %v2401_v10 }
 0x2af   :  { %3807 = vrot.lane.b32.xlu1 %v9984_v33, %s8027_s3  ;;  %v2907_v0 = vadd.f32 %v11293_v52, %v2481_v24 }
 0x2b0   :  { %v10165_v38 = vpop.permute.xlu0 %3116  ;;  %v2908_v61 = vadd.f32 %v11294_v47, %v2482_v2 }
 0x2b1   :  { %v3119_v42 = vpop.permute.xlu1 %3118 }
 0x2b2   :  { %3653 = vrot.lane.b32.xlu0 %v10006_v15, %s8027_s3  ;;  %v3156_v13 = vadd.f32 %v3119_v42, %v3075_v27  ;;  %v11295_v15 = vld [vmem:[#allocation33_spill] sm:$0xff]  ;;  %v11302_v27 = vld [vmem:[#allocation30_spill] sm:$0xff] }
 0x2b3   :  { %3655 = vrot.lane.b32.xlu1 %v10022_v40, %s8027_s3  ;;  %v11296_v40 = vld [vmem:[#allocation36_spill] sm:$0xff] }
 0x2b4   :  { %v2291_v1 = vpop.permute.xlu0 %2290  ;;  %v10173_v19 = vadd.f32 %v9767_v45, %v3156_v13  ;;  %v11297_v45 = vrot.slane %v9997_v31, 2  ;;  %v11303_v13 = vld [vmem:[#allocation41_spill] sm:$0xff] }
 0x2b5   :  { %v2325_v33 = vadd.f32 %v2291_v1, %v9910_v12  ;;  %v2293_v58 = vpop.permute.xlu1 %2292 }
 0x2b6   :  { %3809 = vrot.lane.b32.xlu0 %v10012_v17, %s8027_s3  ;;  %v2326_v43 = vadd.f32 %v2293_v58, %v9931_v34  ;;  %v3634_v12 = vsel %vm1578_vm2, %v11297_v45, %v3633_v25  ;;  %v11298_v34 = vrot.slane %v9723_v11, 4  ;;  %v11299_v17 = vld [vmem:[#allocation31_spill] sm:$0xff] }
 0x2b7   :  { %3811 = vrot.lane.b32.xlu1 %v10032_v62, %s8027_s3  ;;  %v2402_v28 = vadd.f32 %v11295_v15, %v2325_v33  ;;  %v11306_v15 = vld [vmem:[#allocation43_spill] sm:$0xff] }
 0x2b8   :  { %v2963_v55 = vpop.permute.xlu0 %2962  ;;  %v2403_v5 = vadd.f32 %v11296_v40, %v2326_v43 }
 0x2b9   :  { %v2999_v57 = vadd.f32 %v2963_v55, %v2907_v0  ;;  %v2965_v51 = vpop.permute.xlu1 %2964  ;;  %v10208_v0 = vld [vmem:[#allocation2 + $0x198] sm:$0xff] }
 0x2ba   :  { %3657 = vrot.lane.b32.xlu0 %v3634_v12, %s8027_s3  ;;  %v3000_v49 = vadd.f32 %v2965_v51, %v2908_v61  ;;  %55 = vst.msk [vmem:[#allocation4 + $0x30] sm:$0xfc] %vm54_vm4, %v10208_v0 }
 0x2bb   :  { %3140 = vrot.lane.b32.xlu1 %v11298_v34, %s8027_s3  ;;  %v3076_v62 = vadd.f32 %v11299_v17, %v2999_v57 }
 0x2bc   :  { %v2449_v10 = vpop.permute.xlu0 %2448  ;;  %v3077_v26 = vadd.f32 %v11300_v36, %v3000_v49 }
 0x2bd   :  { %v2483_v53 = vadd.f32 %v2449_v10, %v2402_v28  ;;  %v2451_v7 = vpop.permute.xlu1 %2450 }
 0x2be   :  { %3813 = vrot.lane.b32.xlu0 %v10072_v44, %s8027_s3  ;;  %v2484_v20 = vadd.f32 %v2451_v7, %v2403_v5  ;;  %v11309_v7 = vld [vmem:[#allocation51_spill] sm:$0xff] }
 0x2bf   :  { %3815 = vrot.lane.b32.xlu1 %v10091_v14, %s8027_s3  ;;  %v2909_v50 = vadd.f32 %v11301_v48, %v2483_v53 }
 0x2c0   :  { %v3121_v60 = vpop.permute.xlu0 %3120  ;;  %v2910_v11 = vadd.f32 %v11302_v27, %v2484_v20 }
 0x2c1   :  { %v3157_v24 = vadd.f32 %v3121_v60, %v3076_v62  ;;  %v3123_v16 = vpop.permute.xlu1 %3122 }
 0x2c2   :  { %3659 = vrot.lane.b32.xlu0 %v3633_v25, %s8027_s3  ;;  %v3158_v2 = vadd.f32 %v3123_v16, %v3077_v26  ;;  %v11305_v25 = vld [vmem:[#allocation39_spill] sm:$0xff]  ;;  %v11311_v16 = vld [vmem:[#allocation46_spill] sm:$0xff] }
 0x2c3   :  { %3817 = vrot.lane.b32.xlu1 %v3791_v54, %s8027_s3  ;;  %v10203_v44 = vadd.f32 %v9792_v32, %v3157_v24 }
 0x2c4   :  { %v2295_v52 = vpop.permute.xlu0 %2294  ;;  %v10206_v14 = vadd.f32 %v9804_v18, %v3158_v2 }
 0x2c5   :  { %v2327_v47 = vadd.f32 %v2295_v52, %v9959_v56  ;;  %v2297_v61 = vpop.permute.xlu1 %2296  ;;  %v11307_v56 = vld [vmem:[#allocation34_spill] sm:$0xff]  ;;  %v11312_v52 = vld [vmem:[#allocation47_spill] sm:$0xff] }
 0x2c6   :  { %v2328_v42 = vadd.f32 %v2297_v61, %v9980_v37  ;;  %v11308_v37 = vld [vmem:[#allocation37_spill] sm:$0xff] }
 0x2c7   :  { %v2404_v29 = vadd.f32 %v11303_v13, %v2327_v47 }
 0x2c8   :  { %v2967_v54 = vpop.permute.xlu0 %2966  ;;  %v2405_v32 = vadd.f32 %v11304_v63, %v2328_v42  ;;  %v11313_v42 = vld [vmem:[#allocation42_spill] sm:$0xff] }
 0x2c9   :  { %v3001_v1 = vadd.f32 %v2967_v54, %v2909_v50  ;;  %v2969_v33 = vpop.permute.xlu1 %2968  ;;  %v11310_v50 = vld [vmem:[#allocation52_spill] sm:$0xff] }
 0x2ca   :  { %v3002_v58 = vadd.f32 %v2969_v33, %v2910_v11 }
 0x2cb   :  { %v3078_v18 = vadd.f32 %v11305_v25, %v3001_v1  ;;  %v11315_v25 = vld [vmem:[#allocation53_spill] sm:$0xff] }
 0x2cc   :  { %v2453_v43 = vpop.permute.xlu0 %2452  ;;  %v3079_v28 = vadd.f32 %v11306_v15, %v3002_v58 }
 0x2cd   :  { %v2485_v55 = vadd.f32 %v2453_v43, %v2404_v29  ;;  %v2455_v40 = vpop.permute.xlu1 %2454  ;;  %v11314_v29 = vld [vmem:[#allocation55_spill] sm:$0xff] }
 0x2ce   :  { %v2486_v5 = vadd.f32 %v2455_v40, %v2405_v32 }
 0x2cf   :  { %v2911_v57 = vadd.f32 %v11307_v56, %v2485_v55  ;;  %v11316_v55 = vld [vmem:[#allocation57_spill] sm:$0xff] }
 0x2d0   :  { %v3125_v45 = vpop.permute.xlu0 %3124  ;;  %v2912_v12 = vadd.f32 %v11308_v37, %v2486_v5  ;;  %v11318_v56 = vld [vmem:[#allocation45_spill] sm:$0xff] }
 0x2d1   :  { %v3159_v51 = vadd.f32 %v3125_v45, %v3078_v18  ;;  %v3127_v49 = vpop.permute.xlu1 %3126 }
 0x2d2   :  { %v3160_v34 = vadd.f32 %v3127_v49, %v3079_v28 }
 0x2d3   :  { %v10220_v17 = vadd.f32 %v9849_v35, %v3159_v51 }
 0x2d4   :  { %v2299_v62 = vpop.permute.xlu0 %2298  ;;  %v10223_v10 = vadd.f32 %v9858_v46, %v3160_v34 }
 0x2d5   :  { %v2329_v36 = vadd.f32 %v2299_v62, %v10000_v3  ;;  %v2301_v26 = vpop.permute.xlu1 %2300  ;;  %v11319_v62 = vld [vmem:[#allocation54_spill] sm:$0xff] }
 0x2d6   :  { %v2330_v53 = vadd.f32 %v2301_v26, %v10025_v8 }
 0x2d7   :  { %v2406_v20 = vadd.f32 %v11309_v7, %v2329_v36 }
 0x2d8   :  { %v2971_v48 = vpop.permute.xlu0 %2970  ;;  %v2407_v60 = vadd.f32 %v11310_v50, %v2330_v53 }
 0x2d9   :  { %v3003_v27 = vadd.f32 %v2971_v48, %v2911_v57  ;;  %v2973_v11 = vpop.permute.xlu1 %2972 }
 0x2da   :  { %v3004_v24 = vadd.f32 %v2973_v11, %v2912_v12 }
 0x2db   :  { %v3080_v35 = vadd.f32 %v11311_v16, %v3003_v27 }
 0x2dc   :  { %v2457_v2 = vpop.permute.xlu0 %2456  ;;  %v3081_v47 = vadd.f32 %v11312_v52, %v3004_v24 }
 0x2dd   :  { %v2487_v46 = vadd.f32 %v2457_v2, %v2406_v20  ;;  %v2303_v61 = vpop.permute.xlu1 %2302  ;;  %v11320_v20 = vld [vmem:[#allocation49_spill] sm:$0xff] }
 0x2de   :  { %v2331_v3 = vadd.f32 %v2303_v61, %v10103_v6  ;;  %v11317_v6 = vrot.slane %v11316_v55, 2  ;;  %v11323_v2 = vld [vmem:[#allocation65_spill] sm:$0xff] }
 0x2df   :  { %v2913_v13 = vadd.f32 %v11313_v42, %v2487_v46  ;;  %v11324_v46 = vld [vmem:[#allocation50_spill] sm:$0xff] }
 0x2e0   :  { %v3129_v8 = vpop.permute.xlu0 %3128  ;;  %v2408_v54 = vadd.f32 %v11314_v29, %v2331_v3 }
 0x2e1   :  { %v3161_v63 = vadd.f32 %v3129_v8, %v3080_v35  ;;  %v2975_v32 = vpop.permute.xlu1 %2974  ;;  %v11322_v35 = vld [vmem:[#allocation56_spill] sm:$0xff]  ;;  %v11325_v8 = vld [vmem:[#allocation58_spill] sm:$0xff] }
 0x2e2   :  { %v3005_v1 = vadd.f32 %v2975_v32, %v2913_v13  ;;  %v11326_v29 = vrot.slane %v11325_v8, 2  ;;  %v11327_v32 = vld [vmem:[#allocation66_spill] sm:$0xff] }
 0x2e3   :  { %v10235_v33 = vadd.f32 %v9901_v23, %v3161_v63 }
 0x2e4   :  { %v2307_v58 = vpop.permute.xlu0 %2306  ;;  %v3082_v18 = vadd.f32 %v11315_v25, %v3005_v1 }
 0x2e5   :  { %v2333_v43 = vadd.f32 %v2307_v58, %v10109_v59  ;;  %v2459_v15 = vpop.permute.xlu1 %2458 }
 0x2e6   :  { %v2488_v28 = vadd.f32 %v2459_v15, %v2407_v60 }
 0x2e7   :  { %v2410_v40 = vadd.f32 %v11317_v6, %v2333_v43  ;;  %v11328_v43 = vld [vmem:[#allocation59_spill] sm:$0xff] }
 0x2e8   :  { %v2305_v5 = vpop.permute.xlu0 %2304  ;;  %v2914_v57 = vadd.f32 %v11318_v56, %v2488_v28  ;;  %v3687_v28 = vld [vmem:[#allocation3 + $0x18] sm:$0xfc] }
 0x2e9   :  { %v2332_v45 = vadd.f32 %v2305_v5, %v10120_v39  ;;  %v3131_v37 = vpop.permute.xlu1 %3130 }
 0x2ea   :  { %v3162_v12 = vadd.f32 %v3131_v37, %v3081_v47 }
 0x2eb   :  { %v2409_v23 = vadd.f32 %v9784_v4, %v2332_v45  ;;  %v11321_v4 = vld [vmem:[#allocation38_spill] sm:$0xff]  ;;  %v3713_v45 = vrot.slane %v3687_v28, 2 }
 0x2ec   :  { %v2977_v51 = vpop.permute.xlu0 %2976  ;;  %v10245_v49 = vadd.f32 %v9907_v41, %v3162_v12  ;;  %v11329_v12 = vld [vmem:[#allocation13_spill] sm:$0xff] }
 0x2ed   :  { %v3006_v34 = vadd.f32 %v2977_v51, %v2914_v57  ;;  %v2979_v59 = vpop.permute.xlu1 %2978  ;;  %v3569_v57 = vld [vmem:[#allocation3] sm:$0xff] }
 0x2ef   :  { %v3083_v36 = vadd.f32 %v11319_v62, %v3006_v34 }
 0x2f0   :  { %v2461_v26 = vpop.permute.xlu0 %2460 }
 0x2f1   :  { %v2489_v53 = vadd.f32 %v2461_v26, %v2408_v54  ;;  %v2465_v7 = vpop.permute.xlu1 %2464  ;;  %v11331_v26 = vrot.slane %v9797_v21, 2 }
 0x2f2   :  { %v2491_v50 = vadd.f32 %v2465_v7, %v2410_v40 }
 0x2f3   :  { %v2915_v48 = vadd.f32 %v11320_v20, %v2489_v53  ;;  %v3715_v53 = vsel %vm1578_vm2, %v3713_v45, %v11331_v26 }
 0x2f4   :  { %v3133_v60 = vpop.permute.xlu0 %3132  ;;  %v2917_v16 = vadd.f32 %v11321_v4, %v2491_v50 }
 0x2f5   :  { %v3163_v39 = vadd.f32 %v3133_v60, %v3082_v18  ;;  %v2463_v27 = vpop.permute.xlu1 %2462  ;;  %v3007_v11 = vadd.f32 %v2979_v59, %v2915_v48  ;;  %v3155_v18 = vadd.f32 %v10165_v38, %v10157_v22  ;;  %v11330_v22 = vld [vmem:[#allocation60_spill] sm:$0xff] }
 0x2f6   :  { %v2490_v24 = vadd.f32 %v2463_v27, %v2409_v23 }
 0x2f7   :  { %v3084_v41 = vadd.f32 %v11322_v35, %v3007_v11  ;;  %v10252_v52 = vadd.f32 %v11323_v2, %v3163_v39  ;;  %v3582_v37 = vadd.f32 %v3569_v57, %v3155_v18  ;;  %v11332_v11 = vld [vmem:[#allocation62_spill] sm:$0xff] }
 0x2f8   :  { %v2983_v47 = vpop.permute.xlu0 %2982  ;;  %v2916_v61 = vadd.f32 %v11324_v46, %v2490_v24 }
 0x2f9   :  { %v3009_v3 = vadd.f32 %v2983_v47, %v2917_v16  ;;  %v3135_v42 = vpop.permute.xlu1 %3134  ;;  %v11333_v47 = vld [vmem:[#allocation61_spill] sm:$0xff] }
 0x2fa   :  { %v3164_v13 = vadd.f32 %v3135_v42, %v3083_v36  ;;  %v10276_v36 = vld [vmem:[%s11132_s4] ss:$0 sm:$0xff] }
 0x2fb   :  { %v10257_v54 = vadd.f32 %v11326_v29, %v3009_v3 }
 0x2fc   :  { %v2981_v63 = vpop.permute.xlu0 %2980  ;;  %v10260_v1 = vadd.f32 %v11327_v32, %v3164_v13 }
 0x2fd   :  { %v3008_v58 = vadd.f32 %v2981_v63, %v2916_v61  ;;  %v3139_v25 = vpop.permute.xlu1 %3138  ;;  %v11334_v63 = vld [vmem:[#allocation64_spill] sm:$0xff] }
 0x2ff   :  { %v3085_v15 = vadd.f32 %v11328_v43, %v3008_v58 }
 0x300   :  { %v3137_v55 = vpop.permute.xlu0 %3136 }
 0x301   :  { %v3166_v6 = vadd.f32 %v3139_v25, %v3085_v15  ;;  %v3165_v40 = vadd.f32 %v3137_v55, %v3084_v41  ;;  %v3638_v5 = vpop.permute.xlu1 %3637  ;;  %v7907_v15 = vld [vmem:[%s11133_s5 + $0x80] ss:$8 sps:$4 sm:$0xff]  }
 0x302   :  { %v3675_v56 = vadd.f32 %v3638_v5, %v10173_v19  ;;  %v11335_v55 = vld [vmem:[#allocation63_spill] sm:$0xff] }
 0x303   :  { %v10267_v23 = vadd.f32 %v11329_v12, %v3165_v40  ;;  %v10270_v51 = vadd.f32 %v9997_v31, %v3166_v6 }
 0x304   :  { %v3636_v34 = vpop.permute.xlu0 %3635  ;;  %v3752_v38 = vadd.f32 %v11330_v22, %v3675_v56  ;;  %v11336_v56 = vld [vmem:[#allocation9_spill] sm:$0xff] }
 0x305   :  { %v3674_v59 = vadd.f32 %v3636_v34, %v3582_v37  ;;  %v3796_v62 = vpop.permute.xlu1 %3795  ;;  %v7910_v37 = vld [vmem:[%s11133_s5 + $0x90] ss:$8 sps:$4 sm:$0xff]   ;;  %v7915_v34 = vld [vmem:[%s11133_s5 + $0xa4] ss:$8 sps:$4 sm:$0xff]  }
 0x306   :  { %v3833_v19 = vadd.f32 %v3796_v62, %v3752_v38 }
 0x307   :  { %v3751_v7 = vadd.f32 %v3715_v53, %v3674_v59 }
 0x308   :  { %v3794_v20 = vpop.permute.xlu0 %3793  ;;  %v3852_v31 = vadd.f32 %v10276_v36, %v3833_v19 }
 0x309   :  { %v3832_v48 = vadd.f32 %v3794_v20, %v3751_v7  ;;  %v3642_v50 = vpop.permute.xlu1 %3641  ;;  %v11337_v7 = vld [vmem:[#allocation32_spill] sm:$0xff] }
 0x30a   :  { %v3677_v60 = vadd.f32 %v3642_v50, %v10206_v14  ;;  %v3865_v4 = vmax.f32 %v3852_v31, 0.0  ;;  %v7913_v31 = vld [vmem:[%s11133_s5 + $0xa0] ss:$8 sps:$4 sm:$0xff]  }
 0x30b   :  { %v3851_v39 = vadd.f32 %v10276_v36, %v3832_v48 }
 0x30c   :  { %v3640_v27 = vpop.permute.xlu0 %3639  ;;  %v3754_v24 = vadd.f32 %v11332_v11, %v3677_v60 }
 0x30d   :  { %v3864_v16 = vmax.f32 %v3851_v39, 0.0  ;;  %v3676_v35 = vadd.f32 %v3640_v27, %v10203_v44  ;;  %v3800_v21 = vpop.permute.xlu1 %3799  ;;  %v11338_v39 = vld [vmem:[#allocation10_spill] sm:$0xff] }
 0x30e   :  { %v3835_v41 = vadd.f32 %v3800_v21, %v3754_v24 }
 0x30f   :  { %v3877_v2 = vpack.c.bf16 %v3865_v4, %v3864_v16  ;;  %v3753_v46 = vadd.f32 %v11333_v47, %v3676_v35  ;;  %v7916_v16 = vld [vmem:[%s11133_s5 + $0xb0] ss:$8 sps:$4 sm:$0xff]  }
 0x310   :  { %v3798_v61 = vpop.permute.xlu0 %3797  ;;  %v3854_v3 = vadd.f32 %v10276_v36, %v3835_v41 }
 0x311   :  { %3884 = vst.msk [vmem:[#allocation4] sm:$0xff] %vm56_vm0, %v3877_v2  ;;  %v3834_v14 = vadd.f32 %v3798_v61, %v3753_v46  ;;  %v3646_v42 = vpop.permute.xlu1 %3645 }
 0x312   :  { %v3679_v13 = vadd.f32 %v3646_v42, %v10223_v10  ;;  %v3867_v44 = vmax.f32 %v3854_v3, 0.0  ;;  %v7912_v10 = vld [vmem:[%s11133_s5 + $0x94] ss:$8 sps:$4 sm:$0xff]  }
 0x313   :  { %v3853_v8 = vadd.f32 %v10276_v36, %v3834_v14  ;;  %v11339_v3 = vld [vmem:[#allocation14_spill] sm:$0xff]  ;;  %v3699_v42 = vld [vmem:[#allocation3 + $0xd8] sm:$0x3f] }
 0x314   :  { %v3644_v29 = vpop.permute.xlu0 %3643  ;;  %v3756_v32 = vadd.f32 %v11334_v63, %v3679_v13 }
 0x315   :  { %v3866_v58 = vmax.f32 %v3853_v8, 0.0  ;;  %v3678_v25 = vadd.f32 %v3644_v29, %v10220_v17  ;;  %v3648_v18 = vpop.permute.xlu1 %3647 }
 0x316   :  { %v3680_v43 = vadd.f32 %v3648_v18, %v10235_v33 }
 0x317   :  { %v3878_v28 = vpack.c.bf16 %v3867_v44, %v3866_v58  ;;  %v3755_v6 = vadd.f32 %v11335_v55, %v3678_v25  ;;  %v11340_v55 = vrot.slane %v10046_v30, 2 }
 0x318   :  { %v3802_v40 = vpop.permute.xlu0 %3801  ;;  %v10301_v5 = vld [vmem:[#allocation4] sm:$0xff]  ;;  %v3757_v57 = vadd.f32 %v11336_v56, %v3680_v43 }
 0x319   :  { %3885 = vst.msk [vmem:[#allocation4 + $0x8] sm:$0xff] %vm56_vm0, %v3878_v28  ;;  %v3836_v17 = vadd.f32 %v3802_v40, %v3755_v6  ;;  %6991 = vmatmul.mubr.msk.bf16.vlgmr.msra.gmra.mrb[108].mxu0 %vm56_vm0, %v10301_v5  ;;  %7015 = vmatmul.mubr.msk.bf16.vlgmr.msra.gmra.mrb[108].mxu1 %vm56_vm0, %v10301_v5  ;;  %v3804_v33 = vpop.permute.xlu1 %3803 }
 0x31a   :  { %v3837_v45 = vadd.f32 %v3804_v33, %v3756_v32  ;;  %4797 = vmatpush1.bf16.msra.mxu0 %v7907_v15  ;;  %4015 = vmatprep.mubr.bf16.mxu0 %v10208_v0 }
 0x31b   :  { %v3855_v12 = vadd.f32 %v10276_v36, %v3836_v17  ;;  %4404 = vmatprep.mubr.bf16.mxu1 %v10208_v0  ;;  %4798 = vmatprep.subr.bf16.mxu0 %v7912_v10 }
 0x31c   :  { %v3856_v22 = vadd.f32 %v10276_v36, %v3837_v45  ;;  %v3650_v38 = vpop.permute.xlu0 %3649 }
 0x31d   :  { %v3868_v59 = vmax.f32 %v3855_v12, 0.0  ;;  %v3681_v62 = vadd.f32 %v3650_v38, %v10245_v49  ;;  %v3652_v19 = vpop.permute.xlu1 %3651  ;;  %v7918_v49 = vld [vmem:[%s11133_s5 + $0xb4] ss:$8 sps:$4 sm:$0xff]  }
 0x31e   :  { %v3869_v26 = vmax.f32 %v3856_v22, 0.0  ;;  %v3682_v53 = vadd.f32 %v3652_v19, %v10252_v52  ;;  %4799 = vmatpush1.bf16.msra.mxu0 %v7910_v37 }
 0x31f   :  { %v3758_v20 = vadd.f32 %v11337_v7, %v3681_v62  ;;  %4800 = vmatprep.subr.bf16.mxu0 %v7915_v34 }
 0x320   :  { %v3879_v48 = vpack.c.bf16 %v3869_v26, %v3868_v59  ;;  %v3806_v50 = vpop.permute.xlu0 %3805  ;;  %v10325_v60 = vld [vmem:[#allocation4 + $0x8] sm:$0xff]  ;;  %v3759_v27 = vadd.f32 %v11338_v39, %v3682_v53 }
 0x321   :  { %v3838_v11 = vadd.f32 %v3806_v50, %v3757_v57  ;;  %6992 = vmatmul.mubr.msk.bf16.gmra.mrb[112].mxu0 %vm56_vm0, %v10325_v60  ;;  %7016 = vmatmul.mubr.msk.bf16.gmra.mrb[112].mxu1 %vm56_vm0, %v10325_v60  ;;  %v3808_v52 = vpop.permute.xlu1 %3807 }
 0x322   :  { %3886 = vst.msk [vmem:[#allocation4 + $0x10] sm:$0xff] %vm56_vm0, %v3879_v48  ;;  %v3839_v24 = vadd.f32 %v3808_v52, %v3758_v20  ;;  %4025 = vmatprep.mubr.bf16.mxu0 %v10208_v0  ;;  %4414 = vmatprep.mubr.bf16.mxu1 %v10208_v0 }
 0x323   :  { %v3857_v4 = vadd.f32 %v10276_v36, %v3838_v11  ;;  %4801 = vmatpush1.bf16.msra.mxu0 %v7913_v31 }
 0x324   :  { %v3858_v35 = vadd.f32 %v10276_v36, %v3839_v24  ;;  %v3654_v21 = vpop.permute.xlu0 %3653  ;;  %4802 = vmatprep.subr.bf16.mxu0 %v7918_v49 }
 0x325   :  { %v3870_v41 = vmax.f32 %v3857_v4, 0.0  ;;  %v3683_v2 = vadd.f32 %v3654_v21, %v10260_v1  ;;  %v3656_v47 = vpop.permute.xlu1 %3655  ;;  %v3736_v1 = vrot.slane %v3699_v42, 2 }
 0x326   :  { %v3871_v46 = vmax.f32 %v3858_v35, 0.0  ;;  %v3684_v61 = vadd.f32 %v3656_v47, %v10267_v23 }
 0x327   :  { %v3760_v14 = vadd.f32 %v11339_v3, %v3683_v2  ;;  %4803 = vmatpush1.bf16.msra.mxu0 %v7916_v16  ;;  %v3737_v6 = vsel %vm1578_vm2, %v11340_v55, %v3736_v1 }
 0x328   :  { %v3880_v13 = vpack.c.bf16 %v3871_v46, %v3870_v41  ;;  %v3810_v8 = vpop.permute.xlu0 %3809  ;;  %v3761_v29 = vadd.f32 %v10078_v9, %v3684_v61 }
 0x329   :  { %v3840_v63 = vadd.f32 %v3810_v8, %v3759_v27  ;;  %v3812_v32 = vpop.permute.xlu1 %3811  ;;  %v10347_v44 = vld [vmem:[#allocation4 + $0x10] sm:$0xff] }
 0x32a   :  { %3887 = vst.msk [vmem:[#allocation4 + $0x18] sm:$0xff] %vm56_vm0, %v3880_v13  ;;  %v3841_v58 = vadd.f32 %v3812_v32, %v3760_v14  ;;  %6993 = vmatmul.mubr.msk.bf16.gmra.mrb[116].mxu0 %vm56_vm0, %v10347_v44  ;;  %7017 = vmatmul.mubr.msk.bf16.gmra.mrb[116].mxu1 %vm56_vm0, %v10347_v44 }
 0x32b   :  { %v3859_v23 = vadd.f32 %v10276_v36, %v3840_v63  ;;  %4035 = vmatprep.mubr.bf16.mxu0 %v10208_v0  ;;  %4424 = vmatprep.mubr.bf16.mxu1 %v10208_v0 }
 0x32c   :  { %v3860_v9 = vadd.f32 %v10276_v36, %v3841_v58  ;;  %v3658_v25 = vpop.permute.xlu0 %3657 }
 0x32d   :  { %v3872_v18 = vmax.f32 %v3859_v23, 0.0  ;;  %v3685_v43 = vadd.f32 %v3658_v25, %v10270_v51  ;;  %v3141_v15 = vpop.permute.xlu1 %3140  ;;  %v3581_v51 = vld [vmem:[#allocation3 + $0xc0] sm:$0xf] }
 0x32e   :  { %v3873_v28 = vmax.f32 %v3860_v9, 0.0  ;;  %v3167_v10 = vadd.f32 %v3141_v15, %v10257_v54 }
 0x32f   :  { %v3762_v40 = vadd.f32 %v3737_v6, %v3685_v43 }
 0x330   :  { %v3881_v56 = vpack.c.bf16 %v3873_v28, %v3872_v18  ;;  %v3814_v57 = vpop.permute.xlu0 %3813  ;;  %v3594_v12 = vadd.f32 %v3581_v51, %v3167_v10 }
 0x331   :  { %v3842_v17 = vadd.f32 %v3814_v57, %v3761_v29  ;;  %v3816_v33 = vpop.permute.xlu1 %3815  ;;  %v3896_v45 = vld [vmem:[#allocation4 + $0x18] sm:$0xff] }
 0x332   :  { %3888 = vst.msk [vmem:[#allocation4 + $0x20] sm:$0xff] %vm56_vm0, %v3881_v56  ;;  %v3843_v37 = vadd.f32 %v3816_v33, %v3762_v40  ;;  %6994 = vmatmul.mubr.msk.bf16.gmra.mrb[120].mxu0 %vm56_vm0, %v3896_v45  ;;  %7018 = vmatmul.mubr.msk.bf16.gmra.mrb[120].mxu1 %vm56_vm0, %v3896_v45 }
 0x333   :  { %v3861_v30 = vadd.f32 %v10276_v36, %v3842_v17  ;;  %4045 = vmatprep.mubr.bf16.mxu0 %v10208_v0  ;;  %4434 = vmatprep.mubr.bf16.mxu1 %v10208_v0 }
 0x334   :  { %v3862_v54 = vadd.f32 %v10276_v36, %v3843_v37  ;;  %v3660_v34 = vpop.permute.xlu0 %3659 }
 0x335   :  { %v3874_v22 = vmax.f32 %v3861_v30, 0.0  ;;  %v3686_v38 = vadd.f32 %v3660_v34, %v3594_v12  ;;  %v3818_v26 = vpop.permute.xlu1 %3817 }
 0x336   :  { %v3875_v59 = vmax.f32 %v3862_v54, 0.0 }
 0x337   :  { %v3763_v62 = vadd.f32 %v3736_v1, %v3686_v38 }
 0x338   :  { %v3882_v19 = vpack.c.bf16 %v3875_v59, %v3874_v22 }
 0x339   :  { %v3844_v53 = vadd.f32 %v3818_v26, %v3763_v62  ;;  %v3897_v7 = vld [vmem:[#allocation4 + $0x20] sm:$0xff] }
 0x33a   :  { %3889 = vst.msk [vmem:[#allocation4 + $0x28] sm:$0xff] %vm56_vm0, %v3882_v19  ;;  %6995 = vmatmul.mubr.msk.bf16.gmra.mrb[124].mxu0 %vm56_vm0, %v3897_v7  ;;  %7019 = vmatmul.mubr.msk.bf16.gmra.mrb[124].mxu1 %vm56_vm0, %v3897_v7 }
 0x33b   :  { %v3863_v20 = vadd.f32 %v10276_v36, %v3844_v53  ;;  %4055 = vmatprep.mubr.bf16.mxu0 %v10208_v0  ;;  %4444 = vmatprep.mubr.bf16.mxu1 %v10208_v0  ;;  %v3900_v36 = vld [vmem:[#allocation4 + $0x38] sm:$0xff] }
 0x33d   :  { %v3876_v31 = vmax.f32 %v3863_v20, 0.0 }
 0x33f   :  { %v3883_v48 = vpack.c.bf16 %v3876_v31, %v3876_v31 }
 0x341   :  { %3891 = vst.msk [vmem:[#allocation4 + $0x30] sm:$0x3] %vm3890_vm5, %v3883_v48  ;;  %v3898_v50 = vld [vmem:[#allocation4 + $0x28] sm:$0xff] }
 0x342   :  { %6996 = vmatmul.mubr.msk.bf16.gmra.mrb[128].mxu0 %vm56_vm0, %v3898_v50  ;;  %7020 = vmatmul.mubr.msk.bf16.gmra.mrb[128].mxu1 %vm56_vm0, %v3898_v50 }
 0x343   :  { %4065 = vmatprep.mubr.bf16.mxu0 %v10208_v0  ;;  %4454 = vmatprep.mubr.bf16.mxu1 %v10208_v0 }
 0x348   :  { %v3899_v39 = vld [vmem:[#allocation4 + $0x30] sm:$0xff] }
 0x34a   :  { %6997 = vmatmul.mubr.msk.bf16.gmra.mrb[132].mxu0 %vm56_vm0, %v3899_v39  ;;  %7021 = vmatmul.mubr.msk.bf16.gmra.mrb[132].mxu1 %vm56_vm0, %v3899_v39 }
 0x34b   :  { %4075 = vmatprep.mubr.bf16.mxu0 %v10208_v0  ;;  %4464 = vmatprep.mubr.bf16.mxu1 %v10208_v0 }
 0x352   :  { %6998 = vmatmul.mubr.msk.bf16.gmra.mrb[136].mxu0 %vm56_vm0, %v3900_v36  ;;  %7022 = vmatmul.mubr.msk.bf16.gmra.mrb[136].mxu1 %vm56_vm0, %v3900_v36 }
 0x353   :  { %4828 = vmatprep.mubr.bf16.mxu0 %v10208_v0 }
 0x35a   :  { %7039 = vmatmul.mubr.msk.bf16.vlgmr.msra.gmra.mrb[140].mxu0 %vm56_vm0, %v10301_v5 }
 0x35b   :  { %4838 = vmatprep.mubr.bf16.mxu0 %v10208_v0 }
 0x362   :  { %7040 = vmatmul.mubr.msk.bf16.gmra.mrb[144].mxu0 %vm56_vm0, %v10325_v60 }
 0x363   :  { %4848 = vmatprep.mubr.bf16.mxu0 %v10208_v0 }
 0x36a   :  { %7041 = vmatmul.mubr.msk.bf16.gmra.mrb[148].mxu0 %vm56_vm0, %v10347_v44 }
 0x36b   :  { %4858 = vmatprep.mubr.bf16.mxu0 %v10208_v0 }
 0x372   :  { %7042 = vmatmul.mubr.msk.bf16.gmra.mrb[152].mxu0 %vm56_vm0, %v3896_v45 }
 0x373   :  { %4868 = vmatprep.mubr.bf16.mxu0 %v10208_v0 }
 0x37a   :  { %7043 = vmatmul.mubr.msk.bf16.gmra.mrb[156].mxu0 %vm56_vm0, %v3897_v7 }
 0x37b   :  { %4878 = vmatprep.mubr.bf16.mxu0 %v10208_v0 }
 0x382   :  { %7044 = vmatmul.mubr.msk.bf16.gmra.mrb[160].mxu0 %vm56_vm0, %v3898_v50 }
 0x383   :  { %4888 = vmatprep.mubr.bf16.mxu0 %v10208_v0 }
 0x38a   :  { %7045 = vmatmul.mubr.msk.bf16.gmra.mrb[164].mxu0 %vm56_vm0, %v3899_v39 }
 0x38b   :  { %4898 = vmatprep.mubr.bf16.mxu0 %v10208_v0 }
 0x392   :  { %7046 = vmatmul.mubr.msk.bf16.gmra.mrb[168].mxu0 %vm56_vm0, %v3900_v36 }
 0x3ec   :  { %v10405_v5 = vpop.f32.mrb[108].mxu0  ;;  %v4396_v60 = vpop.f32.mrb[108].mxu1 }
 0x3ed   :  { %4086 = vst [vmem:[#allocation3] sm:$0xff] %v10405_v5  ;;  %v4009_v27 = vpop.f32.mrb[109].mxu0  ;;  %v4398_v49 = vpop.f32.mrb[109].mxu1 }
 0x3ee   :  { %4087 = vst [vmem:[#allocation3 + $0x8] sm:$0xff] %v4009_v27  ;;  %v10408_v11 = vpop.f32.mrb[110].mxu0  ;;  %v4400_v52 = vpop.f32.mrb[110].mxu1 }
 0x3ef   :  { %4477 = vst [vmem:[#allocation3 + $0x10] sm:$0xff] %v4400_v52  ;;  %v4013_v24 = vpop.f32.mrb[111].mxu0  ;;  %v4402_v4 = vpop.f32.mrb[111].mxu1  ;;  %v4160_v16 = vrot.slane %v10408_v11, 2 }
 0x3f0   :  { %4478 = vst [vmem:[#allocation3 + $0x18] sm:$0xff] %v4402_v4  ;;  %v4263_v41 = vrot.slane %v4013_v24, 4 }
 0x3f4   :  { %v10411_v0 = vpop.f32.mrb[112].mxu0  ;;  %v4406_v35 = vpop.f32.mrb[112].mxu1  ;;  %v4144_v21 = vld [vmem:[#allocation3] sm:$0xfc] }
 0x3f5   :  { %v4236_v2 = vld [vmem:[#allocation3 + $0x8] sm:$0xf0]  ;;  %v4162_v47 = vrot.slane %v10411_v0, 2  ;;  %v4019_v46 = vpop.f32.mrb[113].mxu0  ;;  %v4408_v61 = vpop.f32.mrb[113].mxu1  ;;  %v4159_v3 = vrot.slane %v4144_v21, 2 }
 0x3f6   :  { %v4262_v14 = vrot.slane %v4236_v2, 4  ;;  %v4265_v42 = vrot.slane %v4019_v46, 4  ;;  %v10414_v13 = vpop.f32.mrb[114].mxu0  ;;  %v4410_v8 = vpop.f32.mrb[114].mxu1  ;;  %v4584_v29 = vld [vmem:[#allocation3 + $0x10] sm:$0xf0] }
 0x3f7   :  { %v4164_v63 = vrot.slane %v10414_v13, 2  ;;  %v4023_v32 = vpop.f32.mrb[115].mxu0  ;;  %v4412_v44 = vpop.f32.mrb[115].mxu1  ;;  %v4161_v58 = vsel %vm1578_vm2, %v4159_v3, %v4160_v16  ;;  %v4588_v1 = vrot.slane %v4584_v29, 4  ;;  %v4589_v23 = vrot.slane %v4406_v35, 4 }
 0x3f8   :  { %v4267_v9 = vrot.slane %v4023_v32, 4  ;;  %4184 = vrot.lane.b32.xlu0 %v4161_v58, %s8027_s3  ;;  %v4163_v25 = vsel %vm1578_vm2, %v4160_v16, %v4162_v47  ;;  %v4507_v18 = vld [vmem:[#allocation3 + $0x10] sm:$0xfc]  ;;  %v4695_v43 = vrot.slane %v4408_v61, 6  ;;  %v4536_v15 = vrot.slane %v4410_v8, 2 }
 0x3f9   :  { %v4590_v28 = vsel %vm1096_vm1, %v4588_v1, %v4589_v23  ;;  %v4591_v55 = vrot.slane %v4410_v8, 4  ;;  %v4697_v6 = vrot.slane %v4412_v44, 6  ;;  %v10422_v10 = vsel %vm1578_vm2, %v4162_v47, %v4164_v63  ;;  %v4665_v40 = vld [vmem:[#allocation3 + $0x18] sm:$0xc0] }
 0x3fa   :  { %4613 = vrot.lane.b32.xlu1 %v4590_v28, %s8027_s3  ;;  %v10426_v56 = vsel %vm1096_vm1, %v4262_v14, %v4263_v41  ;;  %v4533_v57 = vrot.slane %v4507_v18, 2  ;;  %v4534_v17 = vrot.slane %v4406_v35, 2  ;;  %v4694_v33 = vrot.slane %v4665_v40, 6 }
 0x3fb   :  { %v10429_v45 = vsel %vm1096_vm1, %v4589_v23, %v4591_v55  ;;  %v10432_v37 = vsel %vm1096_vm1, %v4263_v41, %v4265_v42  ;;  %v10435_v51 = vsel %vm3233_vm3, %v4695_v43, %v4697_v6  ;;  %v10438_v30 = vsel %vm1096_vm1, %v4265_v42, %v4267_v9 }
 0x3fc   :  { %v10441_v12 = vsel %vm1578_vm2, %v4533_v57, %v4534_v17  ;;  %v10444_v54 = vsel %vm3233_vm3, %v4694_v33, %v4695_v43  ;;  %v10447_v34 = vsel %vm1578_vm2, %v4534_v17, %v4536_v15  ;;  %v11187_v44 = vmov 0.0   ;;  %v7919_v17 = vld [vmem:[%s11135_s7 + $0x20] sm:$0xff]  }
 0x3fd   :  { %v10449_v22 = vpop.f32.mrb[116].mxu0  ;;  %v4416_v38 = vpop.f32.mrb[116].mxu1  ;;  %7366 = vmatprep.subr.bf16.mxu1 %v11187_v44  ;;  %7414 = vmatprep.subr.bf16.mxu0 %v11187_v44 }
 0x3fe   :  { %v4166_v59 = vrot.slane %v10449_v22, 2  ;;  %v4029_v62 = vpop.f32.mrb[117].mxu0  ;;  %v4418_v19 = vpop.f32.mrb[117].mxu1  ;;  %4186 = vrot.lane.b32.xlu1 %v4163_v25, %s8027_s3  ;;  %v4538_v26 = vrot.slane %v4416_v38, 2  ;;  %v4593_v53 = vrot.slane %v4416_v38, 4  ;;  %7367 = vmatpush3.bf16.msra.mxu1 %v7919_v17 }
 0x3ff   :  { %v4269_v7 = vrot.slane %v4029_v62, 4  ;;  %v10453_v20 = vpop.f32.mrb[118].mxu0  ;;  %v4420_v31 = vpop.f32.mrb[118].mxu1  ;;  %v4699_v48 = vrot.slane %v4418_v19, 6  ;;  %7368 = vmatprep.subr.bf16.mxu1 %v11187_v44 }
 0x400   :  { %v4168_v50 = vrot.slane %v10453_v20, 2  ;;  %v4033_v39 = vpop.f32.mrb[119].mxu0  ;;  %v4422_v36 = vpop.f32.mrb[119].mxu1  ;;  %v4540_v60 = vrot.slane %v4420_v31, 2  ;;  %v4595_v27 = vrot.slane %v4420_v31, 4  ;;  %v10457_v49 = vsel %vm1096_vm1, %v4591_v55, %v4593_v53 }
 0x401   :  { %v4271_v52 = vrot.slane %v4033_v39, 4  ;;  %v4701_v24 = vrot.slane %v4422_v36, 6  ;;  %v10460_v4 = vsel %vm1578_vm2, %v4164_v63, %v4166_v59  ;;  %v10463_v16 = vsel %vm1578_vm2, %v4536_v15, %v4538_v26 }
 0x402   :  { %v10466_v35 = vsel %vm1578_vm2, %v4166_v59, %v4168_v50  ;;  %v10469_v21 = vsel %vm1096_vm1, %v4593_v53, %v4595_v27  ;;  %v10472_v41 = vsel %vm3233_vm3, %v4697_v6, %v4699_v48  ;;  %v10475_v2 = vsel %vm1096_vm1, %v4267_v9, %v4269_v7 }
 0x403   :  { %v10478_v47 = vsel %vm1096_vm1, %v4269_v7, %v4271_v52  ;;  %v10481_v46 = vsel %vm1578_vm2, %v4538_v26, %v4540_v60  ;;  %v10484_v61 = vsel %vm3233_vm3, %v4699_v48, %v4701_v24 }
 0x405   :  { %v10486_v3 = vpop.f32.mrb[120].mxu0  ;;  %v4426_v14 = vpop.f32.mrb[120].mxu1 }
 0x406   :  { %11341 = vst [vmem:[#allocation11_spill] sm:$0xff] %v10486_v3  ;;  %v4170_v42 = vrot.slane %v10486_v3, 2  ;;  %v4039_v8 = vpop.f32.mrb[121].mxu0  ;;  %v4428_v29 = vpop.f32.mrb[121].mxu1  ;;  %v4542_v63 = vrot.slane %v4426_v14, 2  ;;  %v4597_v32 = vrot.slane %v4426_v14, 4 }
 0x407   :  { %v4273_v58 = vrot.slane %v4039_v8, 4  ;;  %v10491_v1 = vpop.f32.mrb[122].mxu0  ;;  %v4430_v23 = vpop.f32.mrb[122].mxu1  ;;  %v4703_v9 = vrot.slane %v4428_v29, 6 }
 0x408   :  { %11342 = vst [vmem:[#allocation40_spill] sm:$0xff] %v10491_v1  ;;  %v4172_v25 = vrot.slane %v10491_v1, 2  ;;  %v4043_v18 = vpop.f32.mrb[123].mxu0  ;;  %v4432_v43 = vpop.f32.mrb[123].mxu1  ;;  %v4544_v15 = vrot.slane %v4430_v23, 2  ;;  %v4599_v28 = vrot.slane %v4430_v23, 4  ;;  %v10495_v55 = vsel %vm1096_vm1, %v4595_v27, %v4597_v32 }
 0x409   :  { %v4275_v6 = vrot.slane %v4043_v18, 4  ;;  %v4705_v40 = vrot.slane %v4432_v43, 6  ;;  %v10498_v57 = vsel %vm1578_vm2, %v4168_v50, %v4170_v42  ;;  %v10504_v33 = vsel %vm1578_vm2, %v4540_v60, %v4542_v63 }
 0x40a   :  { %v10507_v38 = vsel %vm1096_vm1, %v4597_v32, %v4599_v28  ;;  %v10510_v59 = vsel %vm1578_vm2, %v4170_v42, %v4172_v25  ;;  %v10513_v62 = vsel %vm3233_vm3, %v4701_v24, %v4703_v9  ;;  %v10516_v19 = vsel %vm1096_vm1, %v4271_v52, %v4273_v58 }
 0x40b   :  { %v10519_v26 = vsel %vm1578_vm2, %v4542_v63, %v4544_v15  ;;  %v10522_v53 = vsel %vm3233_vm3, %v4703_v9, %v4705_v40  ;;  %v10525_v7 = vsel %vm1096_vm1, %v4273_v58, %v4275_v6 }
 0x40c   :  { %11343 = vst [vmem:[#allocation15_spill] sm:$0xff] %v10519_v26  ;;  %11344 = vst [vmem:[#allocation12_spill] sm:$0xff] %v10522_v53 }
 0x40d   :  { %11345 = vst [vmem:[#allocation16_spill] sm:$0xff] %v10525_v7  ;;  %v4047_v31 = vpop.f32.mrb[124].mxu0  ;;  %v4436_v48 = vpop.f32.mrb[124].mxu1 }
 0x40e   :  { %v4174_v50 = vrot.slane %v4047_v31, 2  ;;  %v4049_v39 = vpop.f32.mrb[125].mxu0  ;;  %v4438_v36 = vpop.f32.mrb[125].mxu1  ;;  %v4546_v60 = vrot.slane %v4436_v48, 2  ;;  %v4601_v27 = vrot.slane %v4436_v48, 4 }
 0x40f   :  { %v4277_v52 = vrot.slane %v4049_v39, 4  ;;  %v4051_v24 = vpop.f32.mrb[126].mxu0  ;;  %v4440_v14 = vpop.f32.mrb[126].mxu1  ;;  %v4707_v42 = vrot.slane %v4438_v36, 6 }
 0x410   :  { %v4176_v8 = vrot.slane %v4051_v24, 2  ;;  %v4053_v29 = vpop.f32.mrb[127].mxu0  ;;  %v4442_v63 = vpop.f32.mrb[127].mxu1  ;;  %v4548_v32 = vrot.slane %v4440_v14, 2  ;;  %v4603_v23 = vrot.slane %v4440_v14, 4  ;;  %v10529_v58 = vsel %vm1096_vm1, %v4599_v28, %v4601_v27 }
 0x411   :  { %v4709_v9 = vrot.slane %v4442_v63, 6  ;;  %v10532_v18 = vsel %vm1578_vm2, %v4172_v25, %v4174_v50  ;;  %v10535_v43 = vsel %vm1578_vm2, %v4544_v15, %v4546_v60  ;;  %v10544_v48 = vsel %vm3233_vm3, %v4705_v40, %v4707_v42 }
 0x412   :  { %11346 = vst [vmem:[#allocation17_spill] sm:$0xff] %v10535_v43  ;;  %v10538_v17 = vsel %vm1096_vm1, %v4601_v27, %v4603_v23  ;;  %v10541_v31 = vsel %vm1578_vm2, %v4174_v50, %v4176_v8  ;;  %11347 = vst [vmem:[#allocation48_spill] sm:$0xff] %v10544_v48  ;;  %v10547_v39 = vsel %vm1096_vm1, %v4275_v6, %v4277_v52 }
 0x413   :  { %11348 = vst [vmem:[#allocation21_spill] sm:$0xff] %v10547_v39  ;;  %v10550_v28 = vsel %vm1578_vm2, %v4546_v60, %v4548_v32  ;;  %v10553_v25 = vsel %vm3233_vm3, %v4707_v42, %v4709_v9  ;;  %v7920_v32 = vld [vmem:[%s11135_s7 + $0x28] sm:$0xff]  }
 0x414   :  { %11349 = vst [vmem:[#allocation20_spill] sm:$0xff] %v10550_v28  ;;  %11350 = vst [vmem:[#allocation25_spill] sm:$0xff] %v10553_v25  ;;  %7369 = vmatpush3.bf16.msra.mxu1 %v7920_v32 }
 0x415   :  { %v4057_v15 = vpop.f32.mrb[128].mxu0  ;;  %v4446_v36 = vpop.f32.mrb[128].mxu1 }
 0x416   :  { %v4178_v24 = vrot.slane %v4057_v15, 2  ;;  %v4059_v27 = vpop.f32.mrb[129].mxu0  ;;  %v4448_v14 = vpop.f32.mrb[129].mxu1  ;;  %v4605_v29 = vrot.slane %v4446_v36, 4 }
 0x417   :  { %v10555_v50 = vpop.f32.mrb[130].mxu0  ;;  %v4450_v63 = vpop.f32.mrb[130].mxu1 }
 0x418   :  { %v11189_v40 = vrot.slane %v10555_v50, 2  ;;  %v4063_v44 = vpop.f32.mrb[131].mxu0  ;;  %v4452_v6 = vpop.f32.mrb[131].mxu1  ;;  %v4607_v52 = vrot.slane %v4450_v63, 4  ;;  %v10559_v60 = vsel %vm1578_vm2, %v4176_v8, %v4178_v24  ;;  %v10562_v42 = vsel %vm1096_vm1, %v4603_v23, %v4605_v29 }
 0x419   :  { %v7921_v44 = vld [vmem:[%s11135_s7 + $0x30] sm:$0xff]   ;;  %v11351_v8 = vmov 0.0  }
 0x41a   :  { %v10570_v9 = vsel %vm1578_vm2, %v4178_v24, %v11189_v40  ;;  %v10573_v15 = vsel %vm1096_vm1, %v4605_v29, %v4607_v52  ;;  %7370 = vmatprep.subr.bf16.mxu1 %v11351_v8  ;;  %7374 = vmatprep.mubr.msk.bf16.mxu1 %vm8029_vm6, %v11351_v8 }
 0x41b   :  { %7371 = vmatpush3.bf16.msra.mxu1 %v7921_v44  ;;  %7422 = vmatprep.mubr.msk.bf16.mxu0 %vm8029_vm6, %v11351_v8 }
 0x41c   :  { %7372 = vmatprep.subr.bf16.mxu1 %v11351_v8 }
 0x41d   :  { %v4067_v23 = vpop.f32.mrb[132].mxu0  ;;  %v4456_v36 = vpop.f32.mrb[132].mxu1 }
 0x41e   :  { %4110 = vst [vmem:[#allocation3 + $0xc0] sm:$0xff] %v4067_v23  ;;  %v4069_v27 = vpop.f32.mrb[133].mxu0  ;;  %v4458_v14 = vpop.f32.mrb[133].mxu1  ;;  %v4609_v63 = vrot.slane %v4456_v36, 4 }
 0x41f   :  { %v4071_v6 = vpop.f32.mrb[134].mxu0  ;;  %v10579_v25 = vpop.f32.mrb[134].mxu1 }
 0x420   :  { %4501 = vst [vmem:[#allocation3 + $0xd0] sm:$0xff] %v10579_v25  ;;  %v4073_v24 = vpop.f32.mrb[135].mxu0  ;;  %v4462_v29 = vpop.f32.mrb[135].mxu1  ;;  %v10583_v32 = vsel %vm1096_vm1, %v4607_v52, %v4609_v63  ;;  %v11190_v40 = vrot.slane %v10579_v25, 4 }
 0x422   :  { %v10590_v23 = vsel %vm1096_vm1, %v4609_v63, %v11190_v40 }
 0x425   :  { %v4077_v36 = vpop.f32.mrb[136].mxu0  ;;  %v4466_v27 = vpop.f32.mrb[136].mxu1 }
 0x426   :  { %v4079_v14 = vpop.f32.mrb[137].mxu0  ;;  %v4468_v44 = vpop.f32.mrb[137].mxu1 }
 0x427   :  { %v4081_v6 = vpop.f32.mrb[138].mxu0  ;;  %4504 = vst [vmem:[#allocation3 + $0xe8] sm:$0xff] %v4468_v44  ;;  %v4470_v24 = vpop.f32.mrb[138].mxu1 }
 0x428   :  { %v4083_v29 = vpop.f32.mrb[139].mxu0  ;;  %v4472_v48 = vpop.f32.mrb[139].mxu1 }
 0x42d   :  { %v4830_v52 = vpop.f32.mrb[140].mxu0 }
 0x42e   :  { %v4832_v28 = vpop.f32.mrb[141].mxu0  ;;  %4909 = vst [vmem:[#allocation3] sm:$0xff] %v4830_v52 }
 0x42f   :  { %4910 = vst [vmem:[#allocation3 + $0x8] sm:$0xff] %v4832_v28  ;;  %v4834_v43 = vpop.f32.mrb[142].mxu0 }
 0x430   :  { %4911 = vst [vmem:[#allocation3 + $0x10] sm:$0xff] %v4834_v43  ;;  %v4836_v39 = vpop.f32.mrb[143].mxu0 }
 0x431   :  { %4912 = vst [vmem:[#allocation3 + $0x18] sm:$0xff] %v4836_v39 }
 0x435   :  { %v4840_v7 = vpop.f32.mrb[144].mxu0 }
 0x436   :  { %4913 = vst [vmem:[#allocation3 + $0x20] sm:$0xff] %v4840_v7  ;;  %v4842_v63 = vpop.f32.mrb[145].mxu0 }
 0x437   :  { %v10592_v36 = vpop.f32.mrb[146].mxu0 }
 0x438   :  { %v10594_v27 = vpop.f32.mrb[147].mxu0  ;;  %v5023_v24 = vrot.slane %v10592_v36, 6  ;;  %v11193_v43 = vrot.slane %v10592_v36, 4 }
 0x43d   :  { %v4850_v14 = vpop.f32.mrb[148].mxu0  ;;  %v5018_v44 = vld [vmem:[#allocation3 + $0x20] sm:$0xc0] }
 0x43e   :  { %v10596_v6 = vpop.f32.mrb[149].mxu0  ;;  %v5022_v48 = vrot.slane %v5018_v44, 6  ;;  %v5025_v29 = vrot.slane %v4850_v14, 6  ;;  %v4970_v28 = vrot.slane %v4850_v14, 4 }
 0x43f   :  { %v4854_v52 = vpop.f32.mrb[150].mxu0 }
 0x440   :  { %v10600_v39 = vpop.f32.mrb[151].mxu0  ;;  %v5024_v7 = vsel %vm3233_vm3, %v5022_v48, %v5023_v24  ;;  %v5026_v63 = vsel %vm3233_vm3, %v5023_v24, %v5025_v29  ;;  %v5027_v40 = vrot.slane %v4854_v52, 6  ;;  %v10609_v44 = vsel %vm1096_vm1, %v11193_v43, %v4970_v28 }
 0x441   :  { %5049 = vrot.lane.b32.xlu0 %v5024_v7, %s8027_s3  ;;  %5051 = vrot.lane.b32.xlu1 %v5026_v63, %s8027_s3  ;;  %v4972_v14 = vrot.slane %v4854_v52, 4 }
 0x442   :  { %v5028_v1 = vsel %vm3233_vm3, %v5025_v29, %v5027_v40 }
 0x443   :  { %v10613_v3 = vsel %vm1096_vm1, %v4970_v28, %v4972_v14  ;;  %v7922_v28 = vld [vmem:[%s11135_s7 + $0x38] sm:$0xff]  }
 0x444   :  { %7373 = vmatpush3.bf16.msra.mxu1 %v7922_v28 }
 0x445   :  { %v4860_v53 = vpop.f32.mrb[152].mxu0  ;;  %4615 = vrot.lane.b32.xlu0 %v10429_v45, %s8027_s3  ;;  %4617 = vrot.lane.b32.xlu1 %v10457_v49, %s8027_s3 }
 0x446   :  { %v10619_v48 = vpop.f32.mrb[153].mxu0  ;;  %v5029_v24 = vrot.slane %v4860_v53, 6  ;;  %v4974_v7 = vrot.slane %v4860_v53, 4  ;;  %7378 = vmatprep.subr.bf16.mxu1 %v11351_v8 }
 0x447   :  { %v4864_v63 = vpop.f32.mrb[154].mxu0 }
 0x448   :  { %v10621_v43 = vpop.f32.mrb[155].mxu0  ;;  %v5030_v52 = vsel %vm3233_vm3, %v5027_v40, %v5029_v24  ;;  %v5031_v29 = vrot.slane %v4864_v63, 6  ;;  %v10628_v26 = vsel %vm1096_vm1, %v4972_v14, %v4974_v7  ;;  %v4976_v45 = vrot.slane %v4864_v63, 4 }
 0x449   :  { %4188 = vrot.lane.b32.xlu0 %v10422_v10, %s8027_s3  ;;  %4190 = vrot.lane.b32.xlu1 %v10460_v4, %s8027_s3 }
 0x44a   :  { %v5032_v49 = vsel %vm3233_vm3, %v5029_v24, %v5031_v29  ;;  %v10636_v53 = vsel %vm1096_vm1, %v4974_v7, %v4976_v45 }
 0x44d   :  { %v4870_v40 = vpop.f32.mrb[156].mxu0  ;;  %5053 = vrot.lane.b32.xlu0 %v5028_v1, %s8027_s3  ;;  %4619 = vrot.lane.b32.xlu1 %v10469_v21, %s8027_s3  ;;  %v7923_v21 = vld [vmem:[%s11135_s7 + $0x80] sm:$0xff]  }
 0x44e   :  { %v10642_v14 = vpop.f32.mrb[157].mxu0  ;;  %v5033_v10 = vrot.slane %v4870_v40, 6  ;;  %v4978_v4 = vrot.slane %v4870_v40, 4  ;;  %7415 = vmatpush3.bf16.msra.mxu0 %v7923_v21 }
 0x44f   :  { %11352 = vst [vmem:[#allocation18_spill] sm:$0xff] %v10642_v14  ;;  %v4874_v24 = vpop.f32.mrb[158].mxu0  ;;  %7416 = vmatprep.subr.bf16.mxu0 %v11351_v8 }
 0x450   :  { %v10648_v7 = vpop.f32.mrb[159].mxu0  ;;  %v5034_v63 = vsel %vm3233_vm3, %v5031_v29, %v5033_v10  ;;  %v5035_v1 = vrot.slane %v4874_v24, 6  ;;  %v10655_v28 = vsel %vm1096_vm1, %v4976_v45, %v4978_v4  ;;  %v4980_v14 = vrot.slane %v4874_v24, 4  ;;  %v7928_v29 = vld [vmem:[%s11135_s7 + $0x88] sm:$0xff]  }
 0x451   :  { %11353 = vst [vmem:[#allocation19_spill] sm:$0xff] %v10648_v7  ;;  %11354 = vst [vmem:[#allocation27_spill] sm:$0xff] %v10655_v28  ;;  %4192 = vrot.lane.b32.xlu0 %v10466_v35, %s8027_s3  ;;  %5055 = vrot.lane.b32.xlu1 %v5030_v52, %s8027_s3  ;;  %v7930_v28 = vld [vmem:[%s11135_s7 + $0x90] sm:$0xff]  }
 0x452   :  { %v5036_v40 = vsel %vm3233_vm3, %v5033_v10, %v5035_v1  ;;  %v10662_v7 = vsel %vm1096_vm1, %v4978_v4, %v4980_v14  ;;  %7417 = vmatpush3.bf16.msra.mxu0 %v7928_v29  ;;  %v4145_v29 = vld [vmem:[#allocation3 + $0xc0] sm:$0x3f] }
 0x453   :  { %11355 = vst [vmem:[#allocation29_spill] sm:$0xff] %v10662_v7  ;;  %7418 = vmatprep.subr.bf16.mxu0 %v11351_v8 }
 0x455   :  { %v4880_v45 = vpop.f32.mrb[160].mxu0  ;;  %4621 = vrot.lane.b32.xlu0 %v10495_v55, %s8027_s3  ;;  %5057 = vrot.lane.b32.xlu1 %v5032_v49, %s8027_s3 }
 0x456   :  { %v10671_v35 = vpop.f32.mrb[161].mxu0  ;;  %v5037_v52 = vrot.slane %v4880_v45, 6  ;;  %v4982_v10 = vrot.slane %v4880_v45, 4  ;;  %7419 = vmatpush3.bf16.msra.mxu0 %v7930_v28 }
 0x457   :  { %v4884_v24 = vpop.f32.mrb[162].mxu0  ;;  %7420 = vmatprep.subr.bf16.mxu0 %v11351_v8 }
 0x458   :  { %v4886_v4 = vpop.f32.mrb[163].mxu0  ;;  %v5038_v21 = vsel %vm3233_vm3, %v5035_v1, %v5037_v52  ;;  %v5039_v7 = vrot.slane %v4884_v24, 6  ;;  %v10679_v55 = vsel %vm1096_vm1, %v4980_v14, %v4982_v10  ;;  %v7932_v1 = vld [vmem:[%s11135_s7 + $0x98] sm:$0xff]   ;;  %v4182_v24 = vrot.slane %v4145_v29, 2 }
 0x459   :  { %4932 = vst [vmem:[#allocation3 + $0xb8] sm:$0xff] %v4886_v4  ;;  %4194 = vrot.lane.b32.xlu0 %v10498_v57, %s8027_s3  ;;  %5059 = vrot.lane.b32.xlu1 %v5034_v63, %s8027_s3 }
 0x45a   :  { %v5040_v49 = vsel %vm3233_vm3, %v5037_v52, %v5039_v7  ;;  %7421 = vmatpush3.bf16.msra.mxu0 %v7932_v1 }
 0x45b   :  { %7438 = vmatprep.subr.bf16.mxu0 %v11351_v8 }
 0x45d   :  { %v4890_v45 = vpop.f32.mrb[164].mxu0  ;;  %4623 = vrot.lane.b32.xlu0 %v10507_v38, %s8027_s3  ;;  %4625 = vrot.lane.b32.xlu1 %v10529_v58, %s8027_s3 }
 0x45e   :  { %4933 = vst [vmem:[#allocation3 + $0xc0] sm:$0xff] %v4890_v45  ;;  %v4892_v57 = vpop.f32.mrb[165].mxu0  ;;  %v5041_v14 = vrot.slane %v4890_v45, 6 }
 0x45f   :  { %4934 = vst [vmem:[#allocation3 + $0xc8] sm:$0xff] %v4892_v57  ;;  %v4894_v63 = vpop.f32.mrb[166].mxu0  ;;  %v11357_v57 = vrot.slane %v10592_v36, 4 }
 0x460   :  { %4935 = vst [vmem:[#allocation3 + $0xd0] sm:$0xff] %v4894_v63  ;;  %v4896_v28 = vpop.f32.mrb[167].mxu0  ;;  %v5042_v52 = vsel %vm3233_vm3, %v5039_v7, %v5041_v14  ;;  %v5043_v10 = vrot.slane %v4894_v63, 6 }
 0x461   :  { %4936 = vst [vmem:[#allocation3 + $0xd8] sm:$0xff] %v4896_v28  ;;  %4196 = vrot.lane.b32.xlu0 %v10510_v59, %s8027_s3  ;;  %4198 = vrot.lane.b32.xlu1 %v10532_v18, %s8027_s3  ;;  %v11356_v18 = vrot.slane %v10555_v50, 2 }
 0x462   :  { %v5044_v38 = vsel %vm3233_vm3, %v5041_v14, %v5043_v10 }
 0x463   :  { %v4183_v4 = vsel %vm1578_vm2, %v11356_v18, %v4182_v24 }
 0x465   :  { %v10700_v58 = vpop.f32.mrb[168].mxu0  ;;  %5061 = vrot.lane.b32.xlu0 %v5036_v40, %s8027_s3  ;;  %5063 = vrot.lane.b32.xlu1 %v5038_v21, %s8027_s3  ;;  %v4941_v40 = vld [vmem:[#allocation3 + $0x20] sm:$0xf0] }
 0x469   :  { %4627 = vrot.lane.b32.xlu0 %v10538_v17, %s8027_s3  ;;  %4202 = vrot.lane.b32.xlu1 %v10559_v60, %s8027_s3  ;;  %v4967_v60 = vrot.slane %v4941_v40, 4 }
 0x46a   :  { %v4185_v7 = vpop.permute.xlu0 %4184 }
 0x46b   :  { %v4223_v59 = vadd.f32 %v4185_v7, %v10405_v5 }
 0x46c   :  { %v4614_v1 = vpop.permute.xlu1 %4613 }
 0x46d   :  { %v4300_v45 = vadd.f32 %v10426_v56, %v4223_v59  ;;  %4200 = vrot.lane.b32.xlu0 %v10541_v31, %s8027_s3  ;;  %4206 = vrot.lane.b32.xlu1 %v4183_v4, %s8027_s3  ;;  %v4969_v31 = vsel %vm1096_vm1, %v4967_v60, %v11357_v57 }
 0x46f   :  { %v4571_v17 = vadd.f32 %v10441_v12, %v4300_v45 }
 0x470   :  { %v4187_v21 = vpop.permute.xlu1 %4186 }
 0x471   :  { %4204 = vrot.lane.b32.xlu0 %v10570_v9, %s8027_s3  ;;  %v4652_v5 = vadd.f32 %v4614_v1, %v4571_v17  ;;  %v4224_v50 = vadd.f32 %v4187_v21, %v10408_v11  ;;  %v11358_v11 = vrot.slane %v10579_v25, 4 }
 0x473   :  { %v4734_v29 = vadd.f32 %v10444_v54, %v4652_v5  ;;  %v4301_v56 = vadd.f32 %v10432_v37, %v4224_v50  ;;  %v4902_v37 = vpop.f32.mrb[169].mxu0  ;;  %v5045_v54 = vrot.slane %v10700_v58, 6 }
 0x474   :  { %4938 = vst [vmem:[#allocation3 + $0xe8] sm:$0xff] %v4902_v37  ;;  %v7926_v37 = vld [vmem:[%s11135_s7 + $0x8] sm:$0xff]  }
 0x475   :  { %4208 = vrot.lane.b32.xlu0 %v4182_v24, %s8027_s3  ;;  %v5005_v14 = vadd.f32 %v4969_v31, %v4734_v29  ;;  %v4572_v12 = vadd.f32 %v10447_v34, %v4301_v56  ;;  %v5046_v34 = vsel %vm3233_vm3, %v5043_v10, %v5045_v54  ;;  %v7925_v31 = vld [vmem:[%s11135_s7] sm:$0xff]  }
 0x479   :  { %4629 = vrot.lane.b32.xlu0 %v10562_v42, %s8027_s3 }
 0x47d   :  { %4631 = vrot.lane.b32.xlu0 %v10573_v15, %s8027_s3  ;;  %v10749_v15 = vld [vmem:[%s11134_s6] ss:$0 sm:$0xff] }
 0x481   :  { %4633 = vrot.lane.b32.xlu0 %v10583_v32, %s8027_s3 }
 0x485   :  { %4635 = vrot.lane.b32.xlu0 %v10590_v23, %s8027_s3 }
 0x489   :  { %4637 = vrot.lane.b32.xlu0 %v11358_v11, %s8027_s3 }
 0x48d   :  { %5065 = vrot.lane.b32.xlu0 %v5040_v49, %s8027_s3 }
 0x491   :  { %5067 = vrot.lane.b32.xlu0 %v5042_v52, %s8027_s3 }
 0x495   :  { %5069 = vrot.lane.b32.xlu0 %v5044_v38, %s8027_s3 }
 0x499   :  { %5071 = vrot.lane.b32.xlu0 %v5046_v34, %s8027_s3 }
 0x4b3   :  { %v5050_v42 = vpop.permute.xlu0 %5049  ;;  %v5052_v9 = vpop.permute.xlu1 %5051 }
 0x4b4   :  { %v5088_v25 = vadd.f32 %v5050_v42, %v5005_v14 }
 0x4b6   :  { %v5114_v32 = vadd.f32 %v5088_v25, %v10594_v27 }
 0x4b7   :  { %v4616_v23 = vpop.permute.xlu0 %4615  ;;  %v4618_v36 = vpop.permute.xlu1 %4617 }
 0x4b8   :  { %v5133_v49 = vadd.f32 %v10749_v15, %v5114_v32  ;;  %v4653_v63 = vadd.f32 %v4616_v23, %v4572_v12 }
 0x4ba   :  { %v5146_v28 = vmax.f32 %v5133_v49, 0.0  ;;  %v4735_v52 = vadd.f32 %v10435_v51, %v4653_v63  ;;  %v7927_v49 = vld [vmem:[%s11135_s7 + $0x10] sm:$0xff]  }
 0x4bb   :  { %v4189_v10 = vpop.permute.xlu0 %4188  ;;  %v4191_v38 = vpop.permute.xlu1 %4190 }
 0x4bc   :  { %v7266_v24 = vpack.c.bf16 %v5146_v28, %v5146_v28  ;;  %v5006_v7 = vadd.f32 %v10609_v44, %v4735_v52  ;;  %v4225_v59 = vadd.f32 %v4189_v10, %v10411_v0  ;;  %v4226_v18 = vadd.f32 %v4191_v38, %v10414_v13  ;;  %v11359_v38 = vld [vmem:[#allocation15_spill] sm:$0xff] }
 0x4be   :  { %5213 = vst.msk [vmem:[#allocation5] sm:$0xf] %vm5212_vm7, %v7266_v24  ;;  %v5089_v27 = vadd.f32 %v5052_v9, %v5006_v7  ;;  %v4302_v4 = vadd.f32 %v10438_v30, %v4225_v59  ;;  %v4303_v1 = vadd.f32 %v10475_v2, %v4226_v18  ;;  %v7929_v24 = vld [vmem:[%s11135_s7 + $0x18] sm:$0xff]  }
 0x4bf   :  { %v5054_v45 = vpop.permute.xlu0 %5053  ;;  %v4620_v40 = vpop.permute.xlu1 %4619 }
 0x4c0   :  { %v5115_v51 = vadd.f32 %v5089_v27, %v10596_v6  ;;  %v4573_v17 = vadd.f32 %v10463_v16, %v4302_v4  ;;  %v4574_v21 = vadd.f32 %v10481_v46, %v4303_v1  ;;  %v11360_v27 = vld [vmem:[#allocation12_spill] sm:$0xff]  ;;  %v11361_v1 = vld [vmem:[#allocation11_spill] sm:$0xff] }
 0x4c2   :  { %v5134_v44 = vadd.f32 %v10749_v15, %v5115_v51  ;;  %v4654_v0 = vadd.f32 %v4618_v36, %v4573_v17  ;;  %v4655_v60 = vadd.f32 %v4620_v40, %v4574_v21  ;;  %v11362_v40 = vld [vmem:[#allocation40_spill] sm:$0xff] }
 0x4c3   :  { %v4193_v13 = vpop.permute.xlu0 %4192  ;;  %v5056_v5 = vpop.permute.xlu1 %5055 }
 0x4c4   :  { %v5147_v50 = vmax.f32 %v5134_v44, 0.0  ;;  %v4736_v29 = vadd.f32 %v10472_v41, %v4654_v0  ;;  %v4227_v30 = vadd.f32 %v4193_v13, %v10449_v22  ;;  %v4737_v2 = vadd.f32 %v10484_v61, %v4655_v60  ;;  %v11364_v44 = vld [vmem:[#allocation16_spill] sm:$0xff]  ;;  %v11365_v60 = vld [vmem:[#allocation21_spill] sm:$0xff] }
 0x4c5   :  { %v7924_v56 = vld [vmem:[#allocation5] ss:$0 sps:$4 sm:$0x22]  }
 0x4c6   :  { %v7267_v57 = vpack.c.bf16 %v5147_v50, %v5147_v50  ;;  %v5007_v6 = vadd.f32 %v10613_v3, %v4736_v29  ;;  %v4304_v16 = vadd.f32 %v10478_v47, %v4227_v30  ;;  %v5008_v46 = vadd.f32 %v10628_v26, %v4737_v2 }
 0x4c7   :  { %v4622_v14 = vpop.permute.xlu0 %4621  ;;  %v5248_v12 = vrot.slane %v7924_v56, 1  ;;  %v5058_v11 = vpop.permute.xlu1 %5057  ;;  %v11366_v56 = vld [vmem:[#allocation17_spill] sm:$0xff] }
 0x4c8   :  { %5214 = vst.msk [vmem:[#allocation5 + $0x4] sm:$0xf] %vm5212_vm7, %v7267_v57  ;;  %v5090_v22 = vadd.f32 %v5054_v45, %v5007_v6  ;;  %v4575_v41 = vadd.f32 %v10504_v33, %v4304_v16  ;;  %v5091_v61 = vadd.f32 %v5056_v5, %v5008_v46  ;;  %v7931_v5 = vld [vmem:[%s11135_s7 + $0x40] sm:$0xff]   ;;  %v11367_v16 = vld [vmem:[#allocation20_spill] sm:$0xff] }
 0x4c9   :  { %7375 = vmatmul.mubr.msk.bf16.vlgmr.msra.gmra.mrb[140].mxu1 %vm56_vm0, %v5248_v12  ;;  %v5226_v6 = vld [vmem:[#allocation5] sm:$0x1] }
 0x4ca   :  { %v5116_v3 = vadd.f32 %v5090_v22, %v10600_v39  ;;  %v4656_v47 = vadd.f32 %v4622_v14, %v4575_v41  ;;  %v5117_v26 = vadd.f32 %v5091_v61, %v10619_v48  ;;  %7379 = vmatpush3.bf16.msra.mxu1 %v7925_v31  ;;  %7386 = vmatprep.mubr.msk.bf16.mxu1 %vm8029_vm6, %v11351_v8  ;;  %v11368_v14 = vld [vmem:[#allocation18_spill] sm:$0xff]  ;;  %v7933_v22 = vld [vmem:[%s11135_s7 + $0x48] sm:$0xff]  }
 0x4cb   :  { %v4195_v34 = vpop.permute.xlu0 %4194  ;;  %7380 = vmatprep.subr.bf16.mxu1 %v11351_v8  ;;  %v5060_v33 = vpop.permute.xlu1 %5059  ;;  %v7935_v41 = vld [vmem:[%s11135_s7 + $0xc0] sm:$0xff]  }
 0x4cc   :  { %v5135_v42 = vadd.f32 %v10749_v15, %v5116_v3  ;;  %v4738_v9 = vadd.f32 %v10513_v62, %v4656_v47  ;;  %v5136_v39 = vadd.f32 %v10749_v15, %v5117_v26  ;;  %v4228_v48 = vadd.f32 %v4195_v34, %v10453_v20 }
 0x4ce   :  { %v5148_v25 = vmax.f32 %v5135_v42, 0.0  ;;  %v5149_v32 = vmax.f32 %v5136_v39, 0.0  ;;  %v4305_v23 = vadd.f32 %v10516_v19, %v4228_v48  ;;  %v5009_v36 = vadd.f32 %v10636_v53, %v4738_v9  ;;  %7381 = vmatpush3.bf16.msra.mxu1 %v7926_v37  ;;  %v11369_v37 = vld [vmem:[#allocation48_spill] sm:$0xff]  ;;  %v11370_v9 = vld [vmem:[#allocation29_spill] sm:$0xff] }
 0x4cf   :  { %v4624_v63 = vpop.permute.xlu0 %4623  ;;  %7382 = vmatprep.subr.bf16.mxu1 %v11351_v8  ;;  %v4626_v28 = vpop.permute.xlu1 %4625  ;;  %v11371_v48 = vld [vmem:[#allocation25_spill] sm:$0xff] }
 0x4d0   :  { %v7268_v62 = vpack.c.bf16 %v5148_v25, %v5148_v25  ;;  %v7269_v52 = vpack.c.bf16 %v5149_v32, %v5149_v32  ;;  %v5092_v10 = vadd.f32 %v5058_v11, %v5009_v36  ;;  %v4576_v20 = vadd.f32 %v11359_v38, %v4305_v23  ;;  %v7936_v32 = vld [vmem:[%s11135_s7 + $0x50] sm:$0xff]   ;;  %v7937_v23 = vld [vmem:[%s11135_s7 + $0xc8] sm:$0xff]  }
 0x4d2   :  { %5215 = vst.msk [vmem:[#allocation5 + $0x8] sm:$0xf] %vm5212_vm7, %v7268_v62  ;;  %5216 = vst.msk [vmem:[#allocation5 + $0xc] sm:$0xf] %vm5212_vm7, %v7269_v52  ;;  %v5118_v19 = vadd.f32 %v5092_v10, %v10621_v43  ;;  %v4657_v53 = vadd.f32 %v4624_v63, %v4576_v20  ;;  %7383 = vmatpush3.bf16.msra.mxu1 %v7927_v49  ;;  %v11363_v43 = vld [vmem:[#allocation27_spill] sm:$0xff]  ;;  %v7938_v20 = vld [vmem:[%s11135_s7 + $0x58] sm:$0xff]  }
 0x4d3   :  { %v4197_v7 = vpop.permute.xlu0 %4196  ;;  %7384 = vmatprep.subr.bf16.mxu1 %v11351_v8  ;;  %v4199_v59 = vpop.permute.xlu1 %4198  ;;  %v11372_v52 = vld [vmem:[#allocation19_spill] sm:$0xff] }
 0x4d4   :  { %v5137_v18 = vadd.f32 %v10749_v15, %v5118_v19  ;;  %v4739_v4 = vadd.f32 %v11360_v27, %v4657_v53  ;;  %v4229_v45 = vadd.f32 %v4197_v7, %v11361_v1  ;;  %v4230_v51 = vadd.f32 %v4199_v59, %v11362_v40  ;;  %v7939_v19 = vld [vmem:[%s11135_s7 + $0xd0] sm:$0xff]   ;;  %v7941_v27 = vld [vmem:[%s11135_s7 + $0x60] sm:$0xff]  }
 0x4d6   :  { %v5150_v17 = vmax.f32 %v5137_v18, 0.0  ;;  %v5010_v21 = vadd.f32 %v11363_v43, %v4739_v4  ;;  %v4306_v0 = vadd.f32 %v11364_v44, %v4229_v45  ;;  %7385 = vmatpush3.bf16.msra.mxu1 %v7929_v24  ;;  %v4307_v13 = vadd.f32 %v11365_v60, %v4230_v51  ;;  %v7942_v4 = vld [vmem:[%s11135_s7 + $0xd8] sm:$0xff]   ;;  %v7945_v43 = vld [vmem:[%s11135_s7 + $0x100] sm:$0xff]   ;;  %v7947_v60 = vld [vmem:[%s11135_s7 + $0x108] sm:$0xff]  }
 0x4d7   :  { %v5062_v50 = vpop.permute.xlu0 %5061  ;;  %7390 = vmatprep.subr.bf16.mxu1 %v11351_v8  ;;  %v5064_v29 = vpop.permute.xlu1 %5063 }
 0x4d8   :  { %v7270_v30 = vpack.c.bf16 %v5150_v17, %v5150_v17  ;;  %v5093_v2 = vadd.f32 %v5060_v33, %v5010_v21  ;;  %v4577_v57 = vadd.f32 %v11366_v56, %v4306_v0  ;;  %v4578_v46 = vadd.f32 %v11367_v16, %v4307_v13  ;;  %v7944_v17 = vld [vmem:[%s11135_s7 + $0x68] sm:$0xff]   ;;  %v7946_v0 = vld [vmem:[%s11135_s7 + $0x70] sm:$0xff]   ;;  %v7952_v56 = vld [vmem:[%s11135_s7 + $0x118] sm:$0xff]  }
 0x4d9   :  { %7387 = vmatmul.mubr.msk.bf16.vlgmr.msra.gmra.mrb[144].mxu1 %vm56_vm0, %v5226_v6  ;;  %v7934_v31 = vld [vmem:[#allocation5 + $0x8] ss:$0 sps:$4 sm:$0x44]  }
 0x4da   :  { %5217 = vst.msk [vmem:[#allocation5 + $0x10] sm:$0xf] %vm5212_vm7, %v7270_v30  ;;  %v5119_v12 = vadd.f32 %v5093_v2, %v11368_v14  ;;  %v4658_v11 = vadd.f32 %v4626_v28, %v4577_v57  ;;  %7391 = vmatpush3.bf16.msra.mxu1 %v7931_v5  ;;  %7398 = vmatprep.mubr.msk.bf16.mxu1 %vm8029_vm6, %v11351_v8  ;;  %v5560_v3 = vrot.slane %v7934_v31, 2  ;;  %v7948_v5 = vld [vmem:[%s11135_s7 + $0x78] sm:$0xff]   ;;  %v7951_v2 = vld [vmem:[%s11135_s7 + $0xa0] sm:$0xff]   ;;  %v7953_v16 = vld [vmem:[%s11135_s7 + $0xa8] sm:$0xff]  }
 0x4db   :  { %v4628_v61 = vpop.permute.xlu0 %4627  ;;  %7392 = vmatprep.subr.bf16.mxu1 %v11351_v8  ;;  %v4203_v47 = vpop.permute.xlu1 %4202  ;;  %v7950_v30 = vld [vmem:[#allocation5 + $0x4] ss:$0 sps:$4 sm:$0x44]  }
 0x4dc   :  { %v5138_v26 = vadd.f32 %v10749_v15, %v5119_v12  ;;  %v4740_v34 = vadd.f32 %v11369_v37, %v4658_v11  ;;  %v4659_v33 = vadd.f32 %v4628_v61, %v4578_v46  ;;  %7423 = vmatmul.mubr.msk.bf16.vlgmr.msra.gmra.mrb[172].mxu0 %vm56_vm0, %v5560_v3  ;;  %v5478_v6 = vrot.slane %v7950_v30, 2  ;;  %v7954_v46 = vld [vmem:[%s11135_s7 + $0x140] sm:$0xff]   ;;  %v7955_v12 = vld [vmem:[%s11135_s7 + $0xb0] sm:$0xff]   ;;  %v7956_v11 = vld [vmem:[%s11135_s7 + $0x148] sm:$0xff]  }
 0x4dd   :  { %7439 = vmatpush3.bf16.msra.mxu0 %v7935_v41  ;;  %7446 = vmatprep.mubr.msk.bf16.mxu0 %vm8029_vm6, %v11351_v8  ;;  %v7957_v41 = vld [vmem:[%s11135_s7 + $0xb8] sm:$0xff]   ;;  %v7958_v61 = vld [vmem:[%s11135_s7 + $0x150] sm:$0xff]   ;;  %v7959_v47 = vld [vmem:[#allocation5 + $0x8] ss:$0 sps:$4 sm:$0x88]  }
 0x4de   :  { %v5151_v42 = vmax.f32 %v5138_v26, 0.0  ;;  %v5011_v39 = vadd.f32 %v11370_v9, %v4740_v34  ;;  %v4741_v25 = vadd.f32 %v11371_v48, %v4659_v33  ;;  %7393 = vmatpush3.bf16.msra.mxu1 %v7933_v22  ;;  %7440 = vmatprep.subr.bf16.mxu0 %v11351_v8  ;;  %v7960_v26 = vld [vmem:[%s11135_s7 + $0xe0] sm:$0xff]   ;;  %v7961_v37 = vld [vmem:[%s11135_s7 + $0x158] sm:$0xff]   ;;  %v5642_v33 = vrot.slane %v7959_v47, 3  ;;  %v7963_v9 = vld [vmem:[%s11135_s7 + $0xe8] sm:$0xff]  }
 0x4df   :  { %v4201_v36 = vpop.permute.xlu0 %4200  ;;  %7394 = vmatprep.subr.bf16.mxu1 %v11351_v8  ;;  %v4207_v49 = vpop.permute.xlu1 %4206 }
 0x4e0   :  { %v7271_v63 = vpack.c.bf16 %v5151_v42, %v5151_v42  ;;  %v5094_v28 = vadd.f32 %v5062_v50, %v5011_v39  ;;  %v5012_v62 = vadd.f32 %v10679_v55, %v4741_v25  ;;  %v7940_v55 = vld [vmem:[#allocation5 + $0x4] ss:$0 sps:$4 sm:$0x22]   ;;  %v7949_v50 = vld [vmem:[%s11135_s7 + $0x110] sm:$0xff]   ;;  %v7967_v36 = vld [vmem:[%s11135_s7 + $0xf8] sm:$0xff]  }
 0x4e1   :  { %7441 = vmatpush3.bf16.msra.mxu0 %v7937_v23  ;;  %v5396_v45 = vrot.slane %v7940_v55, 1  ;;  %v7964_v39 = vld [vmem:[%s11135_s7 + $0x180] sm:$0xff]   ;;  %v7966_v23 = vld [vmem:[%s11135_s7 + $0x188] sm:$0xff]   ;;  %v7968_v49 = vld [vmem:[%s11135_s7 + $0x190] sm:$0xff]  }
 0x4e2   :  { %5218 = vst.msk [vmem:[#allocation5 + $0x14] sm:$0xf] %vm5212_vm7, %v7271_v63  ;;  %v5120_v10 = vadd.f32 %v5094_v28, %v11372_v52  ;;  %v5095_v38 = vadd.f32 %v5064_v29, %v5012_v62  ;;  %7395 = vmatpush3.bf16.msra.mxu1 %v7936_v32  ;;  %7442 = vmatprep.subr.bf16.mxu0 %v11351_v8  ;;  %v7965_v32 = vld [vmem:[%s11135_s7 + $0xf0] sm:$0xff]   ;;  %v7969_v63 = vld [vmem:[%s11135_s7 + $0x120] sm:$0xff]   ;;  %v7970_v28 = vld [vmem:[%s11135_s7 + $0x198] sm:$0xff]  }
 0x4e3   :  { %v4205_v53 = vpop.permute.xlu0 %4204  ;;  %7396 = vmatprep.subr.bf16.mxu1 %v11351_v8  ;;  %v5793_v52 = vld [vmem:[#allocation5 + $0x10] sm:$0x1]  ;;  %v7976_v55 = vld [vmem:[%s11135_s7 + $0x160] sm:$0xff]  }
 0x4e4   :  { %v5139_v24 = vadd.f32 %v10749_v15, %v5120_v10  ;;  %v5121_v7 = vadd.f32 %v5095_v38, %v10671_v35  ;;  %v7943_v35 = vld [vmem:[#allocation5 + $0xc] ss:$0 sps:$4 sm:$0x88]  }
 0x4e5   :  { %7443 = vmatpush3.bf16.msra.mxu0 %v7939_v19  ;;  %v5724_v44 = vrot.slane %v7943_v35, 3  ;;  %v7972_v10 = vld [vmem:[%s11135_s7 + $0x128] sm:$0xff]   ;;  %v7974_v19 = vld [vmem:[%s11135_s7 + $0x138] sm:$0xff]  }
 0x4e6   :  { %v5152_v59 = vmax.f32 %v5139_v24, 0.0  ;;  %v5140_v18 = vadd.f32 %v10749_v15, %v5121_v7  ;;  %7397 = vmatpush3.bf16.msra.mxu1 %v7938_v20  ;;  %7444 = vmatprep.subr.bf16.mxu0 %v11351_v8  ;;  %v7973_v20 = vld [vmem:[%s11135_s7 + $0x130] sm:$0xff]   ;;  %v7977_v7 = vld [vmem:[%s11135_s7 + $0x168] sm:$0xff]  }
 0x4e7   :  { %v4209_v1 = vpop.permute.xlu0 %4208  ;;  %7402 = vmatprep.subr.bf16.mxu1 %v11351_v8 }
 0x4e8   :  { %v7272_v40 = vpack.c.bf16 %v5152_v59, %v5152_v59  ;;  %v5153_v51 = vmax.f32 %v5140_v18, 0.0  ;;  %v7978_v59 = vld [vmem:[%s11135_s7 + $0x170] sm:$0xff]   ;;  %v4904_v18 = vpop.f32.mrb[170].mxu0 }
 0x4e9   :  { %7399 = vmatmul.mubr.msk.bf16.vlgmr.msra.gmra.mrb[148].mxu1 %vm56_vm0, %v5396_v45  ;;  %7445 = vmatpush3.bf16.msra.mxu0 %v7942_v4  ;;  %v5871_v14 = vld [vmem:[#allocation5 + $0x14] sm:$0x1]  ;;  %4939 = vst [vmem:[#allocation3 + $0xf0] sm:$0xff] %v4904_v18  ;;  %v7979_v4 = vld [vmem:[%s11135_s7 + $0x178] sm:$0xff]   ;;  %v7981_v45 = vld [vmem:[%s11135_s7 + $0x1a0] sm:$0xff]  }
 0x4ea   :  { %5219 = vst.msk [vmem:[#allocation5 + $0x18] sm:$0xf] %vm5212_vm7, %v7272_v40  ;;  %v7273_v15 = vpack.c.bf16 %v5153_v51, %v5153_v51  ;;  %7403 = vmatpush3.bf16.msra.mxu1 %v7941_v27  ;;  %7462 = vmatprep.subr.bf16.mxu0 %v11351_v8  ;;  %v7975_v53 = vld [vmem:[#allocation5 + $0x14] ss:$0 sps:$4 sm:$0x22]   ;;  %v4906_v27 = vpop.f32.mrb[171].mxu0 }
 0x4eb   :  { %v4630_v21 = vpop.permute.xlu0 %4629  ;;  %7404 = vmatprep.subr.bf16.mxu1 %v11351_v8  ;;  %7410 = vmatprep.mubr.msk.bf16.mxu1 %vm8029_vm6, %v11351_v8  ;;  %v5962_v24 = vrot.slane %v7975_v53, 1  ;;  %4940 = vst [vmem:[#allocation3 + $0xf8] sm:$0xff] %v4906_v27  ;;  %v7982_v40 = vld [vmem:[%s11135_s7 + $0x1a8] sm:$0xff]   ;;  %v7983_v51 = vld [vmem:[%s11135_s7 + $0x1b0] sm:$0xff]  }
 0x4ec   :  { %5220 = vst.msk [vmem:[#allocation5 + $0x1c] sm:$0xf] %vm5212_vm7, %v7273_v15  ;;  %7447 = vmatmul.mubr.msk.bf16.vlgmr.msra.gmra.mrb[176].mxu0 %vm56_vm0, %v5724_v44  ;;  %v7984_v15 = vld [vmem:[%s11135_s7 + $0x1b8] sm:$0xff]   ;;  %v7986_v21 = vld [vmem:[%s11137_s9] sm:$0xff]   ;;  %v7987_v44 = vld [vmem:[%s11137_s9 + $0x8] sm:$0xff]  }
 0x4ed   :  { %7463 = vmatpush3.bf16.msra.mxu0 %v7945_v43  ;;  %7470 = vmatprep.mubr.msk.bf16.mxu0 %vm8029_vm6, %v11351_v8 }
 0x4ee   :  { %7405 = vmatpush3.bf16.msra.mxu1 %v7944_v17  ;;  %7464 = vmatprep.subr.bf16.mxu0 %v11351_v8 }
 0x4ef   :  { %v4632_v13 = vpop.permute.xlu0 %4631  ;;  %7406 = vmatprep.subr.bf16.mxu1 %v11351_v8 }
 0x4f0   :  { %v7990_v13 = vld [vmem:[%s11137_s9 + $0x20] sm:$0xff]  }
 0x4f1   :  { %7465 = vmatpush3.bf16.msra.mxu0 %v7947_v60  ;;  %v7962_v42 = vld [vmem:[#allocation5 + $0x18] ss:$0 sps:$4 sm:$0x22]  }
 0x4f2   :  { %7407 = vmatpush3.bf16.msra.mxu1 %v7946_v0  ;;  %7466 = vmatprep.subr.bf16.mxu0 %v11351_v8  ;;  %v6044_v25 = vrot.slane %v7962_v42, 1  ;;  %v7980_v1 = vld [vmem:[#allocation5 + $0x18] ss:$0 sps:$4 sm:$0x44]   ;;  %v7988_v0 = vld [vmem:[%s11137_s9 + $0x10] sm:$0xff]  }
 0x4f3   :  { %v4634_v29 = vpop.permute.xlu0 %4633  ;;  %7408 = vmatprep.subr.bf16.mxu1 %v11351_v8  ;;  %v7971_v62 = vld [vmem:[#allocation5 + $0x1c] ss:$0 sps:$4 sm:$0x44]   ;;  %v6126_v35 = vrot.slane %v7980_v1, 2 }
 0x4f4   :  { %v6208_v38 = vrot.slane %v7971_v62, 2  ;;  %v7985_v17 = vld [vmem:[#allocation5 + $0x1c] ss:$0 sps:$4 sm:$0x88]  }
 0x4f5   :  { %7467 = vmatpush3.bf16.msra.mxu0 %v7949_v50  ;;  %v6290_v43 = vrot.slane %v7985_v17, 3  ;;  %v7989_v60 = vld [vmem:[%s11137_s9 + $0x18] sm:$0xff]  }
 0x4f6   :  { %7409 = vmatpush3.bf16.msra.mxu1 %v7948_v5  ;;  %7468 = vmatprep.subr.bf16.mxu0 %v11351_v8  ;;  %v7991_v5 = vld [vmem:[%s11137_s9 + $0x28] sm:$0xff]  }
 0x4f7   :  { %v4636_v57 = vpop.permute.xlu0 %4635  ;;  %7426 = vmatprep.subr.bf16.mxu1 %v11351_v8 }
 0x4f8   :  { %v7993_v57 = vld [vmem:[%s11137_s9 + $0x38] sm:$0xff]  }
 0x4f9   :  { %7411 = vmatmul.mubr.msk.bf16.vlgmr.msra.gmra.mrb[152].mxu1 %vm56_vm0, %v5478_v6  ;;  %7469 = vmatpush3.bf16.msra.mxu0 %v7952_v56  ;;  %v7992_v56 = vld [vmem:[%s11137_s9 + $0x30] sm:$0xff]   ;;  %v7994_v6 = vld [vmem:[%s11139_s11] sm:$0xff]  }
 0x4fa   :  { %7427 = vmatpush3.bf16.msra.mxu1 %v7951_v2  ;;  %7486 = vmatprep.subr.bf16.mxu0 %v11351_v8 }
 0x4fb   :  { %v4638_v31 = vpop.permute.xlu0 %4637  ;;  %7428 = vmatprep.subr.bf16.mxu1 %v11351_v8  ;;  %7434 = vmatprep.mubr.msk.bf16.mxu1 %vm8029_vm6, %v11351_v8 }
 0x4fc   :  { %7471 = vmatmul.mubr.msk.bf16.vlgmr.msra.gmra.mrb[180].mxu0 %vm56_vm0, %v5871_v14 }
 0x4fd   :  { %7487 = vmatpush3.bf16.msra.mxu0 %v7954_v46  ;;  %7494 = vmatprep.mubr.msk.bf16.mxu0 %vm8029_vm6, %v11351_v8 }
 0x4fe   :  { %7429 = vmatpush3.bf16.msra.mxu1 %v7953_v16  ;;  %7488 = vmatprep.subr.bf16.mxu0 %v11351_v8  ;;  %v7995_v16 = vld [vmem:[%s11139_s11 + $0x8] sm:$0xff]  }
 0x4ff   :  { %v5066_v22 = vpop.permute.xlu0 %5065  ;;  %7430 = vmatprep.subr.bf16.mxu1 %v11351_v8 }
 0x501   :  { %7489 = vmatpush3.bf16.msra.mxu0 %v7956_v11 }
 0x502   :  { %7431 = vmatpush3.bf16.msra.mxu1 %v7955_v12  ;;  %7490 = vmatprep.subr.bf16.mxu0 %v11351_v8 }
 0x503   :  { %v5068_v3 = vpop.permute.xlu0 %5067  ;;  %7432 = vmatprep.subr.bf16.mxu1 %v11351_v8 }
 0x505   :  { %7491 = vmatpush3.bf16.msra.mxu0 %v7958_v61 }
 0x506   :  { %7433 = vmatpush3.bf16.msra.mxu1 %v7957_v41  ;;  %7492 = vmatprep.subr.bf16.mxu0 %v11351_v8 }
 0x507   :  { %v5070_v34 = vpop.permute.xlu0 %5069  ;;  %7450 = vmatprep.subr.bf16.mxu1 %v11351_v8 }
 0x509   :  { %7435 = vmatmul.mubr.msk.bf16.vlgmr.msra.gmra.mrb[156].mxu1 %vm56_vm0, %v5642_v33  ;;  %7493 = vmatpush3.bf16.msra.mxu0 %v7961_v37 }
 0x50a   :  { %7451 = vmatpush3.bf16.msra.mxu1 %v7960_v26  ;;  %7510 = vmatprep.subr.bf16.mxu0 %v11351_v8 }
 0x50b   :  { %v5072_v48 = vpop.permute.xlu0 %5071  ;;  %7452 = vmatprep.subr.bf16.mxu1 %v11351_v8  ;;  %7458 = vmatprep.mubr.msk.bf16.mxu1 %vm8029_vm6, %v11351_v8 }
 0x50c   :  { %7495 = vmatmul.mubr.msk.bf16.vlgmr.msra.gmra.mrb[184].mxu0 %vm56_vm0, %v6044_v25 }
 0x50d   :  { %7511 = vmatpush3.bf16.msra.mxu0 %v7964_v39  ;;  %7518 = vmatprep.mubr.msk.bf16.mxu0 %vm8029_vm6, %v11351_v8 }
 0x50e   :  { %7453 = vmatpush3.bf16.msra.mxu1 %v7963_v9  ;;  %7512 = vmatprep.subr.bf16.mxu0 %v11351_v8 }
 0x50f   :  { %7454 = vmatprep.subr.bf16.mxu1 %v11351_v8 }
 0x511   :  { %7513 = vmatpush3.bf16.msra.mxu0 %v7966_v23 }
 0x512   :  { %7455 = vmatpush3.bf16.msra.mxu1 %v7965_v32  ;;  %7514 = vmatprep.subr.bf16.mxu0 %v11351_v8 }
 0x513   :  { %7456 = vmatprep.subr.bf16.mxu1 %v11351_v8 }
 0x515   :  { %7515 = vmatpush3.bf16.msra.mxu0 %v7968_v49 }
 0x516   :  { %7457 = vmatpush3.bf16.msra.mxu1 %v7967_v36  ;;  %7516 = vmatprep.subr.bf16.mxu0 %v11351_v8 }
 0x517   :  { %7474 = vmatprep.subr.bf16.mxu1 %v11351_v8 }
 0x519   :  { %7459 = vmatmul.mubr.msk.bf16.vlgmr.msra.gmra.mrb[160].mxu1 %vm56_vm0, %v5793_v52  ;;  %7517 = vmatpush3.bf16.msra.mxu0 %v7970_v28 }
 0x51a   :  { %7475 = vmatpush3.bf16.msra.mxu1 %v7969_v63  ;;  %7482 = vmatprep.mubr.msk.bf16.mxu1 %vm8029_vm6, %v11351_v8 }
 0x51b   :  { %7476 = vmatprep.subr.bf16.mxu1 %v11351_v8  ;;  %7534 = vmatprep.subr.bf16.mxu0 %v11351_v8 }
 0x51c   :  { %7519 = vmatmul.mubr.msk.bf16.vlgmr.msra.gmra.mrb[188].mxu0 %vm56_vm0, %v6208_v38 }
 0x51d   :  { %7550 = vmatprep.mubr.msk.bf16.mxu0 %vm8029_vm6, %v11351_v8  ;;  %7535 = vmatpush3.bf16.msra.mxu0 %v7986_v21 }
 0x51e   :  { %7477 = vmatpush3.bf16.msra.mxu1 %v7972_v10  ;;  %7536 = vmatprep.subr.bf16.mxu0 %v11351_v8 }
 0x51f   :  { %7478 = vmatprep.subr.bf16.mxu1 %v11351_v8 }
 0x521   :  { %7537 = vmatpush3.bf16.msra.mxu0 %v7987_v44 }
 0x522   :  { %7479 = vmatpush3.bf16.msra.mxu1 %v7973_v20  ;;  %7538 = vmatprep.subr.bf16.mxu0 %v11351_v8 }
 0x523   :  { %7480 = vmatprep.subr.bf16.mxu1 %v11351_v8 }
 0x525   :  { %7539 = vmatpush3.bf16.msra.mxu0 %v7988_v0 }
 0x526   :  { %7481 = vmatpush3.bf16.msra.mxu1 %v7974_v19  ;;  %7540 = vmatprep.subr.bf16.mxu0 %v11351_v8 }
 0x527   :  { %7498 = vmatprep.subr.bf16.mxu1 %v11351_v8 }
 0x529   :  { %7483 = vmatmul.mubr.msk.bf16.vlgmr.msra.gmra.mrb[164].mxu1 %vm56_vm0, %v5962_v24  ;;  %7541 = vmatpush3.bf16.msra.mxu0 %v7989_v60 }
 0x52a   :  { %7499 = vmatpush3.bf16.msra.mxu1 %v7976_v55  ;;  %7506 = vmatprep.mubr.msk.bf16.mxu1 %vm8029_vm6, %v11351_v8 }
 0x52b   :  { %7500 = vmatprep.subr.bf16.mxu1 %v11351_v8  ;;  %7542 = vmatprep.subr.bf16.mxu0 %v11351_v8 }
 0x52d   :  { %7543 = vmatpush3.bf16.msra.mxu0 %v7990_v13 }
 0x52e   :  { %7501 = vmatpush3.bf16.msra.mxu1 %v7977_v7  ;;  %7544 = vmatprep.subr.bf16.mxu0 %v11351_v8 }
 0x52f   :  { %7502 = vmatprep.subr.bf16.mxu1 %v11351_v8 }
 0x531   :  { %7545 = vmatpush3.bf16.msra.mxu0 %v7991_v5 }
 0x532   :  { %7503 = vmatpush3.bf16.msra.mxu1 %v7978_v59  ;;  %7546 = vmatprep.subr.bf16.mxu0 %v11351_v8 }
 0x533   :  { %7504 = vmatprep.subr.bf16.mxu1 %v11351_v8 }
 0x535   :  { %7547 = vmatpush3.bf16.msra.mxu0 %v7992_v56 }
 0x536   :  { %7505 = vmatpush3.bf16.msra.mxu1 %v7979_v4  ;;  %7548 = vmatprep.subr.bf16.mxu0 %v11351_v8 }
 0x537   :  { %7522 = vmatprep.subr.bf16.mxu1 %v11351_v8 }
 0x539   :  { %7507 = vmatmul.mubr.msk.bf16.vlgmr.msra.gmra.mrb[168].mxu1 %vm56_vm0, %v6126_v35  ;;  %7549 = vmatpush3.bf16.msra.mxu0 %v7993_v57 }
 0x53a   :  { %7523 = vmatpush3.bf16.msra.mxu1 %v7981_v45  ;;  %7530 = vmatprep.mubr.msk.bf16.mxu1 %vm8029_vm6, %v11351_v8 }
 0x53b   :  { %7524 = vmatprep.subr.bf16.mxu1 %v11351_v8 }
 0x53e   :  { %7525 = vmatpush3.bf16.msra.mxu1 %v7982_v40 }
 0x53f   :  { %7526 = vmatprep.subr.bf16.mxu1 %v11351_v8 }
 0x542   :  { %7527 = vmatpush3.bf16.msra.mxu1 %v7983_v51 }
 0x543   :  { %7528 = vmatprep.subr.bf16.mxu1 %v11351_v8 }
 0x546   :  { %7529 = vmatpush3.bf16.msra.mxu1 %v7984_v15 }
 0x547   :  { %7554 = vmatprep.subr.bf16.mxu1 %v11351_v8 }
 0x549   :  { %7531 = vmatmul.mubr.msk.bf16.vlgmr.msra.gmra.mrb[172].mxu1 %vm56_vm0, %v6290_v43 }
 0x54a   :  { %7562 = vmatprep.mubr.msk.bf16.mxu1 %vm8029_vm6, %v11351_v8  ;;  %7555 = vmatpush3.bf16.msra.mxu1 %v7994_v6 }
 0x54b   :  { %7556 = vmatprep.subr.bf16.mxu1 %v11351_v8 }
 0x54e   :  { %7557 = vmatpush3.bf16.msra.mxu1 %v7995_v16 }
 0x54f   :  { %7558 = vmatprep.subr.bf16.mxu1 %v11351_v8 }
 0x59c   :  { %v5310_v50 = vpop.f32.mrb[140].mxu1 }
 0x59d   :  { %v7376_v29 = vpop.f32.mrb[141].mxu1 }
 0x59e   :  { %v5313_v30 = vpop.f32.mrb[142].mxu1 }
 0x59f   :  { %v7377_v2 = vpop.f32.mrb[143].mxu1 }
 0x5ac   :  { %v5377_v46 = vpop.f32.mrb[144].mxu1 }
 0x5ad   :  { %v5378_v31 = vadd.f32 %v5377_v46, %v5310_v50  ;;  %v7388_v14 = vpop.f32.mrb[145].mxu1  ;;  %v7246_v46 = vld [vmem:[%s11136_s8] ss:$0 sm:$0xff] }
 0x5ae   :  { %v5380_v12 = vpop.f32.mrb[146].mxu1 }
 0x5af   :  { %v7389_v11 = vpop.f32.mrb[147].mxu1  ;;  %v5622_v22 = vpop.f32.mrb[172].mxu0 }
 0x5b0   :  { %v7424_v41 = vpop.f32.mrb[173].mxu0 }
 0x5b1   :  { %v5625_v61 = vpop.f32.mrb[174].mxu0 }
 0x5b2   :  { %v7425_v3 = vpop.f32.mrb[175].mxu0 }
 0x5b3   :  { %v7996_v3 = vld [vmem:[%s11139_s11 + $0x10] sm:$0xff]  }
 0x5b4   :  { %7559 = vmatpush3.bf16.msra.mxu1 %v7996_v3 }
 0x5b5   :  { %7560 = vmatprep.subr.bf16.mxu1 %v11351_v8 }
 0x5bc   :  { %v5458_v47 = vpop.f32.mrb[148].mxu1 }
 0x5bd   :  { %v5464_v26 = vadd.f32 %v5458_v47, %v5378_v31  ;;  %v7400_v37 = vpop.f32.mrb[149].mxu1  ;;  %v7997_v47 = vld [vmem:[%s11139_s11 + $0x18] sm:$0xff]  }
 0x5be   :  { %v5461_v34 = vpop.f32.mrb[150].mxu1  ;;  %7561 = vmatpush3.bf16.msra.mxu1 %v7997_v47 }
 0x5bf   :  { %v7401_v33 = vpop.f32.mrb[151].mxu1  ;;  %v5786_v42 = vpop.f32.mrb[176].mxu0  ;;  %7566 = vmatprep.subr.bf16.mxu1 %v11351_v8 }
 0x5c0   :  { %v7448_v9 = vpop.f32.mrb[177].mxu0 }
 0x5c1   :  { %v5789_v39 = vpop.f32.mrb[178].mxu0 }
 0x5c2   :  { %v7449_v48 = vpop.f32.mrb[179].mxu0 }
 0x5c3   :  { %v7998_v48 = vld [vmem:[%s11141_s13] sm:$0xff]  }
 0x5cc   :  { %v5540_v25 = vpop.f32.mrb[152].mxu1 }
 0x5cd   :  { %v5546_v32 = vadd.f32 %v5540_v25, %v5464_v26  ;;  %v7412_v23 = vpop.f32.mrb[153].mxu1  ;;  %v7247_v26 = vld [vmem:[%s11138_s10] ss:$0 sm:$0xff] }
 0x5ce   :  { %v5543_v36 = vpop.f32.mrb[154].mxu1  ;;  %v7256_v23 = vld [vmem:[%s11140_s12] ss:$0 sm:$0xff]  ;;  %s8030_s12 = smov [#allocation6]  }
 0x5cf   :  { %v7413_v49 = vpop.f32.mrb[155].mxu1  ;;  %v5628_v63 = vadd.f32 %v5622_v22, %v5546_v32  ;;  %v5942_v28 = vpop.f32.mrb[180].mxu0  ;;  %v7999_v32 = vld [vmem:[%s11141_s13 + $0x8] sm:$0xff]   ;;  %s6648_s13 = sshll.u32 %s8030_s12, 4  ;;  %s6649_s13 = int_to_ptr.vmem [resolvable:$true] %s6648_s13 }
 0x5d0   :  { %v7472_v62 = vpop.f32.mrb[181].mxu0  ;;  %p8007_p1 = scmp.lt.s32.totalorder %s6649_s13, %s6649_s13 }
 0x5d1   :  { %v5945_v52 = vpop.f32.mrb[182].mxu0 }
 0x5d2   :  { %v7473_v10 = vpop.f32.mrb[183].mxu0 }
 0x5dc   :  { %v5704_v38 = vpop.f32.mrb[156].mxu1 }
 0x5dd   :  { %v5710_v20 = vadd.f32 %v5704_v38, %v5628_v63  ;;  %v7436_v19 = vpop.f32.mrb[157].mxu1 }
 0x5de   :  { %v5707_v53 = vpop.f32.mrb[158].mxu1 }
 0x5df   :  { %v7437_v55 = vpop.f32.mrb[159].mxu1  ;;  %v5792_v24 = vadd.f32 %v5786_v42, %v5710_v20  ;;  %v6106_v7 = vpop.f32.mrb[184].mxu0 }
 0x5e0   :  { %v7496_v59 = vpop.f32.mrb[185].mxu0 }
 0x5e1   :  { %v6109_v18 = vpop.f32.mrb[186].mxu0 }
 0x5e2   :  { %v7497_v27 = vpop.f32.mrb[187].mxu0 }
 0x5ec   :  { %v5864_v4 = vpop.f32.mrb[160].mxu1 }
 0x5ed   :  { %v5870_v1 = vadd.f32 %v5864_v4, %v5792_v24  ;;  %v7460_v45 = vpop.f32.mrb[161].mxu1 }
 0x5ee   :  { %v5867_v35 = vpop.f32.mrb[162].mxu1 }
 0x5ef   :  { %v7461_v40 = vpop.f32.mrb[163].mxu1  ;;  %v5948_v51 = vadd.f32 %v5942_v28, %v5870_v1  ;;  %v6270_v15 = vpop.f32.mrb[188].mxu0 }
 0x5f0   :  { %v7520_v17 = vpop.f32.mrb[189].mxu0 }
 0x5f1   :  { %v6273_v43 = vpop.f32.mrb[190].mxu0 }
 0x5f2   :  { %v7521_v21 = vpop.f32.mrb[191].mxu0 }
 0x5fc   :  { %v6024_v44 = vpop.f32.mrb[164].mxu1 }
 0x5fd   :  { %v6030_v0 = vadd.f32 %v6024_v44, %v5948_v51  ;;  %v7484_v60 = vpop.f32.mrb[165].mxu1 }
 0x5fe   :  { %v6027_v13 = vpop.f32.mrb[166].mxu1 }
 0x5ff   :  { %v7485_v5 = vpop.f32.mrb[167].mxu1  ;;  %v6112_v50 = vadd.f32 %v6106_v7, %v6030_v0  ;;  %v5019_v7 = vld [vmem:[#allocation3 + $0xf0] sm:$0x3] }
 0x600   :  { %v5047_v59 = vrot.slane %v5019_v7, 6 }
 0x602   :  { %v5048_v18 = vsel %vm3233_vm3, %v5045_v54, %v5047_v59 }
 0x60c   :  { %v6188_v29 = vpop.f32.mrb[168].mxu1 }
 0x60d   :  { %v6194_v30 = vadd.f32 %v6188_v29, %v6112_v50  ;;  %v7508_v2 = vpop.f32.mrb[169].mxu1 }
 0x60e   :  { %v6191_v56 = vpop.f32.mrb[170].mxu1 }
 0x60f   :  { %v7509_v57 = vpop.f32.mrb[171].mxu1  ;;  %v6276_v6 = vadd.f32 %v6270_v15, %v6194_v30 }
 0x61c   :  { %v6352_v16 = vpop.f32.mrb[172].mxu1 }
 0x61d   :  { %v6358_v31 = vadd.f32 %v6352_v16, %v6276_v6  ;;  %v7532_v14 = vpop.f32.mrb[173].mxu1 }
 0x61e   :  { %v6355_v12 = vpop.f32.mrb[174].mxu1 }
 0x61f   :  { %v6366_v11 = vadd.f32 %v7246_v46, %v6358_v31  ;;  %v7533_v22 = vpop.f32.mrb[175].mxu1 }
 0x621   :  { %v6367_v41 = vmax.f32 %v6366_v11, 0.0 }
 0x623   :  { %v6368_v61 = vpack.c.bf16 %v6367_v41, %v6367_v41 }
 0x625   :  { %7551 = vmatmul.mubr.bf16.vlgmr.msra.gmra.mrb[192].mxu0 %v6368_v61 }
 0x6f8   :  { %v6474_v37 = vpop.f32.mrb[192].mxu0 }
 0x6f9   :  { %v6475_v34 = vadd.f32 %v7247_v26, %v6474_v37  ;;  %v7552_v33 = vpop.f32.mrb[193].mxu0 }
 0x6fa   :  { %v6477_v42 = vpop.f32.mrb[194].mxu0 }
 0x6fb   :  { %v6480_v9 = vmax.f32 %v6475_v34, 0.0  ;;  %v7553_v39 = vpop.f32.mrb[195].mxu0 }
 0x6fd   :  { %v6481_v25 = vpack.c.bf16 %v6480_v9, %v6480_v9 }
 0x6ff   :  { %7563 = vmatmul.mubr.msk.bf16.vlgmr.msra.gmra.mrb[176].mxu1 %vm56_vm0, %v6481_v25 }
 0x700   :  { %7567 = vmatpush3.bf16.msra.mxu1 %v7998_v48  ;;  %7570 = vmatprep.mubr.msk.bf16.mxu1 %vm8029_vm6, %v11351_v8 }
 0x701   :  { %7568 = vmatprep.subr.bf16.mxu1 %v11351_v8  ;;  %v7262_v8 = vld [vmem:[%s11142_s14] ss:$0 sm:$0xff]  ;;  %s8002_s14 = scalar_lea.vmem %s6649_s13, 32 }
 0x702   :  { %p8003_p0 = scmp.ne.s32.totalorder %s6649_s13, %s8002_s14  ;;  %p8008_p2 = scmp.lt.s32.totalorder %s8002_s14, %s8002_s14 }
 0x704   :  { %7569 = vmatpush3.bf16.msra.mxu1 %v7999_v32  ;;  %p8009_p3 = por %p8008_p2, %p8007_p1 }
 0x706   :  { %p8010_p4 = pnand %p8009_p3, %p8003_p0 }
 0x7d2   :  { %v6558_v36 = vpop.f32.mrb[176].mxu1 }
 0x7d3   :  { %v6559_v49 = vadd.f32 %v7256_v23, %v6558_v36  ;;  %v7564_v63 = vpop.f32.mrb[177].mxu1 }
 0x7d4   :  { %v6561_v28 = vpop.f32.mrb[178].mxu1 }
 0x7d5   :  { %v6564_v62 = vmax.f32 %v6559_v49, 0.0  ;;  %v7565_v52 = vpop.f32.mrb[179].mxu1 }
 0x7d7   :  { %v6565_v10 = vpack.c.bf16 %v6564_v62, %v6564_v62 }
 0x7d9   :  { %7571 = vmatmul.mubr.msk.bf16.vlgmr.msra.gmra.mrb[180].mxu1 %vm6589_vm8, %v6565_v10 }
 0x8ac   :  { %v6627_v38 = vpop.f32.mrb[180].mxu1 }
 0x8ad   :  { %v6628_v20 = vadd.f32 %v7262_v8, %v6627_v38  ;;  %v7572_v19 = vpop.f32.mrb[181].mxu1 }
 0x8ae   :  { %v6630_v53 = vpop.f32.mrb[182].mxu1 }
 0x8af   :  { %v7573_v55 = vpop.f32.mrb[183].mxu1  ;;  %v6635_v24 = vsel %vm6634_vm9, %v6628_v20, 0.0  ;;  %v6633_v4 = vmul.f32 2.0, %v6628_v20 }
 0x8b0   :  { %6636 = vadd.xlane.f32.xlu1 %v6635_v24 }
 0x8c1   :  { %5073 = vrot.lane.b32.xlu1 %v5048_v18, %s8027_s3 }
 0x93d   :  { %v6637_v27 = vpop.xlane.xlu1 %6636 }
 0x93e   :  { %v6639_v1 = vmul.f32 0.25, %v6637_v27 }
 0x940   :  { %v6640_v45 = vsub.f32 %v6633_v4, %v6639_v1 }
 0x941   :  { %v5074_v35 = vpop.permute.xlu1 %5073 }
 0x942   :  { %6641 = vst.msk [vmem:[#allocation6] sm:$0x3] %vm6634_vm9, %v6640_v45 }
 0x943   :  { %8013 = shalt.err (!%p8010_p4)
}
 0x944   :  { %s8014_s3 = scalar_lea.hbm %s11143_s15, 32 }
 0x945   :  { %p8015_p5 = scmp.ne.s32.totalorder %s11143_s15, %s8014_s3  ;;  %p8018_p6 = scmp.lt.u32.totalorder %s8014_s3, %s11143_s15 }
 0x947   :  { %p8020_p7 = pnand %p8018_p6, %p8015_p5 }
 0x949   :  { %8023 = shalt.err (!%p8020_p7)
}
 0x94a   :  { %6651 = dma.vmem_to_hbm [thread:$0]  %s6649_s13, 32, %s11143_s15, [#allocation7]  }
 0x94b   :  { %8024 = dma.done.wait [#allocation7], 32  }
 0x94c   :  { %8025 = vsyncadd [#allocation7], 4294967264 }
 0x94d   :  { %6655 = vsyncpa [#allocation7], 1 }

</bundles_post_ra>
